<compile_context>
chip_gen: v7x
topology: tpu7x:2x2x1
jax: 0.10.0
libtpu: 0.0.40
codegen_flags: <defaults>
</compile_context>

<pallas_src>
import numpy as np

import jax
import jax.numpy as jnp
from jax.experimental import pallas as pl
from jax.experimental.pallas import tpu as pltpu

NEG_SLOPE = 0.2      # LeakyReLU slope of the critic layers
KSIZE = 5
STRIDE = 2
PAD = 2
IMG_HW = 128         # the PyTorch forward hardcodes 128x128 spectrograms


# ------------------------------ Pallas kernel ------------------------------ #

def _disc_kernel(img_ref, lab_ref,
                 m0_ref, m1_ref, m2_ref, m3_ref, m4_ref,
                 r0_ref, r1_ref, r2_ref, r3_ref, r4_ref,
                 bias_ref, lw_ref, lb_ref, o_ref):
    """Whole discriminator forward for ONE batch sample (grid axis = batch)."""
    f32 = jnp.float32
    bf16 = jnp.bfloat16
    npad = bias_ref.shape[1]            # lane width of every activation (mult of 128)
    m_refs = (m0_ref, m1_ref, m2_ref, m3_ref, m4_ref)
    r_refs = (r0_ref, r1_ref, r2_ref, r3_ref, r4_ref)
    num_layers = len(m_refs)

    x = None
    x_bf = img_ref[...].astype(bf16)                       # (128, c*128)
    for n in range(num_layers):
        # Stage 1 (channel mix + kw taps + W stride/pad): one wide bf16 matmul.
        z = jnp.dot(x_bf, m_refs[n][...],
                    preferred_element_type=f32)             # (Hin, 5*npad)
        z_bf = z.astype(bf16)
        # Stage 2 (kh taps + H stride/pad): 5 back-to-back bf16 selection dots
        # on static, lane-aligned slices; kh == 0 initializes the accumulator.
        acc = jnp.dot(r_refs[n][0], z_bf[:, :npad],
                      preferred_element_type=f32)            # (Ho, npad)
        for kh in range(1, KSIZE):
            acc = acc + jnp.dot(r_refs[n][kh],
                                z_bf[:, kh * npad:(kh + 1) * npad],
                                preferred_element_type=f32)
        if n == 0:
            acc = acc + lab_ref[...]    # hoisted constant label-channel term
        acc = acc + bias_ref[n:n + 1, :]
        if n < num_layers - 1:
            acc = jnp.where(acc >= 0.0, acc, NEG_SLOPE * acc)   # LeakyReLU(0.2)
        x = acc                                              # (Ho, npad) f32
        x_bf = acc.astype(bf16)

    # nn.Flatten + nn.Linear(256*d, 1); linear weights were permuted to the
    # kernel's (ho, co*Wo + wo) activation layout (padding lanes are zero).
    t = x * lw_ref[...]                                      # (4, npad)
    y = jnp.sum(jnp.sum(t, axis=0, keepdims=True),
                axis=1, keepdims=True)                       # (1, 1)
    o_ref[...] = jnp.broadcast_to(y + lb_ref[...], o_ref.shape)


# ---------------------- weight folding (setup time only) ------------------- #

def _round_up(v, m):
    return ((v + m - 1) // m) * m


def _w_selection(w_in, w_out):
    """sel[kw, w, wo] = 1  iff  w == 2*wo + kw - 2  (stride 2, zero pad 2)."""
    sel = np.zeros((KSIZE, w_in, w_out), np.float32)
    for kw in range(KSIZE):
        for wo in range(w_out):
            w = STRIDE * wo + kw - PAD
            if 0 <= w < w_in:
                sel[kw, w, wo] = 1.0
    return sel


def _h_selection(h_in, h_out):
    """r[kh, ho, h] = 1  iff  h == 2*ho + kh - 2  (stride 2, zero pad 2)."""
    r = np.zeros((KSIZE, h_out, h_in), np.float32)
    for kh in range(KSIZE):
        for ho in range(h_out):
            h = STRIDE * ho + kh - PAD
            if 0 <= h < h_in:
                r[kh, ho, h] = 1.0
    return r


def fold_params(params, num_layers, c, d, num_labels):
    """Fold conv / embedding / linear weights into GEMM matrices (runs once)."""
    assert num_layers == 5, "forward hardcodes 128x128 and Linear(256*d)"
    npad = _round_up(64 * d, 128)        # lane width of every activation / GEMM
    folded = {}
    bias_rows = []
    h_in = IMG_HW
    for n in range(num_layers):
        wgt = params["convs"][n]["w"]                  # (Cout, Cin, 5, 5)
        bia = params["convs"][n]["b"]                  # (Cout,)
        cout, cin = wgt.shape[0], wgt.shape[1]
        w_in, h_out, w_out = h_in, h_in // 2, h_in // 2
        assert cout * w_out <= npad, "output lanes exceed padded lane width"
        # M[ci*W + w, kh, co*Wo + wo] = sum_kw wgt[co,ci,kh,kw] * [w==2wo+kw-2]
        sel = jnp.asarray(_w_selection(w_in, w_out))   # (5, W, Wo)
        m = jnp.einsum("oihk,kwv->iwhov", wgt, sel)    # (Cin, W, 5, Cout, Wo)
        m = m.reshape(cin * w_in, KSIZE, cout * w_out)
        m = jnp.pad(m, ((0, 0), (0, 0), (0, npad - cout * w_out)))
        r = jnp.asarray(_h_selection(h_in, h_out))     # (5, Ho, H) f32
        if n == 0:
            img_rows = c * IMG_HW
            folded["m0"] = (m[:img_rows]
                            .reshape(img_rows, KSIZE * npad).astype(jnp.bfloat16))
            # Label channels are constant over H and W: collapse embedding +
            # label weights + kh/H selection into a per-label additive map.
            m_lab = m[img_rows:]                                  # (L*W, 5, npad)
            lab_rows = jnp.repeat(params["embedding"], w_in, axis=1)  # (L, L*W)
            z_lab = jnp.einsum("lr,rkv->lkv", lab_rows, m_lab)        # (L, 5, npad)
            rsum = r.sum(axis=2)                                      # (5, Ho)
            folded["label_table"] = jnp.einsum("kh,lkv->lhv",
                                               rsum, z_lab)           # (L, Ho, npad)
        else:
            rows = cin * w_in
            assert rows <= npad, "input rows exceed padded lane width"
            m = jnp.pad(m, ((0, npad - rows), (0, 0), (0, 0)))
            folded[f"m{n}"] = m.reshape(npad, KSIZE * npad).astype(jnp.bfloat16)
        folded[f"r{n}"] = r.astype(jnp.bfloat16)        # 0/1 -> exact in bf16
        bias_rows.append(jnp.pad(jnp.repeat(bia, w_out), (0, npad - cout * w_out)))
        h_in = h_out
    folded["bias"] = jnp.stack(bias_rows, axis=0)       # (5, npad) f32
    # nn.Linear(256*d, 1): PyTorch flatten order is (co, ho, wo); permute to the
    # kernel's (ho, co*Wo + wo) layout and pad lanes to npad.
    cw, hw = 16 * d, h_in                               # h_in == 4 after 5 halvings
    assert hw == 4 and params["lin_w"].shape == (1, cw * hw * hw)
    lw = params["lin_w"].reshape(cw, hw, hw).transpose(1, 0, 2).reshape(hw, cw * hw)
    folded["lw"] = jnp.pad(lw, ((0, 0), (0, npad - cw * hw)))
    folded["lb"] = params["lin_b"].reshape(1, 1)
    return folded


# ------------------------------ JAX wrappers -------------------------------- #

def conditional_spec_discriminator(folded, labels, img):
    """labels: (B,) int32, img: (B, c, 128, 128) float32 -> (B, 1) float32."""
    batch, c, height, width = img.shape
    npad = folded["bias"].shape[1]
    lab_add = folded["label_table"][labels]             # (B, 64, npad) f32 gather
    ho0 = lab_add.shape[1]
    # NCHW -> (B, H, c*W): channel-major-of-width lane layout (no-op for c=1).
    img_r = jnp.transpose(img, (0, 2, 1, 3)).reshape(batch, height, c * width)

    weights = (folded["m0"], folded["m1"], folded["m2"], folded["m3"], folded["m4"],
               folded["r0"], folded["r1"], folded["r2"], folded["r3"], folded["r4"],
               folded["bias"], folded["lw"], folded["lb"])

    def _resident(arr):
        nd = arr.ndim
        return pl.BlockSpec(arr.shape, lambda b, _nd=nd: (0,) * _nd)

    out = pl.pallas_call(
        _disc_kernel,
        out_shape=jax.ShapeDtypeStruct((batch, 1, 128), jnp.float32),
        grid=(batch,),
        in_specs=[
            pl.BlockSpec((None, height, c * width), lambda b: (b, 0, 0)),
            pl.BlockSpec((None, ho0, npad), lambda b: (b, 0, 0)),
        ] + [_resident(w) for w in weights],
        out_specs=pl.BlockSpec((None, 1, 128), lambda b: (b, 0, 0)),
        compiler_params=pltpu.CompilerParams(
            dimension_semantics=("parallel",)),
    )(img_r, lab_add, *weights)
    return out[:, 0, :1]                                 # (B, 1)


def init_params(key, num_layers, c, d, num_labels):
    keys = jax.random.split(key, 2 * num_layers + 3)
    params = {}
    # nn.Embedding(num_labels, num_labels): default N(0, 1)
    params["embedding"] = jax.random.normal(
        keys[0], (num_labels, num_labels), jnp.float32)
    in_ch_tab = [c + num_labels, 1, 2, 4, 8]
    out_ch_tab = [1, 2, 4, 8, 16]
    convs = []
    for n in range(num_layers):
        cin = (c + num_labels) if n == 0 else in_ch_tab[n] * d
        cout = out_ch_tab[n] * d
        bound = (cin * KSIZE * KSIZE) ** -0.5            # PyTorch Conv2d default init
        w = jax.random.uniform(keys[1 + 2 * n], (cout, cin, KSIZE, KSIZE),
                               jnp.float32, -bound, bound)
        bb = jax.random.uniform(keys[2 + 2 * n], (cout,),
                                jnp.float32, -bound, bound)
        convs.append({"w": w, "b": bb})
    params["convs"] = convs
    fan_in = 256 * d
    bound = fan_in ** -0.5                               # PyTorch Linear default init
    params["lin_w"] = jax.random.uniform(keys[-2], (1, fan_in),
                                         jnp.float32, -bound, bound)
    params["lin_b"] = jax.random.uniform(keys[-1], (1,),
                                         jnp.float32, -bound, bound)
    return params


def reference_forward(params, labels, img, num_layers):
    """Pure-JAX (XLA) reference with identical layer assumptions."""
    batch = img.shape[0]
    emb = params["embedding"][labels]
    num_labels = emb.shape[1]
    cmap = jnp.broadcast_to(emb[:, :, None, None],
                            (batch, num_labels, img.shape[2], img.shape[3]))
    x = jnp.concatenate([img, cmap], axis=1)
    for n in range(num_layers):
        w = params["convs"][n]["w"]
        b = params["convs"][n]["b"]
        x = jax.lax.conv_general_dilated(
            x, w, window_strides=(STRIDE, STRIDE),
            padding=((PAD, PAD), (PAD, PAD)),
            dimension_numbers=("NCHW", "OIHW", "NCHW"))
        x = x + b[None, :, None, None]
        if n < num_layers - 1:
            x = jnp.where(x >= 0.0, x, NEG_SLOPE * x)
    x = x.reshape(batch, -1)
    return x @ params["lin_w"].T + params["lin_b"][None, :]


# ---------------------------------- main ------------------------------------ #

if __name__ == "__main__":
    # Module config: the forward hardcodes 128x128 spatial and Linear(256*d),
    # which forces num_layers = 5 (128 / 2^5 = 4 and 16*d*4*4 == 256*d).
    num_layers, c, d, num_labels = 5, 1, 1, 4
    batch = 2

    key = jax.random.PRNGKey(0)
    pkey, lkey, ikey = jax.random.split(key, 3)
    params = init_params(pkey, num_layers, c, d, num_labels)
    folded = fold_params(params, num_layers, c, d, num_labels)

    labels = jax.random.randint(lkey, (batch,), 0, num_labels, dtype=jnp.int32)
    img = jax.random.normal(ikey, (batch, c, IMG_HW, IMG_HW), jnp.float32)

    fwd = jax.jit(conditional_spec_discriminator)
    out = fwd(folded, labels, img)
    jax.block_until_ready(out)
    assert out.shape == (batch, 1) and out.dtype == jnp.float32

    # Sanity check against a pure-JAX reference (loose tolerance: the kernel's
    # GEMMs run with bf16 operands / f32 accumulation).
    ref = reference_forward(params, labels, img, num_layers)
    err = float(jnp.max(jnp.abs(out - ref)))
    scale = float(jnp.max(jnp.abs(ref)))
    assert err <= 0.1 * scale + 1e-2, f"kernel/reference mismatch: {err} vs {scale}"

    print("KERNEL_OK")
</pallas_src>

<mosaic_0001>
module attributes {stable_mosaic.version = 11 : i64} {
  func.func @_disc_kernel(%arg0: i32, %arg1: memref<1x128x128xf32, #tpu.memory_space<vmem>>, %arg2: memref<1x64x128xf32, #tpu.memory_space<vmem>>, %arg3: memref<128x640xbf16, #tpu.memory_space<vmem>>, %arg4: memref<128x640xbf16, #tpu.memory_space<vmem>>, %arg5: memref<128x640xbf16, #tpu.memory_space<vmem>>, %arg6: memref<128x640xbf16, #tpu.memory_space<vmem>>, %arg7: memref<128x640xbf16, #tpu.memory_space<vmem>>, %arg8: memref<5x64x128xbf16, #tpu.memory_space<vmem>>, %arg9: memref<5x32x64xbf16, #tpu.memory_space<vmem>>, %arg10: memref<5x16x32xbf16, #tpu.memory_space<vmem>>, %arg11: memref<5x8x16xbf16, #tpu.memory_space<vmem>>, %arg12: memref<5x4x8xbf16, #tpu.memory_space<vmem>>, %arg13: memref<5x128xf32, #tpu.memory_space<vmem>>, %arg14: memref<4x128xf32, #tpu.memory_space<vmem>>, %arg15: memref<1x1xf32, #tpu.memory_space<vmem>>, %arg16: memref<1x1x128xf32, #tpu.memory_space<vmem>>) attributes {dimension_semantics = [#tpu.dimension_semantics<parallel>], iteration_bounds = array<i64: 2>, scalar_prefetch = 0 : i64, scratch_operands = 0 : i64, tpu.core_type = #tpu.core_type<tc>, window_params = [{transform_indices = @transform_0, window_bounds = array<i64: 1, 128, 128>}, {transform_indices = @transform_1, window_bounds = array<i64: 1, 64, 128>}, {pipeline_mode = #tpu.pipeline_mode<synchronous>, transform_indices = @transform_2, window_bounds = array<i64: 128, 640>}, {pipeline_mode = #tpu.pipeline_mode<synchronous>, transform_indices = @transform_3, window_bounds = array<i64: 128, 640>}, {pipeline_mode = #tpu.pipeline_mode<synchronous>, transform_indices = @transform_4, window_bounds = array<i64: 128, 640>}, {pipeline_mode = #tpu.pipeline_mode<synchronous>, transform_indices = @transform_5, window_bounds = array<i64: 128, 640>}, {pipeline_mode = #tpu.pipeline_mode<synchronous>, transform_indices = @transform_6, window_bounds = array<i64: 128, 640>}, {pipeline_mode = #tpu.pipeline_mode<synchronous>, transform_indices = @transform_7, window_bounds = array<i64: 5, 64, 128>}, {pipeline_mode = #tpu.pipeline_mode<synchronous>, transform_indices = @transform_8, window_bounds = array<i64: 5, 32, 64>}, {pipeline_mode = #tpu.pipeline_mode<synchronous>, transform_indices = @transform_9, window_bounds = array<i64: 5, 16, 32>}, {pipeline_mode = #tpu.pipeline_mode<synchronous>, transform_indices = @transform_10, window_bounds = array<i64: 5, 8, 16>}, {pipeline_mode = #tpu.pipeline_mode<synchronous>, transform_indices = @transform_11, window_bounds = array<i64: 5, 4, 8>}, {pipeline_mode = #tpu.pipeline_mode<synchronous>, transform_indices = @transform_12, window_bounds = array<i64: 5, 128>}, {pipeline_mode = #tpu.pipeline_mode<synchronous>, transform_indices = @transform_13, window_bounds = array<i64: 4, 128>}, {pipeline_mode = #tpu.pipeline_mode<synchronous>, transform_indices = @transform_14, window_bounds = array<i64: 1, 1>}, {transform_indices = @transform_15, window_bounds = array<i64: 1, 1, 128>}]} {
    %c0 = arith.constant 0 : index
    %c0_0 = arith.constant 0 : index
    %c0_1 = arith.constant 0 : index
    %0 = vector.load %arg1[%c0, %c0_0, %c0_1] : memref<1x128x128xf32, #tpu.memory_space<vmem>>, vector<1x128x128xf32>
    %1 = vector.shape_cast %0 : vector<1x128x128xf32> to vector<128x128xf32>
    %2 = arith.truncf %1 : vector<128x128xf32> to vector<128x128xbf16>
    %c0_2 = arith.constant 0 : index
    %c0_3 = arith.constant 0 : index
    %3 = vector.load %arg3[%c0_2, %c0_3] : memref<128x640xbf16, #tpu.memory_space<vmem>>, vector<128x640xbf16>
    %cst = arith.constant dense<0.000000e+00> : vector<128x640xf32>
    %4 = tpu.matmul %2, %3, %cst {dimension_numbers = #tpu.dot_dimension_numbers<[1], [0], [0], [1], [0, 0, 1, 1], [], []>} : vector<128x128xbf16>, vector<128x640xbf16>, vector<128x640xf32> -> vector<128x640xf32>
    %5 = arith.truncf %4 : vector<128x640xf32> to vector<128x640xbf16>
    %c0_4 = arith.constant 0 : index
    %c0_5 = arith.constant 0 : index
    %c0_6 = arith.constant 0 : index
    %6 = vector.load %arg8[%c0_4, %c0_5, %c0_6] : memref<5x64x128xbf16, #tpu.memory_space<vmem>>, vector<1x64x128xbf16>
    %7 = vector.shape_cast %6 : vector<1x64x128xbf16> to vector<64x128xbf16>
    %8 = vector.extract_strided_slice %5 {offsets = [0, 0], sizes = [128, 128], strides = [1, 1]} : vector<128x640xbf16> to vector<128x128xbf16>
    %cst_7 = arith.constant dense<0.000000e+00> : vector<64x128xf32>
    %9 = tpu.matmul %7, %8, %cst_7 {dimension_numbers = #tpu.dot_dimension_numbers<[1], [0], [0], [1], [0, 0, 1, 1], [], []>} : vector<64x128xbf16>, vector<128x128xbf16>, vector<64x128xf32> -> vector<64x128xf32>
    %c1 = arith.constant 1 : index
    %c0_8 = arith.constant 0 : index
    %c0_9 = arith.constant 0 : index
    %10 = vector.load %arg8[%c1, %c0_8, %c0_9] : memref<5x64x128xbf16, #tpu.memory_space<vmem>>, vector<1x64x128xbf16>
    %11 = vector.shape_cast %10 : vector<1x64x128xbf16> to vector<64x128xbf16>
    %12 = vector.extract_strided_slice %5 {offsets = [0, 128], sizes = [128, 128], strides = [1, 1]} : vector<128x640xbf16> to vector<128x128xbf16>
    %cst_10 = arith.constant dense<0.000000e+00> : vector<64x128xf32>
    %13 = tpu.matmul %11, %12, %cst_10 {dimension_numbers = #tpu.dot_dimension_numbers<[1], [0], [0], [1], [0, 0, 1, 1], [], []>} : vector<64x128xbf16>, vector<128x128xbf16>, vector<64x128xf32> -> vector<64x128xf32>
    %14 = arith.addf %9, %13 : vector<64x128xf32>
    %c2 = arith.constant 2 : index
    %c0_11 = arith.constant 0 : index
    %c0_12 = arith.constant 0 : index
    %15 = vector.load %arg8[%c2, %c0_11, %c0_12] : memref<5x64x128xbf16, #tpu.memory_space<vmem>>, vector<1x64x128xbf16>
    %16 = vector.shape_cast %15 : vector<1x64x128xbf16> to vector<64x128xbf16>
    %17 = vector.extract_strided_slice %5 {offsets = [0, 256], sizes = [128, 128], strides = [1, 1]} : vector<128x640xbf16> to vector<128x128xbf16>
    %cst_13 = arith.constant dense<0.000000e+00> : vector<64x128xf32>
    %18 = tpu.matmul %16, %17, %cst_13 {dimension_numbers = #tpu.dot_dimension_numbers<[1], [0], [0], [1], [0, 0, 1, 1], [], []>} : vector<64x128xbf16>, vector<128x128xbf16>, vector<64x128xf32> -> vector<64x128xf32>
    %19 = arith.addf %14, %18 : vector<64x128xf32>
    %c3 = arith.constant 3 : index
    %c0_14 = arith.constant 0 : index
    %c0_15 = arith.constant 0 : index
    %20 = vector.load %arg8[%c3, %c0_14, %c0_15] : memref<5x64x128xbf16, #tpu.memory_space<vmem>>, vector<1x64x128xbf16>
    %21 = vector.shape_cast %20 : vector<1x64x128xbf16> to vector<64x128xbf16>
    %22 = vector.extract_strided_slice %5 {offsets = [0, 384], sizes = [128, 128], strides = [1, 1]} : vector<128x640xbf16> to vector<128x128xbf16>
    %cst_16 = arith.constant dense<0.000000e+00> : vector<64x128xf32>
    %23 = tpu.matmul %21, %22, %cst_16 {dimension_numbers = #tpu.dot_dimension_numbers<[1], [0], [0], [1], [0, 0, 1, 1], [], []>} : vector<64x128xbf16>, vector<128x128xbf16>, vector<64x128xf32> -> vector<64x128xf32>
    %24 = arith.addf %19, %23 : vector<64x128xf32>
    %c4 = arith.constant 4 : index
    %c0_17 = arith.constant 0 : index
    %c0_18 = arith.constant 0 : index
    %25 = vector.load %arg8[%c4, %c0_17, %c0_18] : memref<5x64x128xbf16, #tpu.memory_space<vmem>>, vector<1x64x128xbf16>
    %26 = vector.shape_cast %25 : vector<1x64x128xbf16> to vector<64x128xbf16>
    %27 = vector.extract_strided_slice %5 {offsets = [0, 512], sizes = [128, 128], strides = [1, 1]} : vector<128x640xbf16> to vector<128x128xbf16>
    %cst_19 = arith.constant dense<0.000000e+00> : vector<64x128xf32>
    %28 = tpu.matmul %26, %27, %cst_19 {dimension_numbers = #tpu.dot_dimension_numbers<[1], [0], [0], [1], [0, 0, 1, 1], [], []>} : vector<64x128xbf16>, vector<128x128xbf16>, vector<64x128xf32> -> vector<64x128xf32>
    %29 = arith.addf %24, %28 : vector<64x128xf32>
    %c0_20 = arith.constant 0 : index
    %c0_21 = arith.constant 0 : index
    %c0_22 = arith.constant 0 : index
    %30 = vector.load %arg2[%c0_20, %c0_21, %c0_22] : memref<1x64x128xf32, #tpu.memory_space<vmem>>, vector<1x64x128xf32>
    %31 = vector.shape_cast %30 : vector<1x64x128xf32> to vector<64x128xf32>
    %32 = arith.addf %29, %31 : vector<64x128xf32>
    %c0_23 = arith.constant 0 : index
    %c0_24 = arith.constant 0 : index
    %33 = vector.load %arg13[%c0_23, %c0_24] : memref<5x128xf32, #tpu.memory_space<vmem>>, vector<1x128xf32>
    %34 = vector.broadcast %33 : vector<1x128xf32> to vector<64x128xf32>
    %35 = arith.addf %32, %34 : vector<64x128xf32>
    %cst_25 = arith.constant 0.000000e+00 : f32
    %36 = vector.broadcast %cst_25 : f32 to vector<64x128xf32>
    %37 = arith.cmpf oge, %35, %36 : vector<64x128xf32>
    %cst_26 = arith.constant 2.000000e-01 : f32
    %38 = vector.broadcast %cst_26 : f32 to vector<64x128xf32>
    %39 = arith.mulf %38, %35 : vector<64x128xf32>
    %40 = arith.select %37, %35, %39 : vector<64x128xi1>, vector<64x128xf32>
    %41 = arith.truncf %40 : vector<64x128xf32> to vector<64x128xbf16>
    %c0_27 = arith.constant 0 : index
    %c0_28 = arith.constant 0 : index
    %42 = vector.load %arg4[%c0_27, %c0_28] : memref<128x640xbf16, #tpu.memory_space<vmem>>, vector<128x640xbf16>
    %cst_29 = arith.constant dense<0.000000e+00> : vector<64x640xf32>
    %43 = tpu.matmul %41, %42, %cst_29 {dimension_numbers = #tpu.dot_dimension_numbers<[1], [0], [0], [1], [0, 0, 1, 1], [], []>} : vector<64x128xbf16>, vector<128x640xbf16>, vector<64x640xf32> -> vector<64x640xf32>
    %44 = arith.truncf %43 : vector<64x640xf32> to vector<64x640xbf16>
    %c0_30 = arith.constant 0 : index
    %c0_31 = arith.constant 0 : index
    %c0_32 = arith.constant 0 : index
    %45 = vector.load %arg9[%c0_30, %c0_31, %c0_32] : memref<5x32x64xbf16, #tpu.memory_space<vmem>>, vector<1x32x64xbf16>
    %46 = vector.shape_cast %45 : vector<1x32x64xbf16> to vector<32x64xbf16>
    %47 = vector.extract_strided_slice %44 {offsets = [0, 0], sizes = [64, 128], strides = [1, 1]} : vector<64x640xbf16> to vector<64x128xbf16>
    %cst_33 = arith.constant dense<0.000000e+00> : vector<32x128xf32>
    %48 = tpu.matmul %46, %47, %cst_33 {dimension_numbers = #tpu.dot_dimension_numbers<[1], [0], [0], [1], [0, 0, 1, 1], [], []>} : vector<32x64xbf16>, vector<64x128xbf16>, vector<32x128xf32> -> vector<32x128xf32>
    %c1_34 = arith.constant 1 : index
    %c0_35 = arith.constant 0 : index
    %c0_36 = arith.constant 0 : index
    %49 = vector.load %arg9[%c1_34, %c0_35, %c0_36] : memref<5x32x64xbf16, #tpu.memory_space<vmem>>, vector<1x32x64xbf16>
    %50 = vector.shape_cast %49 : vector<1x32x64xbf16> to vector<32x64xbf16>
    %51 = vector.extract_strided_slice %44 {offsets = [0, 128], sizes = [64, 128], strides = [1, 1]} : vector<64x640xbf16> to vector<64x128xbf16>
    %cst_37 = arith.constant dense<0.000000e+00> : vector<32x128xf32>
    %52 = tpu.matmul %50, %51, %cst_37 {dimension_numbers = #tpu.dot_dimension_numbers<[1], [0], [0], [1], [0, 0, 1, 1], [], []>} : vector<32x64xbf16>, vector<64x128xbf16>, vector<32x128xf32> -> vector<32x128xf32>
    %53 = arith.addf %48, %52 : vector<32x128xf32>
    %c2_38 = arith.constant 2 : index
    %c0_39 = arith.constant 0 : index
    %c0_40 = arith.constant 0 : index
    %54 = vector.load %arg9[%c2_38, %c0_39, %c0_40] : memref<5x32x64xbf16, #tpu.memory_space<vmem>>, vector<1x32x64xbf16>
    %55 = vector.shape_cast %54 : vector<1x32x64xbf16> to vector<32x64xbf16>
    %56 = vector.extract_strided_slice %44 {offsets = [0, 256], sizes = [64, 128], strides = [1, 1]} : vector<64x640xbf16> to vector<64x128xbf16>
    %cst_41 = arith.constant dense<0.000000e+00> : vector<32x128xf32>
    %57 = tpu.matmul %55, %56, %cst_41 {dimension_numbers = #tpu.dot_dimension_numbers<[1], [0], [0], [1], [0, 0, 1, 1], [], []>} : vector<32x64xbf16>, vector<64x128xbf16>, vector<32x128xf32> -> vector<32x128xf32>
    %58 = arith.addf %53, %57 : vector<32x128xf32>
    %c3_42 = arith.constant 3 : index
    %c0_43 = arith.constant 0 : index
    %c0_44 = arith.constant 0 : index
    %59 = vector.load %arg9[%c3_42, %c0_43, %c0_44] : memref<5x32x64xbf16, #tpu.memory_space<vmem>>, vector<1x32x64xbf16>
    %60 = vector.shape_cast %59 : vector<1x32x64xbf16> to vector<32x64xbf16>
    %61 = vector.extract_strided_slice %44 {offsets = [0, 384], sizes = [64, 128], strides = [1, 1]} : vector<64x640xbf16> to vector<64x128xbf16>
    %cst_45 = arith.constant dense<0.000000e+00> : vector<32x128xf32>
    %62 = tpu.matmul %60, %61, %cst_45 {dimension_numbers = #tpu.dot_dimension_numbers<[1], [0], [0], [1], [0, 0, 1, 1], [], []>} : vector<32x64xbf16>, vector<64x128xbf16>, vector<32x128xf32> -> vector<32x128xf32>
    %63 = arith.addf %58, %62 : vector<32x128xf32>
    %c4_46 = arith.constant 4 : index
    %c0_47 = arith.constant 0 : index
    %c0_48 = arith.constant 0 : index
    %64 = vector.load %arg9[%c4_46, %c0_47, %c0_48] : memref<5x32x64xbf16, #tpu.memory_space<vmem>>, vector<1x32x64xbf16>
    %65 = vector.shape_cast %64 : vector<1x32x64xbf16> to vector<32x64xbf16>
    %66 = vector.extract_strided_slice %44 {offsets = [0, 512], sizes = [64, 128], strides = [1, 1]} : vector<64x640xbf16> to vector<64x128xbf16>
    %cst_49 = arith.constant dense<0.000000e+00> : vector<32x128xf32>
    %67 = tpu.matmul %65, %66, %cst_49 {dimension_numbers = #tpu.dot_dimension_numbers<[1], [0], [0], [1], [0, 0, 1, 1], [], []>} : vector<32x64xbf16>, vector<64x128xbf16>, vector<32x128xf32> -> vector<32x128xf32>
    %68 = arith.addf %63, %67 : vector<32x128xf32>
    %c1_50 = arith.constant 1 : index
    %c0_51 = arith.constant 0 : index
    %69 = vector.load %arg13[%c1_50, %c0_51] : memref<5x128xf32, #tpu.memory_space<vmem>>, vector<1x128xf32>
    %70 = vector.broadcast %69 : vector<1x128xf32> to vector<32x128xf32>
    %71 = arith.addf %68, %70 : vector<32x128xf32>
    %cst_52 = arith.constant 0.000000e+00 : f32
    %72 = vector.broadcast %cst_52 : f32 to vector<32x128xf32>
    %73 = arith.cmpf oge, %71, %72 : vector<32x128xf32>
    %cst_53 = arith.constant 2.000000e-01 : f32
    %74 = vector.broadcast %cst_53 : f32 to vector<32x128xf32>
    %75 = arith.mulf %74, %71 : vector<32x128xf32>
    %76 = arith.select %73, %71, %75 : vector<32x128xi1>, vector<32x128xf32>
    %77 = arith.truncf %76 : vector<32x128xf32> to vector<32x128xbf16>
    %c0_54 = arith.constant 0 : index
    %c0_55 = arith.constant 0 : index
    %78 = vector.load %arg5[%c0_54, %c0_55] : memref<128x640xbf16, #tpu.memory_space<vmem>>, vector<128x640xbf16>
    %cst_56 = arith.constant dense<0.000000e+00> : vector<32x640xf32>
    %79 = tpu.matmul %77, %78, %cst_56 {dimension_numbers = #tpu.dot_dimension_numbers<[1], [0], [0], [1], [0, 0, 1, 1], [], []>} : vector<32x128xbf16>, vector<128x640xbf16>, vector<32x640xf32> -> vector<32x640xf32>
    %80 = arith.truncf %79 : vector<32x640xf32> to vector<32x640xbf16>
    %c0_57 = arith.constant 0 : index
    %c0_58 = arith.constant 0 : index
    %c0_59 = arith.constant 0 : index
    %81 = vector.load %arg10[%c0_57, %c0_58, %c0_59] : memref<5x16x32xbf16, #tpu.memory_space<vmem>>, vector<1x16x32xbf16>
    %82 = vector.shape_cast %81 : vector<1x16x32xbf16> to vector<16x32xbf16>
    %83 = vector.extract_strided_slice %80 {offsets = [0, 0], sizes = [32, 128], strides = [1, 1]} : vector<32x640xbf16> to vector<32x128xbf16>
    %cst_60 = arith.constant dense<0.000000e+00> : vector<16x128xf32>
    %84 = tpu.matmul %82, %83, %cst_60 {dimension_numbers = #tpu.dot_dimension_numbers<[1], [0], [0], [1], [0, 0, 1, 1], [], []>} : vector<16x32xbf16>, vector<32x128xbf16>, vector<16x128xf32> -> vector<16x128xf32>
    %c1_61 = arith.constant 1 : index
    %c0_62 = arith.constant 0 : index
    %c0_63 = arith.constant 0 : index
    %85 = vector.load %arg10[%c1_61, %c0_62, %c0_63] : memref<5x16x32xbf16, #tpu.memory_space<vmem>>, vector<1x16x32xbf16>
    %86 = vector.shape_cast %85 : vector<1x16x32xbf16> to vector<16x32xbf16>
    %87 = vector.extract_strided_slice %80 {offsets = [0, 128], sizes = [32, 128], strides = [1, 1]} : vector<32x640xbf16> to vector<32x128xbf16>
    %cst_64 = arith.constant dense<0.000000e+00> : vector<16x128xf32>
    %88 = tpu.matmul %86, %87, %cst_64 {dimension_numbers = #tpu.dot_dimension_numbers<[1], [0], [0], [1], [0, 0, 1, 1], [], []>} : vector<16x32xbf16>, vector<32x128xbf16>, vector<16x128xf32> -> vector<16x128xf32>
    %89 = arith.addf %84, %88 : vector<16x128xf32>
    %c2_65 = arith.constant 2 : index
    %c0_66 = arith.constant 0 : index
    %c0_67 = arith.constant 0 : index
    %90 = vector.load %arg10[%c2_65, %c0_66, %c0_67] : memref<5x16x32xbf16, #tpu.memory_space<vmem>>, vector<1x16x32xbf16>
    %91 = vector.shape_cast %90 : vector<1x16x32xbf16> to vector<16x32xbf16>
    %92 = vector.extract_strided_slice %80 {offsets = [0, 256], sizes = [32, 128], strides = [1, 1]} : vector<32x640xbf16> to vector<32x128xbf16>
    %cst_68 = arith.constant dense<0.000000e+00> : vector<16x128xf32>
    %93 = tpu.matmul %91, %92, %cst_68 {dimension_numbers = #tpu.dot_dimension_numbers<[1], [0], [0], [1], [0, 0, 1, 1], [], []>} : vector<16x32xbf16>, vector<32x128xbf16>, vector<16x128xf32> -> vector<16x128xf32>
    %94 = arith.addf %89, %93 : vector<16x128xf32>
    %c3_69 = arith.constant 3 : index
    %c0_70 = arith.constant 0 : index
    %c0_71 = arith.constant 0 : index
    %95 = vector.load %arg10[%c3_69, %c0_70, %c0_71] : memref<5x16x32xbf16, #tpu.memory_space<vmem>>, vector<1x16x32xbf16>
    %96 = vector.shape_cast %95 : vector<1x16x32xbf16> to vector<16x32xbf16>
    %97 = vector.extract_strided_slice %80 {offsets = [0, 384], sizes = [32, 128], strides = [1, 1]} : vector<32x640xbf16> to vector<32x128xbf16>
    %cst_72 = arith.constant dense<0.000000e+00> : vector<16x128xf32>
    %98 = tpu.matmul %96, %97, %cst_72 {dimension_numbers = #tpu.dot_dimension_numbers<[1], [0], [0], [1], [0, 0, 1, 1], [], []>} : vector<16x32xbf16>, vector<32x128xbf16>, vector<16x128xf32> -> vector<16x128xf32>
    %99 = arith.addf %94, %98 : vector<16x128xf32>
    %c4_73 = arith.constant 4 : index
    %c0_74 = arith.constant 0 : index
    %c0_75 = arith.constant 0 : index
    %100 = vector.load %arg10[%c4_73, %c0_74, %c0_75] : memref<5x16x32xbf16, #tpu.memory_space<vmem>>, vector<1x16x32xbf16>
    %101 = vector.shape_cast %100 : vector<1x16x32xbf16> to vector<16x32xbf16>
    %102 = vector.extract_strided_slice %80 {offsets = [0, 512], sizes = [32, 128], strides = [1, 1]} : vector<32x640xbf16> to vector<32x128xbf16>
    %cst_76 = arith.constant dense<0.000000e+00> : vector<16x128xf32>
    %103 = tpu.matmul %101, %102, %cst_76 {dimension_numbers = #tpu.dot_dimension_numbers<[1], [0], [0], [1], [0, 0, 1, 1], [], []>} : vector<16x32xbf16>, vector<32x128xbf16>, vector<16x128xf32> -> vector<16x128xf32>
    %104 = arith.addf %99, %103 : vector<16x128xf32>
    %c2_77 = arith.constant 2 : index
    %c0_78 = arith.constant 0 : index
    %105 = vector.load %arg13[%c2_77, %c0_78] : memref<5x128xf32, #tpu.memory_space<vmem>>, vector<1x128xf32>
    %106 = vector.broadcast %105 : vector<1x128xf32> to vector<16x128xf32>
    %107 = arith.addf %104, %106 : vector<16x128xf32>
    %cst_79 = arith.constant 0.000000e+00 : f32
    %108 = vector.broadcast %cst_79 : f32 to vector<16x128xf32>
    %109 = arith.cmpf oge, %107, %108 : vector<16x128xf32>
    %cst_80 = arith.constant 2.000000e-01 : f32
    %110 = vector.broadcast %cst_80 : f32 to vector<16x128xf32>
    %111 = arith.mulf %110, %107 : vector<16x128xf32>
    %112 = arith.select %109, %107, %111 : vector<16x128xi1>, vector<16x128xf32>
    %113 = arith.truncf %112 : vector<16x128xf32> to vector<16x128xbf16>
    %c0_81 = arith.constant 0 : index
    %c0_82 = arith.constant 0 : index
    %114 = vector.load %arg6[%c0_81, %c0_82] : memref<128x640xbf16, #tpu.memory_space<vmem>>, vector<128x640xbf16>
    %cst_83 = arith.constant dense<0.000000e+00> : vector<16x640xf32>
    %115 = tpu.matmul %113, %114, %cst_83 {dimension_numbers = #tpu.dot_dimension_numbers<[1], [0], [0], [1], [0, 0, 1, 1], [], []>} : vector<16x128xbf16>, vector<128x640xbf16>, vector<16x640xf32> -> vector<16x640xf32>
    %116 = arith.truncf %115 : vector<16x640xf32> to vector<16x640xbf16>
    %c0_84 = arith.constant 0 : index
    %c0_85 = arith.constant 0 : index
    %c0_86 = arith.constant 0 : index
    %117 = vector.load %arg11[%c0_84, %c0_85, %c0_86] : memref<5x8x16xbf16, #tpu.memory_space<vmem>>, vector<1x8x16xbf16>
    %118 = vector.shape_cast %117 : vector<1x8x16xbf16> to vector<8x16xbf16>
    %119 = vector.extract_strided_slice %116 {offsets = [0, 0], sizes = [16, 128], strides = [1, 1]} : vector<16x640xbf16> to vector<16x128xbf16>
    %cst_87 = arith.constant dense<0.000000e+00> : vector<8x128xf32>
    %120 = tpu.matmul %118, %119, %cst_87 {dimension_numbers = #tpu.dot_dimension_numbers<[1], [0], [0], [1], [0, 0, 1, 1], [], []>} : vector<8x16xbf16>, vector<16x128xbf16>, vector<8x128xf32> -> vector<8x128xf32>
    %c1_88 = arith.constant 1 : index
    %c0_89 = arith.constant 0 : index
    %c0_90 = arith.constant 0 : index
    %121 = vector.load %arg11[%c1_88, %c0_89, %c0_90] : memref<5x8x16xbf16, #tpu.memory_space<vmem>>, vector<1x8x16xbf16>
    %122 = vector.shape_cast %121 : vector<1x8x16xbf16> to vector<8x16xbf16>
    %123 = vector.extract_strided_slice %116 {offsets = [0, 128], sizes = [16, 128], strides = [1, 1]} : vector<16x640xbf16> to vector<16x128xbf16>
    %cst_91 = arith.constant dense<0.000000e+00> : vector<8x128xf32>
    %124 = tpu.matmul %122, %123, %cst_91 {dimension_numbers = #tpu.dot_dimension_numbers<[1], [0], [0], [1], [0, 0, 1, 1], [], []>} : vector<8x16xbf16>, vector<16x128xbf16>, vector<8x128xf32> -> vector<8x128xf32>
    %125 = arith.addf %120, %124 : vector<8x128xf32>
    %c2_92 = arith.constant 2 : index
    %c0_93 = arith.constant 0 : index
    %c0_94 = arith.constant 0 : index
    %126 = vector.load %arg11[%c2_92, %c0_93, %c0_94] : memref<5x8x16xbf16, #tpu.memory_space<vmem>>, vector<1x8x16xbf16>
    %127 = vector.shape_cast %126 : vector<1x8x16xbf16> to vector<8x16xbf16>
    %128 = vector.extract_strided_slice %116 {offsets = [0, 256], sizes = [16, 128], strides = [1, 1]} : vector<16x640xbf16> to vector<16x128xbf16>
    %cst_95 = arith.constant dense<0.000000e+00> : vector<8x128xf32>
    %129 = tpu.matmul %127, %128, %cst_95 {dimension_numbers = #tpu.dot_dimension_numbers<[1], [0], [0], [1], [0, 0, 1, 1], [], []>} : vector<8x16xbf16>, vector<16x128xbf16>, vector<8x128xf32> -> vector<8x128xf32>
    %130 = arith.addf %125, %129 : vector<8x128xf32>
    %c3_96 = arith.constant 3 : index
    %c0_97 = arith.constant 0 : index
    %c0_98 = arith.constant 0 : index
    %131 = vector.load %arg11[%c3_96, %c0_97, %c0_98] : memref<5x8x16xbf16, #tpu.memory_space<vmem>>, vector<1x8x16xbf16>
    %132 = vector.shape_cast %131 : vector<1x8x16xbf16> to vector<8x16xbf16>
    %133 = vector.extract_strided_slice %116 {offsets = [0, 384], sizes = [16, 128], strides = [1, 1]} : vector<16x640xbf16> to vector<16x128xbf16>
    %cst_99 = arith.constant dense<0.000000e+00> : vector<8x128xf32>
    %134 = tpu.matmul %132, %133, %cst_99 {dimension_numbers = #tpu.dot_dimension_numbers<[1], [0], [0], [1], [0, 0, 1, 1], [], []>} : vector<8x16xbf16>, vector<16x128xbf16>, vector<8x128xf32> -> vector<8x128xf32>
    %135 = arith.addf %130, %134 : vector<8x128xf32>
    %c4_100 = arith.constant 4 : index
    %c0_101 = arith.constant 0 : index
    %c0_102 = arith.constant 0 : index
    %136 = vector.load %arg11[%c4_100, %c0_101, %c0_102] : memref<5x8x16xbf16, #tpu.memory_space<vmem>>, vector<1x8x16xbf16>
    %137 = vector.shape_cast %136 : vector<1x8x16xbf16> to vector<8x16xbf16>
    %138 = vector.extract_strided_slice %116 {offsets = [0, 512], sizes = [16, 128], strides = [1, 1]} : vector<16x640xbf16> to vector<16x128xbf16>
    %cst_103 = arith.constant dense<0.000000e+00> : vector<8x128xf32>
    %139 = tpu.matmul %137, %138, %cst_103 {dimension_numbers = #tpu.dot_dimension_numbers<[1], [0], [0], [1], [0, 0, 1, 1], [], []>} : vector<8x16xbf16>, vector<16x128xbf16>, vector<8x128xf32> -> vector<8x128xf32>
    %140 = arith.addf %135, %139 : vector<8x128xf32>
    %c3_104 = arith.constant 3 : index
    %c0_105 = arith.constant 0 : index
    %141 = vector.load %arg13[%c3_104, %c0_105] : memref<5x128xf32, #tpu.memory_space<vmem>>, vector<1x128xf32>
    %142 = vector.broadcast %141 : vector<1x128xf32> to vector<8x128xf32>
    %143 = arith.addf %140, %142 : vector<8x128xf32>
    %cst_106 = arith.constant 0.000000e+00 : f32
    %144 = vector.broadcast %cst_106 : f32 to vector<8x128xf32>
    %145 = arith.cmpf oge, %143, %144 : vector<8x128xf32>
    %cst_107 = arith.constant 2.000000e-01 : f32
    %146 = vector.broadcast %cst_107 : f32 to vector<8x128xf32>
    %147 = arith.mulf %146, %143 : vector<8x128xf32>
    %148 = arith.select %145, %143, %147 : vector<8x128xi1>, vector<8x128xf32>
    %149 = arith.truncf %148 : vector<8x128xf32> to vector<8x128xbf16>
    %c0_108 = arith.constant 0 : index
    %c0_109 = arith.constant 0 : index
    %150 = vector.load %arg7[%c0_108, %c0_109] : memref<128x640xbf16, #tpu.memory_space<vmem>>, vector<128x640xbf16>
    %cst_110 = arith.constant dense<0.000000e+00> : vector<8x640xf32>
    %151 = tpu.matmul %149, %150, %cst_110 {dimension_numbers = #tpu.dot_dimension_numbers<[1], [0], [0], [1], [0, 0, 1, 1], [], []>} : vector<8x128xbf16>, vector<128x640xbf16>, vector<8x640xf32> -> vector<8x640xf32>
    %152 = arith.truncf %151 : vector<8x640xf32> to vector<8x640xbf16>
    %c0_111 = arith.constant 0 : index
    %c0_112 = arith.constant 0 : index
    %c0_113 = arith.constant 0 : index
    %153 = vector.load %arg12[%c0_111, %c0_112, %c0_113] : memref<5x4x8xbf16, #tpu.memory_space<vmem>>, vector<1x4x8xbf16>
    %154 = vector.shape_cast %153 : vector<1x4x8xbf16> to vector<4x8xbf16>
    %155 = vector.extract_strided_slice %152 {offsets = [0, 0], sizes = [8, 128], strides = [1, 1]} : vector<8x640xbf16> to vector<8x128xbf16>
    %cst_114 = arith.constant dense<0.000000e+00> : vector<4x128xf32>
    %156 = tpu.matmul %154, %155, %cst_114 {dimension_numbers = #tpu.dot_dimension_numbers<[1], [0], [0], [1], [0, 0, 1, 1], [], []>} : vector<4x8xbf16>, vector<8x128xbf16>, vector<4x128xf32> -> vector<4x128xf32>
    %c1_115 = arith.constant 1 : index
    %c0_116 = arith.constant 0 : index
    %c0_117 = arith.constant 0 : index
    %157 = vector.load %arg12[%c1_115, %c0_116, %c0_117] : memref<5x4x8xbf16, #tpu.memory_space<vmem>>, vector<1x4x8xbf16>
    %158 = vector.shape_cast %157 : vector<1x4x8xbf16> to vector<4x8xbf16>
    %159 = vector.extract_strided_slice %152 {offsets = [0, 128], sizes = [8, 128], strides = [1, 1]} : vector<8x640xbf16> to vector<8x128xbf16>
    %cst_118 = arith.constant dense<0.000000e+00> : vector<4x128xf32>
    %160 = tpu.matmul %158, %159, %cst_118 {dimension_numbers = #tpu.dot_dimension_numbers<[1], [0], [0], [1], [0, 0, 1, 1], [], []>} : vector<4x8xbf16>, vector<8x128xbf16>, vector<4x128xf32> -> vector<4x128xf32>
    %161 = arith.addf %156, %160 : vector<4x128xf32>
    %c2_119 = arith.constant 2 : index
    %c0_120 = arith.constant 0 : index
    %c0_121 = arith.constant 0 : index
    %162 = vector.load %arg12[%c2_119, %c0_120, %c0_121] : memref<5x4x8xbf16, #tpu.memory_space<vmem>>, vector<1x4x8xbf16>
    %163 = vector.shape_cast %162 : vector<1x4x8xbf16> to vector<4x8xbf16>
    %164 = vector.extract_strided_slice %152 {offsets = [0, 256], sizes = [8, 128], strides = [1, 1]} : vector<8x640xbf16> to vector<8x128xbf16>
    %cst_122 = arith.constant dense<0.000000e+00> : vector<4x128xf32>
    %165 = tpu.matmul %163, %164, %cst_122 {dimension_numbers = #tpu.dot_dimension_numbers<[1], [0], [0], [1], [0, 0, 1, 1], [], []>} : vector<4x8xbf16>, vector<8x128xbf16>, vector<4x128xf32> -> vector<4x128xf32>
    %166 = arith.addf %161, %165 : vector<4x128xf32>
    %c3_123 = arith.constant 3 : index
    %c0_124 = arith.constant 0 : index
    %c0_125 = arith.constant 0 : index
    %167 = vector.load %arg12[%c3_123, %c0_124, %c0_125] : memref<5x4x8xbf16, #tpu.memory_space<vmem>>, vector<1x4x8xbf16>
    %168 = vector.shape_cast %167 : vector<1x4x8xbf16> to vector<4x8xbf16>
    %169 = vector.extract_strided_slice %152 {offsets = [0, 384], sizes = [8, 128], strides = [1, 1]} : vector<8x640xbf16> to vector<8x128xbf16>
    %cst_126 = arith.constant dense<0.000000e+00> : vector<4x128xf32>
    %170 = tpu.matmul %168, %169, %cst_126 {dimension_numbers = #tpu.dot_dimension_numbers<[1], [0], [0], [1], [0, 0, 1, 1], [], []>} : vector<4x8xbf16>, vector<8x128xbf16>, vector<4x128xf32> -> vector<4x128xf32>
    %171 = arith.addf %166, %170 : vector<4x128xf32>
    %c4_127 = arith.constant 4 : index
    %c0_128 = arith.constant 0 : index
    %c0_129 = arith.constant 0 : index
    %172 = vector.load %arg12[%c4_127, %c0_128, %c0_129] : memref<5x4x8xbf16, #tpu.memory_space<vmem>>, vector<1x4x8xbf16>
    %173 = vector.shape_cast %172 : vector<1x4x8xbf16> to vector<4x8xbf16>
    %174 = vector.extract_strided_slice %152 {offsets = [0, 512], sizes = [8, 128], strides = [1, 1]} : vector<8x640xbf16> to vector<8x128xbf16>
    %cst_130 = arith.constant dense<0.000000e+00> : vector<4x128xf32>
    %175 = tpu.matmul %173, %174, %cst_130 {dimension_numbers = #tpu.dot_dimension_numbers<[1], [0], [0], [1], [0, 0, 1, 1], [], []>} : vector<4x8xbf16>, vector<8x128xbf16>, vector<4x128xf32> -> vector<4x128xf32>
    %176 = arith.addf %171, %175 : vector<4x128xf32>
    %c4_131 = arith.constant 4 : index
    %c0_132 = arith.constant 0 : index
    %177 = vector.load %arg13[%c4_131, %c0_132] : memref<5x128xf32, #tpu.memory_space<vmem>>, vector<1x128xf32>
    %178 = vector.broadcast %177 : vector<1x128xf32> to vector<4x128xf32>
    %179 = arith.addf %176, %178 : vector<4x128xf32>
    %c0_133 = arith.constant 0 : index
    %c0_134 = arith.constant 0 : index
    %180 = vector.load %arg14[%c0_133, %c0_134] : memref<4x128xf32, #tpu.memory_space<vmem>>, vector<4x128xf32>
    %181 = arith.mulf %179, %180 : vector<4x128xf32>
    %cst_135 = arith.constant dense<0.000000e+00> : vector<128xf32>
    %182 = vector.multi_reduction <add>, %181, %cst_135 [0] : vector<4x128xf32> to vector<128xf32>
    %183 = vector.shape_cast %182 : vector<128xf32> to vector<1x128xf32>
    %cst_136 = arith.constant dense<0.000000e+00> : vector<1xf32>
    %184 = vector.multi_reduction <add>, %183, %cst_136 [1] : vector<1x128xf32> to vector<1xf32>
    %185 = vector.shape_cast %184 : vector<1xf32> to vector<1x1xf32>
    %c0_137 = arith.constant 0 : index
    %c0_138 = arith.constant 0 : index
    %186 = vector.load %arg15[%c0_137, %c0_138] : memref<1x1xf32, #tpu.memory_space<vmem>>, vector<1x1xf32>
    %187 = arith.addf %185, %186 : vector<1x1xf32>
    %188 = vector.shape_cast %187 : vector<1x1xf32> to vector<1x1xf32>
    %189 = vector.broadcast %188 : vector<1x1xf32> to vector<1x128xf32>
    %c0_139 = arith.constant 0 : index
    %c0_140 = arith.constant 0 : index
    %c0_141 = arith.constant 0 : index
    %190 = vector.load %arg16[%c0_139, %c0_140, %c0_141] : memref<1x1x128xf32, #tpu.memory_space<vmem>>, vector<1x1x128xf32>
    %191 = vector.shape_cast %190 : vector<1x1x128xf32> to vector<1x128xf32>
    %192 = vector.shape_cast %189 : vector<1x128xf32> to vector<1x1x128xf32>
    tpu.vector_store %arg16[%c0_139, %c0_140, %c0_141], %192 {strides = array<i32>} : memref<1x1x128xf32, #tpu.memory_space<vmem>>, vector<1x1x128xf32>,
    return
  }
  func.func @transform_0(%arg0: i32) -> (i32, i32, i32) {
    %c0_i32 = arith.constant 0 : i32
    %c0_i32_0 = arith.constant 0 : i32
    %c0_i32_1 = arith.constant 0 : i32
    return %arg0, %c0_i32, %c0_i32_0 : i32, i32, i32
  }
  func.func @transform_1(%arg0: i32) -> (i32, i32, i32) {
    %c0_i32 = arith.constant 0 : i32
    %c0_i32_0 = arith.constant 0 : i32
    %c0_i32_1 = arith.constant 0 : i32
    return %arg0, %c0_i32, %c0_i32_0 : i32, i32, i32
  }
  func.func @transform_2(%arg0: i32) -> (i32, i32) {
    %c0_i32 = arith.constant 0 : i32
    %c0_i32_0 = arith.constant 0 : i32
    %c0_i32_1 = arith.constant 0 : i32
    return %c0_i32, %c0_i32_0 : i32, i32
  }
  func.func @transform_3(%arg0: i32) -> (i32, i32) {
    %c0_i32 = arith.constant 0 : i32
    %c0_i32_0 = arith.constant 0 : i32
    %c0_i32_1 = arith.constant 0 : i32
    return %c0_i32, %c0_i32_0 : i32, i32
  }
  func.func @transform_4(%arg0: i32) -> (i32, i32) {
    %c0_i32 = arith.constant 0 : i32
    %c0_i32_0 = arith.constant 0 : i32
    %c0_i32_1 = arith.constant 0 : i32
    return %c0_i32, %c0_i32_0 : i32, i32
  }
  func.func @transform_5(%arg0: i32) -> (i32, i32) {
    %c0_i32 = arith.constant 0 : i32
    %c0_i32_0 = arith.constant 0 : i32
    %c0_i32_1 = arith.constant 0 : i32
    return %c0_i32, %c0_i32_0 : i32, i32
  }
  func.func @transform_6(%arg0: i32) -> (i32, i32) {
    %c0_i32 = arith.constant 0 : i32
    %c0_i32_0 = arith.constant 0 : i32
    %c0_i32_1 = arith.constant 0 : i32
    return %c0_i32, %c0_i32_0 : i32, i32
  }
  func.func @transform_7(%arg0: i32) -> (i32, i32, i32) {
    %c0_i32 = arith.constant 0 : i32
    %c0_i32_0 = arith.constant 0 : i32
    %c0_i32_1 = arith.constant 0 : i32
    %c0_i32_2 = arith.constant 0 : i32
    return %c0_i32, %c0_i32_0, %c0_i32_1 : i32, i32, i32
  }
  func.func @transform_8(%arg0: i32) -> (i32, i32, i32) {
    %c0_i32 = arith.constant 0 : i32
    %c0_i32_0 = arith.constant 0 : i32
    %c0_i32_1 = arith.constant 0 : i32
    %c0_i32_2 = arith.constant 0 : i32
    return %c0_i32, %c0_i32_0, %c0_i32_1 : i32, i32, i32
  }
  func.func @transform_9(%arg0: i32) -> (i32, i32, i32) {
    %c0_i32 = arith.constant 0 : i32
    %c0_i32_0 = arith.constant 0 : i32
    %c0_i32_1 = arith.constant 0 : i32
    %c0_i32_2 = arith.constant 0 : i32
    return %c0_i32, %c0_i32_0, %c0_i32_1 : i32, i32, i32
  }
  func.func @transform_10(%arg0: i32) -> (i32, i32, i32) {
    %c0_i32 = arith.constant 0 : i32
    %c0_i32_0 = arith.constant 0 : i32
    %c0_i32_1 = arith.constant 0 : i32
    %c0_i32_2 = arith.constant 0 : i32
    return %c0_i32, %c0_i32_0, %c0_i32_1 : i32, i32, i32
  }
  func.func @transform_11(%arg0: i32) -> (i32, i32, i32) {
    %c0_i32 = arith.constant 0 : i32
    %c0_i32_0 = arith.constant 0 : i32
    %c0_i32_1 = arith.constant 0 : i32
    %c0_i32_2 = arith.constant 0 : i32
    return %c0_i32, %c0_i32_0, %c0_i32_1 : i32, i32, i32
  }
  func.func @transform_12(%arg0: i32) -> (i32, i32) {
    %c0_i32 = arith.constant 0 : i32
    %c0_i32_0 = arith.constant 0 : i32
    %c0_i32_1 = arith.constant 0 : i32
    return %c0_i32, %c0_i32_0 : i32, i32
  }
  func.func @transform_13(%arg0: i32) -> (i32, i32) {
    %c0_i32 = arith.constant 0 : i32
    %c0_i32_0 = arith.constant 0 : i32
    %c0_i32_1 = arith.constant 0 : i32
    return %c0_i32, %c0_i32_0 : i32, i32
  }
  func.func @transform_14(%arg0: i32) -> (i32, i32) {
    %c0_i32 = arith.constant 0 : i32
    %c0_i32_0 = arith.constant 0 : i32
    %c0_i32_1 = arith.constant 0 : i32
    return %c0_i32, %c0_i32_0 : i32, i32
  }
  func.func @transform_15(%arg0: i32) -> (i32, i32, i32) {
    %c0_i32 = arith.constant 0 : i32
    %c0_i32_0 = arith.constant 0 : i32
    %c0_i32_1 = arith.constant 0 : i32
    return %arg0, %c0_i32, %c0_i32_0 : i32, i32, i32
  }
}

</mosaic_0001>

<bundles_post_ra>
// kernel: conditional_spec_discriminator.1
= control target key start
LH: loop header
LB: loop body
LE: loop exit
PB: predicated region body
PF: predicated region fallthrough
CT: control target
= control target key end

     0   :  { %s7221_s0 = inlined_call_operand.vmem [shape: f32[2,128,128], index: 0, kind: input, shape index: {}]   ;;  %s7222_s1 = inlined_call_operand.vmem [shape: f32[2,64,128], index: 1, kind: input, shape index: {}]   ;;  %s7223_s2 = inlined_call_operand.hbm [shape: bf16[128,640], index: 2, kind: input, shape index: {}]   ;;  %s7224_s3 = inlined_call_operand.hbm [shape: bf16[128,640], index: 3, kind: input, shape index: {}]   ;;  %s7225_s4 = inlined_call_operand.hbm [shape: bf16[128,640], index: 4, kind: input, shape index: {}]   ;;  %s7226_s5 = inlined_call_operand.hbm [shape: bf16[128,640], index: 5, kind: input, shape index: {}]   ;;  %s7227_s6 = inlined_call_operand.hbm [shape: bf16[128,640], index: 6, kind: input, shape index: {}]   ;;  %s7228_s7 = inlined_call_operand.hbm [shape: bf16[5,64,128], index: 7, kind: input, shape index: {}]   ;;  %s7229_s8 = inlined_call_operand.hbm [shape: bf16[5,32,64], index: 8, kind: input, shape index: {}]   ;;  %s7230_s9 = inlined_call_operand.vmem [shape: bf16[5,16,32], index: 9, kind: input, shape index: {}]   ;;  %s7231_s10 = inlined_call_operand.vmem [shape: bf16[5,8,16], index: 10, kind: input, shape index: {}]   ;;  %s7232_s11 = inlined_call_operand.hbm [shape: bf16[5,4,8], index: 11, kind: input, shape index: {}]   ;;  %s7233_s12 = inlined_call_operand.hbm [shape: f32[5,128], index: 12, kind: input, shape index: {}]   ;;  %s7234_s13 = inlined_call_operand.vmem [shape: f32[4,128], index: 13, kind: input, shape index: {}]   ;;  %s7235_s14 = inlined_call_operand.<no memory space> [shape: f32[1,1], index: 14, kind: input, shape index: {}]   ;;  %s7236_s15 = inlined_call_operand.vmem [shape: f32[2,1,128], index: 15, kind: output, shape index: {}]  }
   0x1   :  { %7246 = sst [smem:[#allocation23_spill]] %s7224_s3  ;;  %v20_v0 = vstv %s7235_s14 }
   0x2   :  { %7247 = sst [smem:[#allocation24_spill]] %s7226_s5  ;;  %21 = vst [vmem:[#allocation2] sm:$0x1] %v20_v0 }
   0x3   :  { %7248 = sst [smem:[#allocation25_spill]] %s7234_s13 }
   0x4   :  { %7249 = sst [smem:[#allocation26_spill]] %s7236_s15 }
   0x5   :  { %22 = vsyncpa [#allocation4], 0 }
   0x6   :  { %23 = vsyncpa [#allocation6], 0 }
   0x7   :  { %24 = vsyncpa [#allocation9], 0 }
   0x8   :  { %25 = vsyncpa [#allocation12], 0 }
   0x9   :  { %26 = vsyncpa [#allocation15], 0  ;;  %s6596_s20 = smov 0  }
   0xa LB: > { %7250 = sst [smem:[#allocation22_spill]] %s6493_s20  ;;  %s6602_s21 = sadd.s32 4294967295, %s6493_s20   ;;  %s6493_s20 = sphi %s6596_s20, %s32_s20  }
   0xb   : > { %p4860_p0 = scmp.ge.s32.totalorder %s6493_s20, 1  ;;  %p388_p1 = scmp.lt.s32.totalorder %s6493_s20, 3 }
   0xc   : > { %p7242_p2 = scmp.eq.s32.totalorder %s6602_s21, 0  ;;  %s6495_s22 = smov [#allocation5]  }
   0xd   : > { %p6607_p3 = pnand %p4860_p0, %p388_p1  ;;  %s413_s23 = sshll.u32 %s6495_s22, 4  ;;  %s6611_s23 = int_to_ptr.vmem [resolvable:$true] %s413_s23 }
   0xe   : > { %s6496_s24 = smov [#allocation8]   ;;  %s6497_s27 = smov [#allocation11]  }
   0xf   : > { %s7251_s14 = scalar_select %p6607_p3, 1, 0 }
  0x10   : > { %p5827_p4 = pneg %p6607_p3  ;;  %s439_s25 = sshll.u32 %s6496_s24, 4  ;;  %s6615_s25 = int_to_ptr.vmem [resolvable:$true] %s439_s25 }
  0x11   : > { %s465_s28 = sshll.u32 %s6497_s27, 4  ;;  %s7253_s3 = sld [smem:[#allocation23_spill]]  ;;  %s6623_s28 = int_to_ptr.vmem [resolvable:$true] %s465_s28 }
  0x12   : > { %p6619_p5 = pnand %p7242_p2, %p5827_p4 }
  0x14   : > { %p6633_p7 = pneg %p6619_p5 }
  0x17   : > { %s6215_s16 = scalar_lea.hbm %s7253_s3, 5120 }
  0x18   : > { %p6216_p6 = scmp.ne.s32.totalorder %s7253_s3, %s6215_s16  ;;  %p6222_p10 = scmp.lt.u32.totalorder %s6215_s16, %s7253_s3 }
  0x1a   : > { %p6218_p8 = pnand %p6633_p7, %p6216_p6 }
  0x1c   : > { %p6219_p9 = pneg %p6218_p8 }
  0x1e   : > { %p6224_p11 = pnand %p6222_p10, %p6219_p9 }
  0x20   : > { %6227 = shalt.err (!%p6224_p11)
}
  0x21   : > { %s6228_s27 = scalar_lea.vmem %s6611_s23, 5120  ;;  %p6236_p1 = scmp.lt.s32.totalorder %s6611_s23, %s6611_s23 }
  0x22   : > { %p6229_p12 = scmp.ne.s32.totalorder %s6611_s23, %s6228_s27  ;;  %p6237_p4 = scmp.lt.s32.totalorder %s6228_s27, %s6228_s27 }
  0x24   : > { %p6231_p13 = pnand %p6229_p12, %p6633_p7  ;;  %p6238_p6 = por %p6237_p4, %p6236_p1 }
  0x26   : > { %p6232_p0 = pneg %p6231_p13 }
  0x28   : > { %p6239_p8 = pnand %p6238_p6, %p6232_p0 }
  0x2a   : > { %6242 = shalt.err (!%p6239_p8)
}
  0x2b   : > { %s7238_s29 = smov 320   ;;  %s7240_s30 = smov 20  }
  0x2c   : > { %5833 = dma.hbm_to_vmem [thread:$0]  (!%p6619_p5), %s7253_s3, 5120, %s6611_s23, [#allocation6], %s7238_s29, %s7238_s29, %s7240_s30  }
  0x2d   : > { %s7255_s5 = sld [smem:[#allocation24_spill]] }
  0x33   : > { %s6243_s24 = scalar_lea.hbm %s7255_s5, 5120 }
  0x34   : > { %p6244_p9 = scmp.ne.s32.totalorder %s7255_s5, %s6243_s24  ;;  %p6250_p12 = scmp.lt.u32.totalorder %s6243_s24, %s7255_s5 }
  0x36   : > { %p6246_p10 = pnand %p6244_p9, %p6633_p7 }
  0x38   : > { %p6247_p11 = pneg %p6246_p10 }
  0x3a   : > { %p6252_p13 = pnand %p6250_p12, %p6247_p11 }
  0x3c   : > { %6255 = shalt.err (!%p6252_p13)
}
  0x3d   : > { %s6256_s23 = scalar_lea.vmem %s6615_s25, 5120  ;;  %p6264_p6 = scmp.lt.s32.totalorder %s6615_s25, %s6615_s25 }
  0x3e   : > { %p6257_p0 = scmp.ne.s32.totalorder %s6615_s25, %s6256_s23  ;;  %p6265_p8 = scmp.lt.s32.totalorder %s6256_s23, %s6256_s23 }
  0x40   : > { %p6259_p1 = pnand %p6257_p0, %p6633_p7  ;;  %p6266_p9 = por %p6265_p8, %p6264_p6 }
  0x42   : > { %p6260_p4 = pneg %p6259_p1 }
  0x44   : > { %p6267_p10 = pnand %p6266_p9, %p6260_p4 }
  0x46   : > { %6270 = shalt.err (!%p6267_p10)
}
  0x47   : > { %5839 = dma.hbm_to_vmem [thread:$0]  (!%p6619_p5), %s7255_s5, 5120, %s6615_s25, [#allocation9], %s7238_s29, %s7238_s29, %s7240_s30  }
  0x48   : > { %s6271_s17 = scalar_lea.hbm %s7228_s7, 2560 }
  0x49   : > { %p6272_p11 = scmp.ne.s32.totalorder %s7228_s7, %s6271_s17  ;;  %p6278_p0 = scmp.lt.u32.totalorder %s6271_s17, %s7228_s7 }
  0x4b   : > { %p6274_p12 = pnand %p6272_p11, %p6633_p7 }
  0x4d   : > { %p6275_p13 = pneg %p6274_p12 }
  0x4f   : > { %p6280_p1 = pnand %p6278_p0, %p6275_p13 }
  0x51   : > { %6283 = shalt.err (!%p6280_p1)
}
  0x52   : > { %s6284_s25 = scalar_lea.vmem %s6623_s28, 2560  ;;  %p6292_p9 = scmp.lt.s32.totalorder %s6623_s28, %s6623_s28 }
  0x53   : > { %p6285_p4 = scmp.ne.s32.totalorder %s6623_s28, %s6284_s25  ;;  %p6293_p10 = scmp.lt.s32.totalorder %s6284_s25, %s6284_s25 }
  0x55   : > { %p6287_p6 = pnand %p6285_p4, %p6633_p7  ;;  %p6294_p11 = por %p6293_p10, %p6292_p9 }
  0x57   : > { %p6288_p8 = pneg %p6287_p6 }
  0x59   : > { %p6295_p12 = pnand %p6294_p11, %p6288_p8 }
  0x5b   : > { %6298 = shalt.err (!%p6295_p12)
}
  0x5c   : > { %s7244_s23 = smov 64   ;;  %s7245_s13 = smov 4  }
  0x5d   : > { %5845 = dma.hbm_to_vmem [thread:$0]  (!%p6619_p5), %s7228_s7, 2560, %s6623_s28, [#allocation12], %s7244_s23, %s7244_s23, %s7245_s13  }
  0x5e   : > { %s6502_s16 = smov [#allocation14]   ;;  %s6299_s24 = scalar_lea.hbm %s7232_s11, 160 }
  0x5f   : > { %s497_s17 = sshll.u32 %s6502_s16, 4  ;;  %p6300_p13 = scmp.ne.s32.totalorder %s7232_s11, %s6299_s24  ;;  %s498_s17 = int_to_ptr.vmem [resolvable:$true] %s497_s17 }
  0x60   : > { %p6306_p4 = scmp.lt.u32.totalorder %s6299_s24, %s7232_s11 }
  0x61   : > { %p6302_p0 = pnand %p6300_p13, %p6633_p7 }
  0x63   : > { %p6303_p1 = pneg %p6302_p0 }
  0x65   : > { %p6308_p6 = pnand %p6306_p4, %p6303_p1 }
  0x67   : > { %6311 = shalt.err (!%p6308_p6)
}
  0x68   : > { %s6312_s28 = scalar_lea.vmem %s498_s17, 160  ;;  %p6320_p11 = scmp.lt.s32.totalorder %s498_s17, %s498_s17 }
  0x69   : > { %p6313_p8 = scmp.ne.s32.totalorder %s498_s17, %s6312_s28  ;;  %p6321_p12 = scmp.lt.s32.totalorder %s6312_s28, %s6312_s28 }
  0x6b   : > { %p6315_p9 = pnand %p6313_p8, %p6633_p7  ;;  %p6322_p2 = por %p6321_p12, %p6320_p11 }
  0x6d   : > { %p6316_p10 = pneg %p6315_p9 }
  0x6f   : > { %p6323_p3 = pnand %p6322_p2, %p6316_p10 }
  0x71   : > { %6326 = shalt.err (!%p6323_p3)
}
  0x72   : > { %s6503_s15 = smov 32   ;;  %s6504_s20 = smov 2  }
  0x73   : > { %5851 = dma.hbm_to_vmem [thread:$0]  (!%p6619_p5), %s7232_s11, 160, %s498_s17, [#allocation15], %s6503_s15, %s6503_s15, %s6504_s20  }
  0x74   : > { %s6505_s16 = smov [#allocation3]   ;;  %s6506_s22 = smov [#allocation7]  }
  0x75   : > { %s400_s18 = sshll.u32 %s6505_s16, 4  ;;  %s426_s24 = sshll.u32 %s6506_s22, 4  ;;  %s401_s18 = int_to_ptr.vmem [resolvable:$true] %s400_s18  ;;  %s427_s24 = int_to_ptr.vmem [resolvable:$true] %s426_s24 }
  0x76   : > { %s6327_s28 = scalar_lea.hbm %s7223_s2, 5120 }
  0x77   : > { %p6328_p2 = scmp.ne.s32.totalorder %s7223_s2, %s6327_s28  ;;  %p6334_p0 = scmp.lt.u32.totalorder %s6327_s28, %s7223_s2 }
  0x79   : > { %p6330_p3 = pnand %p6328_p2, %p6633_p7 }
  0x7b   : > { %p6331_p13 = pneg %p6330_p3 }
  0x7d   : > { %p6336_p1 = pnand %p6334_p0, %p6331_p13 }
  0x7f   : > { %6339 = shalt.err (!%p6336_p1)
}
  0x80   : > { %s6340_s17 = scalar_lea.vmem %s401_s18, 5120  ;;  %p6348_p9 = scmp.lt.s32.totalorder %s401_s18, %s401_s18 }
  0x81   : > { %p6341_p4 = scmp.ne.s32.totalorder %s401_s18, %s6340_s17  ;;  %p6349_p10 = scmp.lt.s32.totalorder %s6340_s17, %s6340_s17 }
  0x83   : > { %p6343_p6 = pnand %p6341_p4, %p6633_p7  ;;  %p6350_p11 = por %p6349_p10, %p6348_p9 }
  0x85   : > { %p6344_p8 = pneg %p6343_p6 }
  0x87   : > { %p6351_p12 = pnand %p6350_p11, %p6344_p8 }
  0x89   : > { %6354 = shalt.err (!%p6351_p12)
}
  0x8a   : > { %s7256_s23 = smov 20   ;;  %s7257_s13 = smov 320  }
  0x8b   : > { %5830 = dma.hbm_to_vmem [thread:$0]  (!%p6619_p5), %s7223_s2, 5120, %s401_s18, [#allocation4], %s7257_s13, %s7257_s13, %s7256_s23  }
  0x8c   : > { %s6355_s29 = scalar_lea.hbm %s7225_s4, 5120 }
  0x8d   : > { %p6356_p2 = scmp.ne.s32.totalorder %s7225_s4, %s6355_s29  ;;  %p6362_p0 = scmp.lt.u32.totalorder %s6355_s29, %s7225_s4 }
  0x8f   : > { %p6358_p3 = pnand %p6356_p2, %p6633_p7 }
  0x91   : > { %p6359_p13 = pneg %p6358_p3 }
  0x93   : > { %p6364_p1 = pnand %p6362_p0, %p6359_p13 }
  0x95   : > { %6367 = shalt.err (!%p6364_p1)
}
  0x96   : > { %s6368_s25 = scalar_lea.vmem %s427_s24, 5120  ;;  %p6376_p9 = scmp.lt.s32.totalorder %s427_s24, %s427_s24 }
  0x97   : > { %p6369_p4 = scmp.ne.s32.totalorder %s427_s24, %s6368_s25  ;;  %p6377_p10 = scmp.lt.s32.totalorder %s6368_s25, %s6368_s25 }
  0x99   : > { %p6371_p6 = pnand %p6369_p4, %p6633_p7  ;;  %p6378_p11 = por %p6377_p10, %p6376_p9 }
  0x9b   : > { %p6372_p8 = pneg %p6371_p6 }
  0x9d   : > { %p6379_p12 = pnand %p6378_p11, %p6372_p8 }
  0x9f   : > { %6382 = shalt.err (!%p6379_p12)
}
  0xa0   : > { %5836 = dma.hbm_to_vmem [thread:$0]  (!%p6619_p5), %s7225_s4, 5120, %s427_s24, [#allocation6], %s7257_s13, %s7257_s13, %s7256_s23  }
  0xa1   : > { %s6507_s17 = smov [#allocation10]   ;;  %s6508_s5 = smov [#allocation13]  }
  0xa2   : > { %s452_s3 = sshll.u32 %s6507_s17, 4  ;;  %s478_s15 = sshll.u32 %s6508_s5, 4  ;;  %s453_s3 = int_to_ptr.vmem [resolvable:$true] %s452_s3  ;;  %s479_s15 = int_to_ptr.vmem [resolvable:$true] %s478_s15 }
  0xa3   : > { %s6383_s30 = scalar_lea.hbm %s7227_s6, 5120 }
  0xa4   : > { %p6384_p2 = scmp.ne.s32.totalorder %s7227_s6, %s6383_s30  ;;  %p6390_p0 = scmp.lt.u32.totalorder %s6383_s30, %s7227_s6 }
  0xa6   : > { %p6386_p3 = pnand %p6384_p2, %p6633_p7 }
  0xa8   : > { %p6387_p13 = pneg %p6386_p3 }
  0xaa   : > { %p6392_p1 = pnand %p6390_p0, %p6387_p13 }
  0xac   : > { %6395 = shalt.err (!%p6392_p1)
}
  0xad   : > { %s6396_s24 = scalar_lea.vmem %s453_s3, 5120  ;;  %p6404_p9 = scmp.lt.s32.totalorder %s453_s3, %s453_s3 }
  0xae   : > { %p6397_p4 = scmp.ne.s32.totalorder %s453_s3, %s6396_s24  ;;  %p6405_p10 = scmp.lt.s32.totalorder %s6396_s24, %s6396_s24 }
  0xb0   : > { %p6399_p6 = pnand %p6397_p4, %p6633_p7  ;;  %p6406_p11 = por %p6405_p10, %p6404_p9 }
  0xb2   : > { %p6400_p8 = pneg %p6399_p6 }
  0xb4   : > { %p6407_p12 = pnand %p6406_p11, %p6400_p8 }
  0xb6   : > { %6410 = shalt.err (!%p6407_p12)
}
  0xb7   : > { %5842 = dma.hbm_to_vmem [thread:$0]  (!%p6619_p5), %s7227_s6, 5120, %s453_s3, [#allocation9], %s7257_s13, %s7257_s13, %s7256_s23  }
  0xb8   : > { %s6411_s20 = scalar_lea.hbm %s7229_s8, 1280 }
  0xb9   : > { %p6412_p2 = scmp.ne.s32.totalorder %s7229_s8, %s6411_s20  ;;  %p6418_p0 = scmp.lt.u32.totalorder %s6411_s20, %s7229_s8 }
  0xbb   : > { %p6414_p3 = pnand %p6412_p2, %p6633_p7 }
  0xbd   : > { %p6415_p13 = pneg %p6414_p3 }
  0xbf   : > { %p6420_p1 = pnand %p6418_p0, %p6415_p13 }
  0xc1   : > { %6423 = shalt.err (!%p6420_p1)
}
  0xc2   : > { %s6424_s27 = scalar_lea.vmem %s479_s15, 1280  ;;  %p6432_p9 = scmp.lt.s32.totalorder %s479_s15, %s479_s15 }
  0xc3   : > { %p6425_p4 = scmp.ne.s32.totalorder %s479_s15, %s6424_s27  ;;  %p6433_p10 = scmp.lt.s32.totalorder %s6424_s27, %s6424_s27 }
  0xc5   : > { %p6427_p6 = pnand %p6425_p4, %p6633_p7  ;;  %p6434_p11 = por %p6433_p10, %p6432_p9 }
  0xc7   : > { %p6428_p8 = pneg %p6427_p6 }
  0xc9   : > { %p6435_p12 = pnand %p6434_p11, %p6428_p8 }
  0xcb   : > { %6438 = shalt.err (!%p6435_p12)
}
  0xcc   : > { %s7258_s23 = smov 4   ;;  %s7259_s13 = smov 64  }
  0xcd   : > { %5848 = dma.hbm_to_vmem [thread:$0]  (!%p6619_p5), %s7229_s8, 1280, %s479_s15, [#allocation12], %s7259_s13, %s7259_s13, %s7258_s23  }
  0xce   : > { %s6509_s24 = smov [#allocation16]   ;;  %s6439_s5 = scalar_lea.hbm %s7233_s12, 128 }
  0xcf   : > { %s511_s18 = sshll.u32 %s6509_s24, 4  ;;  %p6440_p2 = scmp.ne.s32.totalorder %s7233_s12, %s6439_s5  ;;  %s512_s18 = int_to_ptr.vmem [resolvable:$true] %s511_s18 }
  0xd0   : > { %p6446_p0 = scmp.lt.u32.totalorder %s6439_s5, %s7233_s12 }
  0xd1   : > { %p6442_p3 = pnand %p6440_p2, %p6633_p7 }
  0xd3   : > { %p6443_p13 = pneg %p6442_p3 }
  0xd5   : > { %p6448_p1 = pnand %p6446_p0, %p6443_p13 }
  0xd7   : > { %6451 = shalt.err (!%p6448_p1)
}
  0xd8   : > { %s6452_s15 = scalar_lea.vmem %s512_s18, 128  ;;  %p6460_p9 = scmp.lt.s32.totalorder %s512_s18, %s512_s18 }
  0xd9   : > { %p6453_p4 = scmp.ne.s32.totalorder %s512_s18, %s6452_s15  ;;  %p6461_p10 = scmp.lt.s32.totalorder %s6452_s15, %s6452_s15 }
  0xdb   : > { %p6455_p6 = pnand %p6453_p4, %p6633_p7  ;;  %p6462_p11 = por %p6461_p10, %p6460_p9 }
  0xdd   : > { %p6456_p8 = pneg %p6455_p6 }
  0xdf   : > { %p6463_p12 = pnand %p6462_p11, %p6456_p8 }
  0xe1   : > { %6466 = shalt.err (!%p6463_p12)
}
  0xe2   : > { %5854 = dma.hbm_to_vmem [thread:$0]  (!%p6619_p5), %s7233_s12, 128, %s512_s18, [#allocation15]  }
  0xe3   : > { %p7260_p2 = scmp.ne.s32.totalorder %s7251_s14, 0 }
  0xe4   : > { %p7261_p3 = scmp.eq.s32.totalorder (!%p7260_p2), %s6602_s21, 0 }
  0xe5   : > { %546 = sbr.rel (%p7260_p2) target bundleno = 3162 (0xc5a), region = 80 }
  0xec   : > { %6472 = dma.done.wait (%p7261_p3), [#allocation4], 5120   ;;  %p7262_p7 = pmov %p7261_p3 }
  0xed   : > { %p7263_p13 = pmov %p7261_p3 }
  0xee   : > { %6474 = vsyncadd (%p7262_p7), [#allocation4], 4294962176 }
  0xef   : > { %6476 = dma.done.wait (%p7263_p13), [#allocation6], 10240   ;;  %p7264_p0 = pmov %p7261_p3 }
  0xf1   : > { %6478 = vsyncadd (%p7264_p0), [#allocation6], 4294957056  ;;  %p7265_p1 = pmov %p7264_p0 }
  0xf2   : > { %p7266_p5 = pmov %p7264_p0 }
  0xf3   : > { %6480 = dma.done.wait (%p7265_p1), [#allocation9], 10240  }
  0xf4   : > { %6482 = vsyncadd (%p7266_p5), [#allocation9], 4294957056  ;;  %p7267_p4 = pmov %p7264_p0 }
  0xf5   : > { %p7268_p6 = pmov %p7264_p0 }
  0xf6   : > { %6484 = dma.done.wait (%p7267_p4), [#allocation12], 3840  }
  0xf7   : > { %6486 = vsyncadd (%p7268_p6), [#allocation12], 4294963456  ;;  %p7269_p8 = pmov %p7264_p0 }
  0xf8   : > { %p7270_p9 = pmov %p7264_p0 }
  0xf9   : > { %6488 = dma.done.wait (%p7269_p8), [#allocation15], 288  }
  0xfa   : > { %6490 = vsyncadd (%p7270_p9), [#allocation15], 4294967008  ;;  %v6510_v1 = vmov 0   ;;  %v5900_v2 = vld [vmem:[#allocation3 + $0x4] ss:$20 sps:$4 sm:$0xff]   ;;  %p629_p10 = scmp.lt.s32.totalorder %s6602_s21, 1 }
  0xfb   : > { %955 = vmatprep.mubr.bf16.mxu0 %v6510_v1  ;;  %1068 = vmatprep.mubr.bf16.mxu1 %v6510_v1  ;;  %v5902_v3 = vld [vmem:[#allocation3] ss:$20 sps:$4 sm:$0xff]   ;;  %v5905_v5 = vld [vmem:[#allocation3 + $0x28] ss:$20 sps:$4 sm:$0xff]   ;;  %v5908_v7 = vld [vmem:[#allocation3 + $0x50] ss:$20 sps:$4 sm:$0xff]  }
  0xfc   : > { %5899 = vset.pattern.permute.xlu0 %v6510_v1  ;;  %923 = vmatprep.subr.bf16.mxu0 %v5900_v2  ;;  %v5903_v4 = vld [vmem:[#allocation3 + $0x2c] ss:$20 sps:$4 sm:$0xff]   ;;  %v5906_v6 = vld [vmem:[#allocation3 + $0x54] ss:$20 sps:$4 sm:$0xff]   ;;  %v5909_v8 = vld [vmem:[#allocation3 + $0x7c] ss:$20 sps:$4 sm:$0xff]  }
  0xfd   : > { %924 = vmatpush1.bf16.msra.mxu0 %v5902_v3  ;;  %v5911_v9 = vld [vmem:[#allocation3 + $0x78] ss:$20 sps:$4 sm:$0xff]   ;;  %v5926_v12 = vld [vmem:[#allocation3 + $0x8] ss:$20 sps:$4 sm:$0xff]   ;;  %v5914_v13 = vld [vmem:[#allocation3 + $0xa0] ss:$20 sps:$4 sm:$0xff]  }
  0xfe   : > { %925 = vmatprep.subr.bf16.mxu0 %v5903_v4  ;;  %v5912_v10 = vld [vmem:[#allocation3 + $0xa4] ss:$20 sps:$4 sm:$0xff]   ;;  %v5924_v11 = vld [vmem:[#allocation3 + $0xc] ss:$20 sps:$4 sm:$0xff]   ;;  %s7275_s21 = smov (!%p629_p10, %s6602_s21), 1  ;;  %vm2362_vm8 = vcmask 523264  }
  0xff   : > { %v5915_v14 = vld [vmem:[#allocation3 + $0xcc] ss:$20 sps:$4 sm:$0xff]   ;;  %1036 = vmatprep.subr.bf16.mxu1 %v5924_v11  ;;  %v5927_v15 = vld [vmem:[#allocation3 + $0x34] ss:$20 sps:$4 sm:$0xff]   ;;  %v5929_v16 = vld [vmem:[#allocation3 + $0x30] ss:$20 sps:$4 sm:$0xff]  }
 0x100   : > { %1037 = vmatpush1.bf16.msra.mxu1 %v5926_v12  ;;  %v5930_v17 = vld [vmem:[#allocation3 + $0x5c] ss:$20 sps:$4 sm:$0xff]   ;;  %v5918_v19 = vld [vmem:[#allocation3 + $0xf4] ss:$20 sps:$4 sm:$0xff]   ;;  %s5164_s14 = sshll.u32 %s7275_s21, 7  ;;  %v5956_v3 = vld [vmem:[#allocation11 + $0x20] sm:$0xff]  }
 0x101   : > { %926 = vmatpush1.bf16.msra.mxu0 %v5905_v5  ;;  %1038 = vmatprep.subr.bf16.mxu1 %v5927_v15  ;;  %v5917_v18 = vld [vmem:[#allocation3 + $0xc8] ss:$20 sps:$4 sm:$0xff]   ;;  %v5932_v20 = vld [vmem:[#allocation3 + $0x58] ss:$20 sps:$4 sm:$0xff]   ;;  %v5920_v22 = vld [vmem:[#allocation3 + $0xf0] ss:$20 sps:$4 sm:$0xff]   ;;  %s6862_s23 = scalar_lea.vmem %s7221_s0, %s5164_s14 }
 0x102   : > { %927 = vmatprep.subr.bf16.mxu0 %v5906_v6  ;;  %v5933_v21 = vld [vmem:[#allocation3 + $0x84] ss:$20 sps:$4 sm:$0xff]   ;;  %v5921_v23 = vld [vmem:[#allocation3 + $0x11c] ss:$20 sps:$4 sm:$0xff]   ;;  %v5935_v25 = vld [vmem:[#allocation3 + $0x80] ss:$20 sps:$4 sm:$0xff]  }
 0x103   : > { %v5923_v24 = vld [vmem:[#allocation3 + $0x118] ss:$20 sps:$4 sm:$0xff]   ;;  %v643_v26 = vld [vmem:[%s6862_s23] sm:$0xff]  ;;  %v5939_v32 = vld [vmem:[#allocation3 + $0xd4] ss:$20 sps:$4 sm:$0xff]   ;;  %s5165_s13 = sshll.u32 %s7275_s21, 6 }
 0x104   : > { %1039 = vmatpush1.bf16.msra.mxu1 %v5929_v16  ;;  %v5936_v27 = vld [vmem:[#allocation3 + $0xac] ss:$20 sps:$4 sm:$0xff]   ;;  %v5948_v29 = vld [vmem:[#allocation3 + $0x10] ss:$20 sps:$4 sm:$0xff]   ;;  %v5938_v30 = vld [vmem:[#allocation3 + $0xa8] ss:$20 sps:$4 sm:$0xff]   ;;  %s7038_s24 = scalar_lea.vmem %s7222_s1, %s5165_s13 }
 0x105   : > { %928 = vmatpush1.bf16.msra.mxu0 %v5908_v7  ;;  %1040 = vmatprep.subr.bf16.mxu1 %v5930_v17  ;;  %v644_v28 = vld [vmem:[%s6862_s23 + $0x8] sm:$0xff]  ;;  %v645_v35 = vld [vmem:[%s6862_s23 + $0x10] sm:$0xff]  ;;  %v646_v36 = vld [vmem:[%s6862_s23 + $0x18] sm:$0xff]  ;;  %vm6512_vm13 = vmmov 0   ;;  %vm3159_vm14 = vcmask 261120   ;;  %s7271_s5 = sld [smem:[#allocation25_spill]] }
 0x106   : > { %929 = vmatprep.subr.bf16.mxu0 %v5909_v8  ;;  %v6866_v31 = vpack.c.bf16 %v644_v28, %v643_v26  ;;  %v5941_v33 = vld [vmem:[#allocation3 + $0xd0] ss:$20 sps:$4 sm:$0xff]   ;;  %v5949_v34 = vld [vmem:[#allocation3 + $0x38] ss:$20 sps:$4 sm:$0xff]   ;;  %v5950_v38 = vld [vmem:[#allocation3 + $0x60] ss:$20 sps:$4 sm:$0xff]   ;;  %v6872_v41 = vpack.c.bf16 %v646_v36, %v645_v35 }
 0x107   : > { %v5942_v37 = vld [vmem:[#allocation3 + $0xfc] ss:$20 sps:$4 sm:$0xff]   ;;  %v5944_v39 = vld [vmem:[#allocation3 + $0xf8] ss:$20 sps:$4 sm:$0xff]   ;;  %v5947_v43 = vld [vmem:[#allocation3 + $0x120] ss:$20 sps:$4 sm:$0xff]  }
 0x108   : > { %1041 = vmatpush1.bf16.msra.mxu1 %v5932_v20  ;;  %v5945_v40 = vld [vmem:[#allocation3 + $0x124] ss:$20 sps:$4 sm:$0xff]   ;;  %v5951_v42 = vld [vmem:[#allocation3 + $0x88] ss:$20 sps:$4 sm:$0xff]   ;;  %v649_v49 = vld [vmem:[%s6862_s23 + $0x30] sm:$0xff]  ;;  %s7272_s30 = sld [smem:[#allocation26_spill]] }
 0x109   : > { %930 = vmatpush1.bf16.msra.mxu0 %v5911_v9  ;;  %1042 = vmatprep.subr.bf16.mxu1 %v5933_v21  ;;  %v647_v44 = vld [vmem:[%s6862_s23 + $0x20] sm:$0xff]  ;;  %v648_v45 = vld [vmem:[%s6862_s23 + $0x28] sm:$0xff]  ;;  %v650_v50 = vld [vmem:[%s6862_s23 + $0x38] sm:$0xff] }
 0x10a   : > { %931 = vmatprep.subr.bf16.mxu0 %v5912_v10  ;;  %v5952_v46 = vld [vmem:[#allocation3 + $0xb0] ss:$20 sps:$4 sm:$0xff]   ;;  %v661_v47 = vpack.c.bf16 %v648_v45, %v647_v44  ;;  %v5953_v48 = vld [vmem:[#allocation3 + $0xd8] ss:$20 sps:$4 sm:$0xff]   ;;  %v5954_v51 = vld [vmem:[#allocation3 + $0x100] ss:$20 sps:$4 sm:$0xff]   ;;  %v662_v52 = vpack.c.bf16 %v650_v50, %v649_v49 }
 0x10b   : > { %v5955_v53 = vld [vmem:[#allocation3 + $0x128] ss:$20 sps:$4 sm:$0xff]   ;;  %v653_v57 = vld [vmem:[%s6862_s23 + $0x50] sm:$0xff] }
 0x10c   : > { %1043 = vmatpush1.bf16.msra.mxu1 %v5935_v25  ;;  %v651_v54 = vld [vmem:[%s6862_s23 + $0x40] sm:$0xff]  ;;  %v652_v55 = vld [vmem:[%s6862_s23 + $0x48] sm:$0xff]  ;;  %v654_v58 = vld [vmem:[%s6862_s23 + $0x58] sm:$0xff] }
 0x10d   : > { %932 = vmatpush1.bf16.msra.mxu0 %v5914_v13  ;;  %1044 = vmatprep.subr.bf16.mxu1 %v5936_v27  ;;  %v663_v56 = vpack.c.bf16 %v652_v55, %v651_v54  ;;  %v664_v59 = vpack.c.bf16 %v654_v58, %v653_v57  ;;  %v655_v60 = vld [vmem:[%s6862_s23 + $0x60] sm:$0xff]  ;;  %v656_v61 = vld [vmem:[%s6862_s23 + $0x68] sm:$0xff]  ;;  %v657_v63 = vld [vmem:[%s6862_s23 + $0x70] sm:$0xff] }
 0x10e   : > { %933 = vmatprep.subr.bf16.mxu0 %v5915_v14  ;;  %v665_v62 = vpack.c.bf16 %v656_v61, %v655_v60  ;;  %v658_v0 = vld [vmem:[%s6862_s23 + $0x78] sm:$0xff]  ;;  %s641_s16 = scalar_lea.vmem %s7272_s30, %s7275_s21 }
 0x10f   : > { %v666_v2 = vpack.c.bf16 %v658_v0, %v657_v63 }
 0x110   : > { %1045 = vmatpush1.bf16.msra.mxu1 %v5938_v30 }
 0x111   : > { %934 = vmatpush1.bf16.msra.mxu0 %v5917_v18  ;;  %1046 = vmatprep.subr.bf16.mxu1 %v5939_v32 }
 0x112   : > { %935 = vmatprep.subr.bf16.mxu0 %v5918_v19 }
 0x114   : > { %1047 = vmatpush1.bf16.msra.mxu1 %v5941_v33 }
 0x115   : > { %936 = vmatpush1.bf16.msra.mxu0 %v5920_v22  ;;  %1048 = vmatprep.subr.bf16.mxu1 %v5942_v37 }
 0x116   : > { %937 = vmatprep.subr.bf16.mxu0 %v5921_v23 }
 0x118   : > { %1049 = vmatpush1.bf16.msra.mxu1 %v5944_v39 }
 0x119   : > { %938 = vmatpush1.bf16.msra.mxu0 %v5923_v24  ;;  %1050 = vmatprep.subr.bf16.mxu1 %v5945_v40 }
 0x11a   : > { %5347 = vmatprep.subr.bf16.mxu0 %v5948_v29 }
 0x11c   : > { %956 = vmatmul.mubr.bf16.vlgmr.msra.gmra.mrb[0].mxu0 %v6866_v31  ;;  %1051 = vmatpush1.bf16.msra.mxu1 %v5947_v43 }
 0x11d   : > { %965 = vmatprep.mubr.bf16.mxu0 %v6510_v1  ;;  %5348 = vmatpush3.bf16.msra.mxu0 %v5948_v29 }
 0x11e   : > { %5349 = vmatprep.subr.bf16.mxu0 %v5949_v34 }
 0x11f   : > { %1069 = vmatmul.mubr.bf16.vlgmr.msra.gmra.mrb[0].mxu1 %v6866_v31 }
 0x120   : > { %1078 = vmatprep.mubr.bf16.mxu1 %v6510_v1 }
 0x121   : > { %5350 = vmatpush3.bf16.msra.mxu0 %v5949_v34 }
 0x122   : > { %5351 = vmatprep.subr.bf16.mxu0 %v5950_v38 }
 0x124   : > { %966 = vmatmul.mubr.bf16.gmra.mrb[4].mxu0 %v6872_v41 }
 0x125   : > { %975 = vmatprep.mubr.bf16.mxu0 %v6510_v1  ;;  %5352 = vmatpush3.bf16.msra.mxu0 %v5950_v38 }
 0x126   : > { %5353 = vmatprep.subr.bf16.mxu0 %v5951_v42 }
 0x127   : > { %1079 = vmatmul.mubr.bf16.gmra.mrb[4].mxu1 %v6872_v41 }
 0x128   : > { %1088 = vmatprep.mubr.bf16.mxu1 %v6510_v1 }
 0x129   : > { %5354 = vmatpush3.bf16.msra.mxu0 %v5951_v42 }
 0x12a   : > { %5355 = vmatprep.subr.bf16.mxu0 %v5952_v46 }
 0x12c   : > { %976 = vmatmul.mubr.bf16.gmra.mrb[8].mxu0 %v661_v47 }
 0x12d   : > { %985 = vmatprep.mubr.bf16.mxu0 %v6510_v1  ;;  %5356 = vmatpush3.bf16.msra.mxu0 %v5952_v46 }
 0x12e   : > { %5357 = vmatprep.subr.bf16.mxu0 %v5953_v48 }
 0x12f   : > { %1089 = vmatmul.mubr.bf16.gmra.mrb[8].mxu1 %v661_v47 }
 0x130   : > { %1098 = vmatprep.mubr.bf16.mxu1 %v6510_v1 }
 0x131   : > { %5358 = vmatpush3.bf16.msra.mxu0 %v5953_v48 }
 0x132   : > { %5359 = vmatprep.subr.bf16.mxu0 %v5954_v51 }
 0x134   : > { %986 = vmatmul.mubr.bf16.gmra.mrb[12].mxu0 %v662_v52 }
 0x135   : > { %995 = vmatprep.mubr.bf16.mxu0 %v6510_v1  ;;  %5360 = vmatpush3.bf16.msra.mxu0 %v5954_v51 }
 0x136   : > { %5361 = vmatprep.subr.bf16.mxu0 %v5955_v53 }
 0x137   : > { %1099 = vmatmul.mubr.bf16.gmra.mrb[12].mxu1 %v662_v52 }
 0x138   : > { %1108 = vmatprep.mubr.bf16.mxu1 %v6510_v1 }
 0x139   : > { %5362 = vmatpush3.bf16.msra.mxu0 %v5955_v53 }
 0x13c   : > { %996 = vmatmul.mubr.bf16.gmra.mrb[16].mxu0 %v663_v56 }
 0x13d   : > { %1005 = vmatprep.mubr.bf16.mxu0 %v6510_v1 }
 0x13f   : > { %1109 = vmatmul.mubr.bf16.gmra.mrb[16].mxu1 %v663_v56 }
 0x140   : > { %1118 = vmatprep.mubr.bf16.mxu1 %v6510_v1 }
 0x144   : > { %1006 = vmatmul.mubr.bf16.gmra.mrb[20].mxu0 %v664_v59 }
 0x145   : > { %1015 = vmatprep.mubr.bf16.mxu0 %v6510_v1 }
 0x147   : > { %1119 = vmatmul.mubr.bf16.gmra.mrb[20].mxu1 %v664_v59 }
 0x148   : > { %1128 = vmatprep.mubr.bf16.mxu1 %v6510_v1 }
 0x14c   : > { %1016 = vmatmul.mubr.bf16.gmra.mrb[24].mxu0 %v665_v62 }
 0x14d   : > { %1025 = vmatprep.mubr.bf16.mxu0 %v6510_v1 }
 0x14f   : > { %1129 = vmatmul.mubr.bf16.gmra.mrb[24].mxu1 %v665_v62 }
 0x150   : > { %1138 = vmatprep.mubr.bf16.mxu1 %v6510_v1 }
 0x154   : > { %1026 = vmatmul.mubr.bf16.gmra.mrb[28].mxu0 %v666_v2 }
 0x155   : > { %5363 = vmatprep.mubr.bf16.mxu0 %v6866_v31 }
 0x157   : > { %1139 = vmatmul.mubr.bf16.gmra.mrb[28].mxu1 %v666_v2 }
 0x158   : > { %5395 = vmatprep.mubr.bf16.mxu1 %v5956_v3 }
 0x15c   : > { %5364 = vmatmul.mubr.bf16.vlgmr.msra.gmra.mrb[32].mxu0 %v6872_v41 }
 0x15d   : > { %5367 = vmatprep.mubr.bf16.mxu0 %v661_v47 }
 0x164   : > { %5368 = vmatmul.mubr.bf16.gmra.mrb[36].mxu0 %v662_v52 }
 0x165   : > { %5371 = vmatprep.mubr.bf16.mxu0 %v663_v56 }
 0x16c   : > { %5372 = vmatmul.mubr.bf16.gmra.mrb[40].mxu0 %v664_v59 }
 0x16d   : > { %5375 = vmatprep.mubr.bf16.mxu0 %v665_v62 }
 0x174   : > { %5376 = vmatmul.mubr.bf16.gmra.mrb[44].mxu0 %v666_v2 }
 0x175   : > { %2144 = vmatprep.mubr.bf16.mxu0 %v6510_v1 }
 0x1ef   : > { %v957_v4 = vpop.f32.mrb[0].mxu0 }
 0x1f0   : > { %v959_v5 = vpop.f32.mrb[1].mxu0 }
 0x1f1   : > { %v961_v6 = vpop.f32.mrb[2].mxu0 }
 0x1f2   : > { %v6905_v7 = vpack.c.bf16 %v961_v6, %v957_v4  ;;  %v963_v8 = vpop.f32.mrb[3].mxu0  ;;  %v1070_v16 = vpop.f32.mrb[0].mxu1 }
 0x1f3   : > { %v1247_v9 = vpack.c.bf16 %v963_v8, %v959_v5  ;;  %v1072_v17 = vpop.f32.mrb[1].mxu1 }
 0x1f4   : > { %v1074_v19 = vpop.f32.mrb[2].mxu1 }
 0x1f5   : > { %5379 = vmatprep.subr.bf16.mxu1 %v1247_v9  ;;  %v6909_v21 = vpack.c.bf16 %v1074_v19, %v1070_v16  ;;  %v1076_v22 = vpop.f32.mrb[3].mxu1 }
 0x1f6   : > { %5380 = vmatpush3.bf16.msra.mxu1 %v1247_v9  ;;  %v6911_v24 = vpack.c.bf16 %v1076_v22, %v1072_v17 }
 0x1f7   : > { %v967_v10 = vpop.f32.mrb[4].mxu0 }
 0x1f8   : > { %v969_v11 = vpop.f32.mrb[5].mxu0 }
 0x1f9   : > { %v971_v12 = vpop.f32.mrb[6].mxu0 }
 0x1fa   : > { %v6907_v13 = vpack.c.bf16 %v971_v12, %v967_v10  ;;  %v973_v14 = vpop.f32.mrb[7].mxu0  ;;  %v1080_v28 = vpop.f32.mrb[4].mxu1 }
 0x1fb   : > { %v1252_v15 = vpack.c.bf16 %v973_v14, %v969_v11  ;;  %v1082_v29 = vpop.f32.mrb[5].mxu1 }
 0x1fc   : > { %v1084_v31 = vpop.f32.mrb[6].mxu1 }
 0x1fd   : > { %5381 = vmatprep.subr.bf16.mxu1 %v1252_v15  ;;  %v6915_v33 = vpack.c.bf16 %v1084_v31, %v1080_v28  ;;  %v1086_v34 = vpop.f32.mrb[7].mxu1 }
 0x1fe   : > { %5382 = vmatpush3.bf16.msra.mxu1 %v1252_v15  ;;  %v6917_v36 = vpack.c.bf16 %v1086_v34, %v1082_v29 }
 0x1ff   : > { %v977_v18 = vpop.f32.mrb[8].mxu0 }
 0x200   : > { %v979_v20 = vpop.f32.mrb[9].mxu0 }
 0x201   : > { %v981_v23 = vpop.f32.mrb[10].mxu0 }
 0x202   : > { %v6913_v25 = vpack.c.bf16 %v981_v23, %v977_v18  ;;  %v983_v26 = vpop.f32.mrb[11].mxu0  ;;  %v1090_v40 = vpop.f32.mrb[8].mxu1 }
 0x203   : > { %v1257_v27 = vpack.c.bf16 %v983_v26, %v979_v20  ;;  %v1092_v41 = vpop.f32.mrb[9].mxu1 }
 0x204   : > { %v1094_v43 = vpop.f32.mrb[10].mxu1 }
 0x205   : > { %5383 = vmatprep.subr.bf16.mxu1 %v1257_v27  ;;  %v6921_v45 = vpack.c.bf16 %v1094_v43, %v1090_v40  ;;  %v1096_v46 = vpop.f32.mrb[11].mxu1 }
 0x206   : > { %5384 = vmatpush3.bf16.msra.mxu1 %v1257_v27  ;;  %v6923_v48 = vpack.c.bf16 %v1096_v46, %v1092_v41 }
 0x207   : > { %v987_v30 = vpop.f32.mrb[12].mxu0 }
 0x208   : > { %v989_v32 = vpop.f32.mrb[13].mxu0 }
 0x209   : > { %v991_v35 = vpop.f32.mrb[14].mxu0 }
 0x20a   : > { %v6919_v37 = vpack.c.bf16 %v991_v35, %v987_v30  ;;  %v993_v38 = vpop.f32.mrb[15].mxu0  ;;  %v1100_v52 = vpop.f32.mrb[12].mxu1  ;;  %v5957_v30 = vld [vmem:[#allocation11 + $0x28] sm:$0xff]  }
 0x20b   : > { %v1262_v39 = vpack.c.bf16 %v993_v38, %v989_v32  ;;  %v1102_v53 = vpop.f32.mrb[13].mxu1  ;;  %v5958_v32 = vld [vmem:[#allocation11 + $0x30] sm:$0xff]  }
 0x20c   : > { %v1104_v55 = vpop.f32.mrb[14].mxu1 }
 0x20d   : > { %5385 = vmatprep.subr.bf16.mxu1 %v1262_v39  ;;  %v6927_v57 = vpack.c.bf16 %v1104_v55, %v1100_v52  ;;  %v1106_v58 = vpop.f32.mrb[15].mxu1  ;;  %v5960_v52 = vld [vmem:[#allocation11] sm:$0xff]  }
 0x20e   : > { %5386 = vmatpush3.bf16.msra.mxu1 %v1262_v39  ;;  %v6929_v60 = vpack.c.bf16 %v1106_v58, %v1102_v53 }
 0x20f   : > { %v997_v42 = vpop.f32.mrb[16].mxu0 }
 0x210   : > { %v999_v44 = vpop.f32.mrb[17].mxu0 }
 0x211   : > { %v1001_v47 = vpop.f32.mrb[18].mxu0 }
 0x212   : > { %v6925_v49 = vpack.c.bf16 %v1001_v47, %v997_v42  ;;  %v1003_v50 = vpop.f32.mrb[19].mxu0  ;;  %v1110_v0 = vpop.f32.mrb[16].mxu1 }
 0x213   : > { %v1267_v51 = vpack.c.bf16 %v1003_v50, %v999_v44  ;;  %v1112_v2 = vpop.f32.mrb[17].mxu1  ;;  %v5959_v50 = vld [vmem:[#allocation11 + $0x38] sm:$0xff]  }
 0x214   : > { %v1114_v4 = vpop.f32.mrb[18].mxu1 }
 0x215   : > { %5387 = vmatprep.subr.bf16.mxu1 %v1267_v51  ;;  %v6933_v6 = vpack.c.bf16 %v1114_v4, %v1110_v0  ;;  %v1116_v8 = vpop.f32.mrb[19].mxu1  ;;  %v5978_v0 = vld [vmem:[#allocation5 + $0x4] ss:$20 sps:$4 sm:$0xff]  }
 0x216   : > { %5388 = vmatpush3.bf16.msra.mxu1 %v1267_v51  ;;  %v6935_v10 = vpack.c.bf16 %v1116_v8, %v1112_v2  ;;  %2112 = vmatprep.subr.bf16.mxu0 %v5978_v0  ;;  %v5984_v8 = vld [vmem:[#allocation5 + $0x54] ss:$20 sps:$4 sm:$0xff]  }
 0x217   : > { %v1007_v54 = vpop.f32.mrb[20].mxu0 }
 0x218   : > { %v1009_v56 = vpop.f32.mrb[21].mxu0 }
 0x219   : > { %v1011_v59 = vpop.f32.mrb[22].mxu0 }
 0x21a   : > { %v6931_v61 = vpack.c.bf16 %v1011_v59, %v1007_v54  ;;  %v1013_v62 = vpop.f32.mrb[23].mxu0  ;;  %v1120_v15 = vpop.f32.mrb[20].mxu1 }
 0x21b   : > { %v1272_v63 = vpack.c.bf16 %v1013_v62, %v1009_v56  ;;  %v1122_v16 = vpop.f32.mrb[21].mxu1 }
 0x21c   : > { %v1124_v18 = vpop.f32.mrb[22].mxu1 }
 0x21d   : > { %5389 = vmatprep.subr.bf16.mxu1 %v1272_v63  ;;  %v6939_v20 = vpack.c.bf16 %v1124_v18, %v1120_v15  ;;  %v1126_v22 = vpop.f32.mrb[23].mxu1  ;;  %v5987_v15 = vld [vmem:[#allocation5 + $0x7c] ss:$20 sps:$4 sm:$0xff]  }
 0x21e   : > { %5390 = vmatpush3.bf16.msra.mxu1 %v1272_v63  ;;  %v6941_v26 = vpack.c.bf16 %v1126_v22, %v1122_v16  ;;  %v5976_v63 = vld [vmem:[#allocation5] ss:$20 sps:$4 sm:$0xff]  }
 0x21f   : > { %v1017_v3 = vpop.f32.mrb[24].mxu0  ;;  %2113 = vmatpush1.bf16.msra.mxu0 %v5976_v63 }
 0x220   : > { %v1019_v5 = vpop.f32.mrb[25].mxu0 }
 0x221   : > { %v1021_v9 = vpop.f32.mrb[26].mxu0 }
 0x222   : > { %v6937_v11 = vpack.c.bf16 %v1021_v9, %v1017_v3  ;;  %v1023_v12 = vpop.f32.mrb[27].mxu0  ;;  %v1130_v31 = vpop.f32.mrb[24].mxu1  ;;  %v5981_v3 = vld [vmem:[#allocation5 + $0x2c] ss:$20 sps:$4 sm:$0xff]  }
 0x223   : > { %v1277_v14 = vpack.c.bf16 %v1023_v12, %v1019_v5  ;;  %v1132_v34 = vpop.f32.mrb[25].mxu1  ;;  %v5979_v5 = vld [vmem:[#allocation5 + $0x28] ss:$20 sps:$4 sm:$0xff]   ;;  %2114 = vmatprep.subr.bf16.mxu0 %v5981_v3  ;;  %v5982_v12 = vld [vmem:[#allocation5 + $0x50] ss:$20 sps:$4 sm:$0xff]  }
 0x224   : > { %v1134_v35 = vpop.f32.mrb[26].mxu1  ;;  %2115 = vmatpush1.bf16.msra.mxu0 %v5979_v5 }
 0x225   : > { %5391 = vmatprep.subr.bf16.mxu1 %v1277_v14  ;;  %v6946_v39 = vpack.c.bf16 %v1134_v35, %v1130_v31  ;;  %v1136_v40 = vpop.f32.mrb[27].mxu1  ;;  %2116 = vmatprep.subr.bf16.mxu0 %v5984_v8  ;;  %v5996_v35 = vld [vmem:[#allocation5 + $0xf4] ss:$20 sps:$4 sm:$0xff]  }
 0x226   : > { %5392 = vmatpush3.bf16.msra.mxu1 %v1277_v14  ;;  %v6948_v42 = vpack.c.bf16 %v1136_v40, %v1132_v34  ;;  %v5964_v34 = vld [vmem:[#allocation11 + $0x40] sm:$0xff]   ;;  %v5997_v40 = vld [vmem:[#allocation5 + $0x118] ss:$20 sps:$4 sm:$0xff]  }
 0x227   : > { %v1027_v17 = vpop.f32.mrb[28].mxu0 }
 0x228   : > { %v1029_v19 = vpop.f32.mrb[29].mxu0  ;;  %2117 = vmatpush1.bf16.msra.mxu0 %v5982_v12 }
 0x229   : > { %v1031_v23 = vpop.f32.mrb[30].mxu0  ;;  %2118 = vmatprep.subr.bf16.mxu0 %v5987_v15 }
 0x22a   : > { %v6943_v27 = vpack.c.bf16 %v1031_v23, %v1027_v17  ;;  %v1033_v28 = vpop.f32.mrb[31].mxu0  ;;  %v1140_v51 = vpop.f32.mrb[28].mxu1 }
 0x22b   : > { %v1282_v29 = vpack.c.bf16 %v1033_v28, %v1029_v19  ;;  %v1142_v53 = vpop.f32.mrb[29].mxu1  ;;  %v5990_v19 = vld [vmem:[#allocation5 + $0xa4] ss:$20 sps:$4 sm:$0xff]   ;;  %v5988_v28 = vld [vmem:[#allocation5 + $0xa0] ss:$20 sps:$4 sm:$0xff]  }
 0x22c   : > { %v1144_v54 = vpop.f32.mrb[30].mxu1 }
 0x22d   : > { %5393 = vmatprep.subr.bf16.mxu1 %v1282_v29  ;;  %v6958_v56 = vpack.c.bf16 %v1144_v54, %v1140_v51 }
 0x22e   : > { %5394 = vmatpush3.bf16.msra.mxu1 %v1282_v29 }
 0x22f   : > { %5403 = vmatprep.subr.bf16.mxu1 %v6905_v7  ;;  %v5365_v38 = vpop.f32.mrb[32].mxu0 }
 0x230   : > { %v1183_v41 = vpop.f32.mrb[33].mxu0 }
 0x231   : > { %5396 = vmatmul.mubr.bf16.vlgmr.msra.gmra.mrb[32].mxu1 %v5957_v30  ;;  %v5366_v43 = vpop.f32.mrb[34].mxu0 }
 0x232   : > { %5404 = vmatpush3.bf16.msra.mxu1 %v6905_v7  ;;  %5399 = vmatprep.mubr.bf16.mxu1 %v5958_v32  ;;  %v6951_v44 = vpack.c.bf16 %v5366_v43, %v5365_v38  ;;  %v1186_v46 = vpop.f32.mrb[35].mxu0  ;;  %v1146_v7 = vpop.f32.mrb[31].mxu1  ;;  %v5961_v32 = vld [vmem:[#allocation11 + $0x8] sm:$0xff]   ;;  %v5994_v38 = vld [vmem:[#allocation5 + $0xf0] ss:$20 sps:$4 sm:$0xff]  }
 0x233   : > { %5405 = vmatprep.subr.bf16.mxu1 %v6907_v13  ;;  %v6954_v47 = vpack.c.bf16 %v1186_v46, %v1183_v41  ;;  %v6960_v59 = vpack.c.bf16 %v1146_v7, %v1142_v53  ;;  %v6002_v41 = vld [vmem:[#allocation5 + $0xc] ss:$20 sps:$4 sm:$0xff]   ;;  %v4945_v46 = vld [vmem:[#allocation16] ss:$0 sm:$0xff] }
 0x234   : > { %v1799_v43 = vld [vmem:[%s7038_s24] sm:$0xff] }
 0x236   : > { %5406 = vmatpush3.bf16.msra.mxu1 %v6907_v13 }
 0x237   : > { %5407 = vmatprep.subr.bf16.mxu1 %v6913_v25  ;;  %v5369_v55 = vpop.f32.mrb[36].mxu0 }
 0x238   : > { %v1199_v58 = vpop.f32.mrb[37].mxu0 }
 0x239   : > { %5400 = vmatmul.mubr.bf16.gmra.mrb[36].mxu1 %v5959_v50  ;;  %v5370_v62 = vpop.f32.mrb[38].mxu0 }
 0x23a   : > { %5408 = vmatpush3.bf16.msra.mxu1 %v6913_v25  ;;  %5419 = vmatprep.mubr.bf16.mxu1 %v5960_v52  ;;  %v6963_v13 = vpack.c.bf16 %v5370_v62, %v5369_v55  ;;  %v1202_v2 = vpop.f32.mrb[39].mxu0  ;;  %v1800_v52 = vld [vmem:[%s7038_s24 + $0x8] sm:$0xff] }
 0x23b   : > { %5409 = vmatprep.subr.bf16.mxu1 %v6919_v37  ;;  %v6966_v4 = vpack.c.bf16 %v1202_v2, %v1199_v58  ;;  %v1805_v2 = vld [vmem:[%s7038_s24 + $0x30] sm:$0xff] }
 0x23e   : > { %5410 = vmatpush3.bf16.msra.mxu1 %v6919_v37  ;;  %v5985_v37 = vld [vmem:[#allocation5 + $0x78] ss:$20 sps:$4 sm:$0xff]  }
 0x23f   : > { %5411 = vmatprep.subr.bf16.mxu1 %v6925_v49  ;;  %v5373_v9 = vpop.f32.mrb[40].mxu0  ;;  %2119 = vmatpush1.bf16.msra.mxu0 %v5985_v37 }
 0x240   : > { %v1215_v25 = vpop.f32.mrb[41].mxu0  ;;  %2120 = vmatprep.subr.bf16.mxu0 %v5990_v19 }
 0x241   : > { %v5374_v14 = vpop.f32.mrb[42].mxu0 }
 0x242   : > { %5412 = vmatpush3.bf16.msra.mxu1 %v6925_v49  ;;  %v6971_v16 = vpack.c.bf16 %v5374_v14, %v5373_v9  ;;  %v1218_v17 = vpop.f32.mrb[43].mxu0  ;;  %v1806_v9 = vld [vmem:[%s7038_s24 + $0x38] sm:$0xff]  ;;  %v1804_v14 = vld [vmem:[%s7038_s24 + $0x28] sm:$0xff] }
 0x243   : > { %5413 = vmatprep.subr.bf16.mxu1 %v6931_v61  ;;  %v6974_v18 = vpack.c.bf16 %v1218_v17, %v1215_v25  ;;  %2121 = vmatpush1.bf16.msra.mxu0 %v5988_v28 }
 0x246   : > { %5414 = vmatpush3.bf16.msra.mxu1 %v6931_v61  ;;  %v5962_v61 = vld [vmem:[#allocation11 + $0x10] sm:$0xff]  }
 0x247   : > { %5415 = vmatprep.subr.bf16.mxu1 %v6937_v11  ;;  %v5377_v22 = vpop.f32.mrb[44].mxu0 }
 0x248   : > { %v1231_v23 = vpop.f32.mrb[45].mxu0 }
 0x249   : > { %v5378_v49 = vpop.f32.mrb[46].mxu0 }
 0x24a   : > { %5416 = vmatpush3.bf16.msra.mxu1 %v6937_v11  ;;  %v6979_v29 = vpack.c.bf16 %v5378_v49, %v5377_v22  ;;  %v1234_v30 = vpop.f32.mrb[47].mxu0  ;;  %v5963_v11 = vld [vmem:[#allocation11 + $0x18] sm:$0xff]  }
 0x24b   : > { %5417 = vmatprep.subr.bf16.mxu1 %v6943_v27  ;;  %v6982_v31 = vpack.c.bf16 %v1234_v30, %v1231_v23  ;;  %v6000_v22 = vld [vmem:[#allocation5 + $0x8] ss:$20 sps:$4 sm:$0xff]  }
 0x24e   : > { %5418 = vmatpush3.bf16.msra.mxu1 %v6943_v27  ;;  %v5991_v27 = vld [vmem:[#allocation5 + $0xc8] ss:$20 sps:$4 sm:$0xff]  }
 0x24f   : > { %5427 = vmatprep.subr.bf16.mxu1 %v6909_v21 }
 0x251   : > { %5420 = vmatmul.mubr.bf16.vlgmr.msra.gmra.mrb[32].mxu1 %v5961_v32 }
 0x252   : > { %5428 = vmatpush3.bf16.msra.mxu1 %v6909_v21  ;;  %5423 = vmatprep.mubr.bf16.mxu1 %v5962_v61  ;;  %v5965_v21 = vld [vmem:[#allocation11 + $0x48] sm:$0xff]  }
 0x253   : > { %5429 = vmatprep.subr.bf16.mxu1 %v6915_v33 }
 0x256   : > { %5430 = vmatpush3.bf16.msra.mxu1 %v6915_v33  ;;  %v5966_v33 = vld [vmem:[#allocation11 + $0x50] sm:$0xff]  }
 0x257   : > { %5431 = vmatprep.subr.bf16.mxu1 %v6921_v45 }
 0x259   : > { %5424 = vmatmul.mubr.bf16.gmra.mrb[36].mxu1 %v5963_v11 }
 0x25a   : > { %5432 = vmatpush3.bf16.msra.mxu1 %v6921_v45  ;;  %5443 = vmatprep.mubr.bf16.mxu1 %v5964_v34  ;;  %v5967_v45 = vld [vmem:[#allocation11 + $0x58] sm:$0xff]  }
 0x25b   : > { %5433 = vmatprep.subr.bf16.mxu1 %v6927_v57 }
 0x25e   : > { %5434 = vmatpush3.bf16.msra.mxu1 %v6927_v57  ;;  %v5968_v57 = vld [vmem:[#allocation11 + $0x60] sm:$0xff]  }
 0x25f   : > { %5435 = vmatprep.subr.bf16.mxu1 %v6933_v6 }
 0x262   : > { %5436 = vmatpush3.bf16.msra.mxu1 %v6933_v6  ;;  %v5973_v6 = vld [vmem:[#allocation11 + $0x88] sm:$0xff]  }
 0x263   : > { %5437 = vmatprep.subr.bf16.mxu1 %v6939_v20 }
 0x266   : > { %5438 = vmatpush3.bf16.msra.mxu1 %v6939_v20  ;;  %v5975_v20 = vld [vmem:[#allocation11 + $0x98] sm:$0xff]  }
 0x267   : > { %5439 = vmatprep.subr.bf16.mxu1 %v6946_v39 }
 0x26a   : > { %5440 = vmatpush3.bf16.msra.mxu1 %v6946_v39  ;;  %v5999_v39 = vld [vmem:[#allocation5 + $0x11c] ss:$20 sps:$4 sm:$0xff]  }
 0x26b   : > { %5441 = vmatprep.subr.bf16.mxu1 %v6958_v56 }
 0x26e   : > { %5442 = vmatpush3.bf16.msra.mxu1 %v6958_v56 }
 0x26f   : > { %5451 = vmatprep.subr.bf16.mxu1 %v6911_v24 }
 0x271   : > { %5444 = vmatmul.mubr.bf16.vlgmr.msra.gmra.mrb[32].mxu1 %v5965_v21 }
 0x272   : > { %5452 = vmatpush3.bf16.msra.mxu1 %v6911_v24  ;;  %5447 = vmatprep.mubr.bf16.mxu1 %v5966_v33  ;;  %v5969_v24 = vld [vmem:[#allocation11 + $0x68] sm:$0xff]  }
 0x273   : > { %5453 = vmatprep.subr.bf16.mxu1 %v6917_v36 }
 0x276   : > { %5454 = vmatpush3.bf16.msra.mxu1 %v6917_v36  ;;  %v5970_v36 = vld [vmem:[#allocation11 + $0x70] sm:$0xff]  }
 0x277   : > { %5455 = vmatprep.subr.bf16.mxu1 %v6923_v48 }
 0x279   : > { %5448 = vmatmul.mubr.bf16.gmra.mrb[36].mxu1 %v5967_v45  ;;  %v6003_v45 = vld [vmem:[#allocation5 + $0x30] ss:$20 sps:$4 sm:$0xff]  }
 0x27a   : > { %5456 = vmatpush3.bf16.msra.mxu1 %v6923_v48  ;;  %5467 = vmatprep.mubr.bf16.mxu1 %v5968_v57  ;;  %v5971_v48 = vld [vmem:[#allocation11 + $0x78] sm:$0xff]  }
 0x27b   : > { %5457 = vmatprep.subr.bf16.mxu1 %v6929_v60 }
 0x27e   : > { %5458 = vmatpush3.bf16.msra.mxu1 %v6929_v60  ;;  %v5972_v60 = vld [vmem:[#allocation11 + $0x80] sm:$0xff]  }
 0x27f   : > { %5459 = vmatprep.subr.bf16.mxu1 %v6935_v10 }
 0x282   : > { %5460 = vmatpush3.bf16.msra.mxu1 %v6935_v10  ;;  %v5974_v10 = vld [vmem:[#allocation11 + $0x90] sm:$0xff]  }
 0x283   : > { %5461 = vmatprep.subr.bf16.mxu1 %v6941_v26 }
 0x286   : > { %5462 = vmatpush3.bf16.msra.mxu1 %v6941_v26  ;;  %v5993_v26 = vld [vmem:[#allocation5 + $0xcc] ss:$20 sps:$4 sm:$0xff]  }
 0x287   : > { %5463 = vmatprep.subr.bf16.mxu1 %v6948_v42  ;;  %2122 = vmatprep.subr.bf16.mxu0 %v5993_v26 }
 0x288   : > { %2123 = vmatpush1.bf16.msra.mxu0 %v5991_v27  ;;  %v6011_v27 = vld [vmem:[#allocation5 + $0x84] ss:$20 sps:$4 sm:$0xff]  }
 0x289   : > { %2124 = vmatprep.subr.bf16.mxu0 %v5996_v35 }
 0x28a   : > { %5464 = vmatpush3.bf16.msra.mxu1 %v6948_v42  ;;  %v1801_v42 = vld [vmem:[%s7038_s24 + $0x10] sm:$0xff] }
 0x28b   : > { %5465 = vmatprep.subr.bf16.mxu1 %v6960_v59 }
 0x28c   : > { %2125 = vmatpush1.bf16.msra.mxu0 %v5994_v38  ;;  %v6009_v38 = vld [vmem:[#allocation5 + $0x80] ss:$20 sps:$4 sm:$0xff]  }
 0x28d   : > { %2126 = vmatprep.subr.bf16.mxu0 %v5999_v39  ;;  %v6014_v39 = vld [vmem:[#allocation5 + $0xac] ss:$20 sps:$4 sm:$0xff]  }
 0x28e   : > { %5466 = vmatpush3.bf16.msra.mxu1 %v6960_v59 }
 0x28f   : > { %5475 = vmatprep.subr.bf16.mxu1 %v6954_v47 }
 0x290   : > { %2127 = vmatpush1.bf16.msra.mxu0 %v5997_v40  ;;  %v6012_v40 = vld [vmem:[#allocation5 + $0xa8] ss:$20 sps:$4 sm:$0xff]  }
 0x291   : > { %5468 = vmatmul.mubr.bf16.vlgmr.msra.gmra.mrb[32].mxu1 %v5969_v24  ;;  %2185 = vmatprep.subr.bf16.mxu0 %v6002_v41  ;;  %v6008_v24 = vld [vmem:[#allocation5 + $0x5c] ss:$20 sps:$4 sm:$0xff]   ;;  %v6017_v41 = vld [vmem:[#allocation5 + $0xd4] ss:$20 sps:$4 sm:$0xff]  }
 0x292   : > { %5476 = vmatpush3.bf16.msra.mxu1 %v6954_v47  ;;  %5471 = vmatprep.mubr.bf16.mxu1 %v5970_v36  ;;  %v1802_v47 = vld [vmem:[%s7038_s24 + $0x18] sm:$0xff] }
 0x293   : > { %5477 = vmatprep.subr.bf16.mxu1 %v6951_v44 }
 0x296   : > { %5478 = vmatpush3.bf16.msra.mxu1 %v6951_v44 }
 0x297   : > { %5479 = vmatprep.subr.bf16.mxu1 %v6966_v4 }
 0x299   : > { %5472 = vmatmul.mubr.bf16.gmra.mrb[36].mxu1 %v5971_v48 }
 0x29a   : > { %5480 = vmatpush3.bf16.msra.mxu1 %v6966_v4  ;;  %5491 = vmatprep.mubr.bf16.mxu1 %v5972_v60  ;;  %v1803_v4 = vld [vmem:[%s7038_s24 + $0x20] sm:$0xff] }
 0x29b   : > { %5481 = vmatprep.subr.bf16.mxu1 %v6963_v13 }
 0x29e   : > { %5482 = vmatpush3.bf16.msra.mxu1 %v6963_v13 }
 0x29f   : > { %5483 = vmatprep.subr.bf16.mxu1 %v6974_v18 }
 0x2a2   : > { %5484 = vmatpush3.bf16.msra.mxu1 %v6974_v18 }
 0x2a3   : > { %5485 = vmatprep.subr.bf16.mxu1 %v6971_v16 }
 0x2a6   : > { %5486 = vmatpush3.bf16.msra.mxu1 %v6971_v16 }
 0x2a7   : > { %5487 = vmatprep.subr.bf16.mxu1 %v6982_v31 }
 0x2aa   : > { %5488 = vmatpush3.bf16.msra.mxu1 %v6982_v31  ;;  %v6005_v31 = vld [vmem:[#allocation5 + $0x34] ss:$20 sps:$4 sm:$0xff]  }
 0x2ab   : > { %5489 = vmatprep.subr.bf16.mxu1 %v6979_v29 }
 0x2ae   : > { %5490 = vmatpush3.bf16.msra.mxu1 %v6979_v29 }
 0x2b1   : > { %5492 = vmatmul.mubr.bf16.vlgmr.msra.gmra.mrb[32].mxu1 %v5973_v6  ;;  %v6006_v6 = vld [vmem:[#allocation5 + $0x58] ss:$20 sps:$4 sm:$0xff]  }
 0x2b2   : > { %5495 = vmatprep.mubr.bf16.mxu1 %v5974_v10 }
 0x2b9   : > { %5496 = vmatmul.mubr.bf16.gmra.mrb[36].mxu1 %v5975_v20 }
 0x2ba   : > { %3016 = vmatprep.mubr.bf16.mxu1 %v6510_v1 }
 0x384   : > { %v5493_v44 = vpop.f32.mrb[32].mxu1 }
 0x385   : > { %v1809_v50 = vadd.f32 %v5493_v44, %v1801_v42  ;;  %v1760_v51 = vpop.f32.mrb[33].mxu1  ;;  %v6015_v42 = vld [vmem:[#allocation5 + $0xd0] ss:$20 sps:$4 sm:$0xff]   ;;  %v6018_v44 = vld [vmem:[#allocation5 + $0xf8] ss:$20 sps:$4 sm:$0xff]  }
 0x386   : > { %v1807_v53 = vadd.f32 %v1799_v43, %v1760_v51  ;;  %v5494_v54 = vpop.f32.mrb[34].mxu1  ;;  %v6020_v43 = vld [vmem:[#allocation5 + $0xfc] ss:$20 sps:$4 sm:$0xff]   ;;  %v6025_v51 = vld [vmem:[#allocation5 + $0x38] ss:$20 sps:$4 sm:$0xff]  }
 0x387   : > { %v1822_v55 = vadd.f32 %v4945_v46, %v1809_v50  ;;  %v1810_v56 = vadd.f32 %v5494_v54, %v1802_v47  ;;  %v1763_v7 = vpop.f32.mrb[35].mxu1  ;;  %v6021_v47 = vld [vmem:[#allocation5 + $0x120] ss:$20 sps:$4 sm:$0xff]   ;;  %v6024_v50 = vld [vmem:[#allocation5 + $0x10] ss:$20 sps:$4 sm:$0xff]  }
 0x388   : > { %v1820_v58 = vadd.f32 %v4945_v46, %v1807_v53  ;;  %v1808_v59 = vadd.f32 %v1800_v52, %v1763_v7  ;;  %v6026_v52 = vld [vmem:[#allocation5 + $0x60] ss:$20 sps:$4 sm:$0xff]   ;;  %v6027_v53 = vld [vmem:[#allocation5 + $0x88] ss:$20 sps:$4 sm:$0xff]   ;;  %v6028_v54 = vld [vmem:[#allocation5 + $0xb0] ss:$20 sps:$4 sm:$0xff]  }
 0x389   : > { %v1838_v62 = vmul.f32 0.2, %v1822_v55  ;;  %v1823_v63 = vadd.f32 %v4945_v46, %v1810_v56  ;;  %vm1830_vm0 = vcmp.ge.f32.partialorder %v1822_v55, 0.0  ;;  %v6030_v56 = vld [vmem:[#allocation5 + $0x100] ss:$20 sps:$4 sm:$0xff]  }
 0x38a   : > { %v1836_v0 = vmul.f32 0.2, %v1820_v58  ;;  %v1821_v13 = vadd.f32 %v4945_v46, %v1808_v59  ;;  %vm1828_vm1 = vcmp.ge.f32.partialorder %v1820_v58, 0.0  ;;  %v6031_v7 = vld [vmem:[#allocation5 + $0x128] ss:$20 sps:$4 sm:$0xff]  }
 0x38b   : > { %vm1831_vm2 = vcmp.ge.f32.partialorder %v1823_v63, 0.0  ;;  %v1839_v3 = vmul.f32 0.2, %v1823_v63  ;;  %v1846_v15 = vsel %vm1830_vm0, %v1822_v55, %v1838_v62  ;;  %v6029_v55 = vld [vmem:[#allocation5 + $0xd8] ss:$20 sps:$4 sm:$0xff]  }
 0x38c   : > { %vm1829_vm3 = vcmp.ge.f32.partialorder %v1821_v13, 0.0  ;;  %v1837_v5 = vmul.f32 0.2, %v1821_v13  ;;  %v5497_v8 = vpop.f32.mrb[36].mxu1  ;;  %v1844_v17 = vsel %vm1828_vm1, %v1820_v58, %v1836_v0  ;;  %v6032_v58 = vld [vmem:[#allocation13 + $0x10] sm:$0xff]   ;;  %vm3820_vm1 = vcmask 130048  }
 0x38d   : > { %v1813_v25 = vadd.f32 %v5497_v8, %v1805_v2  ;;  %v1776_v12 = vpop.f32.mrb[37].mxu1  ;;  %v1847_v16 = vsel %vm1831_vm2, %v1823_v63, %v1839_v3  ;;  %v6042_v59 = vld [vmem:[#allocation7] ss:$20 sps:$4 sm:$0xff]   ;;  %v6044_v62 = vld [vmem:[#allocation7 + $0x4] ss:$20 sps:$4 sm:$0xff]  }
 0x38e   : > { %v1845_v18 = vsel %vm1829_vm3, %v1821_v13, %v1837_v5  ;;  %v1811_v37 = vadd.f32 %v1803_v4, %v1776_v12  ;;  %v5498_v19 = vpop.f32.mrb[38].mxu1  ;;  %v7048_v23 = vpack.c.bf16 %v1847_v16, %v1846_v15  ;;  %v6048_v63 = vld [vmem:[#allocation7 + $0x2c] ss:$20 sps:$4 sm:$0xff]   ;;  %2984 = vmatprep.subr.bf16.mxu1 %v6044_v62  ;;  %v6046_v0 = vld [vmem:[#allocation7 + $0x28] ss:$20 sps:$4 sm:$0xff]   ;;  %vm4445_vm3 = vcmask 1043456  }
 0x38f   : > { %v7050_v28 = vpack.c.bf16 %v1845_v18, %v1844_v17  ;;  %v1826_v49 = vadd.f32 %v4945_v46, %v1813_v25  ;;  %v1814_v29 = vadd.f32 %v5498_v19, %v1806_v9  ;;  %v1779_v30 = vpop.f32.mrb[39].mxu1  ;;  %2985 = vmatpush1.bf16.msra.mxu1 %v6042_v59  ;;  %v6052_v13 = vld [vmem:[#allocation7 + $0x54] ss:$20 sps:$4 sm:$0xff]   ;;  %v6050_v2 = vld [vmem:[#allocation7 + $0x50] ss:$20 sps:$4 sm:$0xff]  }
 0x390   : > { %v1824_v32 = vadd.f32 %v4945_v46, %v1811_v37  ;;  %v1812_v61 = vadd.f32 %v1804_v14, %v1779_v30  ;;  %2986 = vmatprep.subr.bf16.mxu1 %v6048_v63  ;;  %v6056_v3 = vld [vmem:[#allocation7 + $0x7c] ss:$20 sps:$4 sm:$0xff]   ;;  %v6054_v4 = vld [vmem:[#allocation7 + $0x78] ss:$20 sps:$4 sm:$0xff]   ;;  %v6058_v8 = vld [vmem:[#allocation7 + $0xa0] ss:$20 sps:$4 sm:$0xff]  }
 0x391   : > { %v1842_v11 = vmul.f32 0.2, %v1826_v49  ;;  %v1827_v34 = vadd.f32 %v4945_v46, %v1814_v29  ;;  %2145 = vmatmul.mubr.bf16.vlgmr.msra.gmra.mrb[48].mxu0 %v7050_v28  ;;  %vm1834_vm4 = vcmp.ge.f32.partialorder %v1826_v49, 0.0  ;;  %v6060_v5 = vld [vmem:[#allocation7 + $0xa4] ss:$20 sps:$4 sm:$0xff]   ;;  %v6037_v62 = vld [vmem:[#allocation13 + $0x28] sm:$0xff]  }
 0x392   : > { %v1840_v21 = vmul.f32 0.2, %v1824_v32  ;;  %v1825_v33 = vadd.f32 %v4945_v46, %v1812_v61  ;;  %2186 = vmatpush1.bf16.msra.mxu0 %v6000_v22  ;;  %2154 = vmatprep.mubr.bf16.mxu0 %v6510_v1  ;;  %vm1832_vm5 = vcmp.ge.f32.partialorder %v1824_v32, 0.0  ;;  %v6023_v46 = vld [vmem:[#allocation5 + $0x124] ss:$20 sps:$4 sm:$0xff]   ;;  %v6038_v63 = vld [vmem:[#allocation13 + $0x30] sm:$0xff]  }
 0x393   : > { %vm1835_vm6 = vcmp.ge.f32.partialorder %v1827_v34, 0.0  ;;  %v1843_v57 = vmul.f32 0.2, %v1827_v34  ;;  %2187 = vmatprep.subr.bf16.mxu0 %v6005_v31  ;;  %v1850_v48 = vsel %vm1834_vm4, %v1826_v49, %v1842_v11  ;;  %2987 = vmatpush1.bf16.msra.mxu1 %v6046_v0  ;;  %v6064_v9 = vld [vmem:[#allocation7 + $0xcc] ss:$20 sps:$4 sm:$0xff]   ;;  %vm4441_vm4 = vcmask 64512  }
 0x394   : > { %vm1833_vm7 = vcmp.ge.f32.partialorder %v1825_v33, 0.0  ;;  %v1841_v36 = vmul.f32 0.2, %v1825_v33  ;;  %v1848_v10 = vsel %vm1832_vm5, %v1824_v32, %v1840_v21  ;;  %2988 = vmatprep.subr.bf16.mxu1 %v6052_v13  ;;  %v6062_v25 = vld [vmem:[#allocation7 + $0xc8] ss:$20 sps:$4 sm:$0xff]  }
 0x395   : > { %v1851_v60 = vsel %vm1835_vm6, %v1827_v34, %v1843_v57 }
 0x396   : > { %2188 = vmatpush1.bf16.msra.mxu0 %v6003_v45  ;;  %v1849_v20 = vsel %vm1833_vm7, %v1825_v33, %v1841_v36  ;;  %v7054_v26 = vpack.c.bf16 %v1851_v60, %v1850_v48  ;;  %v6033_v36 = vld [vmem:[#allocation13 + $0x18] sm:$0xff]   ;;  %v6034_v48 = vld [vmem:[#allocation13] sm:$0xff]  }
 0x397   : > { %2189 = vmatprep.subr.bf16.mxu0 %v6008_v24  ;;  %v1854_v35 = vpack.c.bf16 %v1849_v20, %v1848_v10  ;;  %2989 = vmatpush1.bf16.msra.mxu1 %v6050_v2 }
 0x398   : > { %2990 = vmatprep.subr.bf16.mxu1 %v6056_v3 }
 0x399   : > { %2155 = vmatmul.mubr.bf16.gmra.mrb[52].mxu0 %v7048_v23 }
 0x39a   : > { %2190 = vmatpush1.bf16.msra.mxu0 %v6006_v6  ;;  %2164 = vmatprep.mubr.bf16.mxu0 %v6510_v1 }
 0x39b   : > { %2191 = vmatprep.subr.bf16.mxu0 %v6011_v27  ;;  %2991 = vmatpush1.bf16.msra.mxu1 %v6054_v4 }
 0x39c   : > { %2992 = vmatprep.subr.bf16.mxu1 %v6060_v5 }
 0x39e   : > { %2192 = vmatpush1.bf16.msra.mxu0 %v6009_v38 }
 0x39f   : > { %2193 = vmatprep.subr.bf16.mxu0 %v6014_v39  ;;  %2993 = vmatpush1.bf16.msra.mxu1 %v6058_v8 }
 0x3a0   : > { %2994 = vmatprep.subr.bf16.mxu1 %v6064_v9 }
 0x3a1   : > { %2165 = vmatmul.mubr.bf16.gmra.mrb[56].mxu0 %v1854_v35 }
 0x3a2   : > { %2194 = vmatpush1.bf16.msra.mxu0 %v6012_v40  ;;  %2174 = vmatprep.mubr.bf16.mxu0 %v6510_v1 }
 0x3a3   : > { %2195 = vmatprep.subr.bf16.mxu0 %v6017_v41  ;;  %2995 = vmatpush1.bf16.msra.mxu1 %v6062_v25 }
 0x3a6   : > { %2196 = vmatpush1.bf16.msra.mxu0 %v6015_v42 }
 0x3a7   : > { %2197 = vmatprep.subr.bf16.mxu0 %v6020_v43  ;;  %v6035_v43 = vld [vmem:[#allocation13 + $0x8] sm:$0xff]  }
 0x3a9   : > { %2175 = vmatmul.mubr.bf16.gmra.mrb[60].mxu0 %v7054_v26 }
 0x3aa   : > { %2198 = vmatpush1.bf16.msra.mxu0 %v6018_v44  ;;  %2217 = vmatprep.mubr.bf16.mxu0 %v6510_v1  ;;  %v6036_v44 = vld [vmem:[#allocation13 + $0x20] sm:$0xff]  }
 0x3ab   : > { %2199 = vmatprep.subr.bf16.mxu0 %v6023_v46 }
 0x3ae   : > { %2200 = vmatpush1.bf16.msra.mxu0 %v6021_v47 }
 0x3af   : > { %5499 = vmatprep.subr.bf16.mxu0 %v6024_v50 }
 0x3b1   : > { %2218 = vmatmul.mubr.bf16.vlgmr.msra.gmra.mrb[64].mxu0 %v7050_v28 }
 0x3b2   : > { %5500 = vmatpush3.bf16.msra.mxu0 %v6024_v50  ;;  %2227 = vmatprep.mubr.bf16.mxu0 %v6510_v1 }
 0x3b3   : > { %5501 = vmatprep.subr.bf16.mxu0 %v6025_v51 }
 0x3b6   : > { %5502 = vmatpush3.bf16.msra.mxu0 %v6025_v51 }
 0x3b7   : > { %5503 = vmatprep.subr.bf16.mxu0 %v6026_v52 }
 0x3b9   : > { %2228 = vmatmul.mubr.bf16.gmra.mrb[68].mxu0 %v7048_v23 }
 0x3ba   : > { %5504 = vmatpush3.bf16.msra.mxu0 %v6026_v52  ;;  %2237 = vmatprep.mubr.bf16.mxu0 %v6510_v1 }
 0x3bb   : > { %5505 = vmatprep.subr.bf16.mxu0 %v6027_v53 }
 0x3be   : > { %5506 = vmatpush3.bf16.msra.mxu0 %v6027_v53 }
 0x3bf   : > { %5507 = vmatprep.subr.bf16.mxu0 %v6028_v54 }
 0x3c1   : > { %2238 = vmatmul.mubr.bf16.gmra.mrb[72].mxu0 %v1854_v35 }
 0x3c2   : > { %5508 = vmatpush3.bf16.msra.mxu0 %v6028_v54  ;;  %2247 = vmatprep.mubr.bf16.mxu0 %v6510_v1 }
 0x3c3   : > { %5509 = vmatprep.subr.bf16.mxu0 %v6029_v55 }
 0x3c6   : > { %5510 = vmatpush3.bf16.msra.mxu0 %v6029_v55 }
 0x3c7   : > { %5511 = vmatprep.subr.bf16.mxu0 %v6030_v56 }
 0x3c9   : > { %2248 = vmatmul.mubr.bf16.gmra.mrb[76].mxu0 %v7054_v26 }
 0x3ca   : > { %5512 = vmatpush3.bf16.msra.mxu0 %v6030_v56  ;;  %5515 = vmatprep.mubr.bf16.mxu0 %v7050_v28 }
 0x3cb   : > { %5513 = vmatprep.subr.bf16.mxu0 %v6031_v7 }
 0x3ce   : > { %5514 = vmatpush3.bf16.msra.mxu0 %v6031_v7 }
 0x3d1   : > { %5516 = vmatmul.mubr.bf16.vlgmr.msra.gmra.mrb[80].mxu0 %v7048_v23 }
 0x3d2   : > { %5519 = vmatprep.mubr.bf16.mxu0 %v1854_v35 }
 0x3d9   : > { %5520 = vmatmul.mubr.bf16.gmra.mrb[84].mxu0 %v7054_v26 }
 0x3da   : > { %5531 = vmatprep.mubr.msk.bf16.mxu0 %vm2362_vm8, %v6032_v58 }
 0x464   : > { %v2146_v12 = vpop.f32.mrb[48].mxu0 }
 0x465   : > { %v2148_v14 = vpop.f32.mrb[49].mxu0 }
 0x466   : > { %v2150_v15 = vpop.f32.mrb[50].mxu0 }
 0x467   : > { %v2323_v16 = vpack.c.bf16 %v2150_v15, %v2146_v12  ;;  %v2152_v17 = vpop.f32.mrb[51].mxu0 }
 0x468   : > { %v2324_v18 = vpack.c.bf16 %v2152_v17, %v2148_v14  ;;  %v6040_v17 = vld [vmem:[#allocation13 + $0x40] sm:$0xff]  }
 0x46a   : > { %5523 = vmatprep.subr.bf16.mxu0 %v2324_v18 }
 0x46b   : > { %5524 = vmatpush3.bf16.msra.mxu0 %v2324_v18  ;;  %v6045_v18 = vld [vmem:[#allocation7 + $0x10] ss:$20 sps:$4 sm:$0xff]  }
 0x46c   : > { %v2156_v37 = vpop.f32.mrb[52].mxu0 }
 0x46d   : > { %v2158_v19 = vpop.f32.mrb[53].mxu0 }
 0x46e   : > { %v2160_v22 = vpop.f32.mrb[54].mxu0 }
 0x46f   : > { %v2328_v23 = vpack.c.bf16 %v2160_v22, %v2156_v37  ;;  %v2162_v28 = vpop.f32.mrb[55].mxu0  ;;  %v6041_v37 = vld [vmem:[#allocation13 + $0x48] sm:$0xff]   ;;  %v6053_v22 = vld [vmem:[#allocation7 + $0x60] ss:$20 sps:$4 sm:$0xff]  }
 0x470   : > { %v2329_v49 = vpack.c.bf16 %v2162_v28, %v2158_v19  ;;  %v6049_v19 = vld [vmem:[#allocation7 + $0x38] ss:$20 sps:$4 sm:$0xff]   ;;  %v6061_v28 = vld [vmem:[#allocation7 + $0xb0] ss:$20 sps:$4 sm:$0xff]  }
 0x472   : > { %5525 = vmatprep.subr.bf16.mxu0 %v2329_v49 }
 0x473   : > { %5526 = vmatpush3.bf16.msra.mxu0 %v2329_v49  ;;  %v6065_v49 = vld [vmem:[#allocation7 + $0xd8] ss:$20 sps:$4 sm:$0xff]  }
 0x474   : > { %v2166_v29 = vpop.f32.mrb[56].mxu0 }
 0x475   : > { %v2168_v30 = vpop.f32.mrb[57].mxu0 }
 0x476   : > { %v2170_v31 = vpop.f32.mrb[58].mxu0 }
 0x477   : > { %v2333_v32 = vpack.c.bf16 %v2170_v31, %v2166_v29  ;;  %v2172_v61 = vpop.f32.mrb[59].mxu0  ;;  %v6068_v29 = vld [vmem:[#allocation7 + $0xf4] ss:$20 sps:$4 sm:$0xff]  }
 0x478   : > { %v2334_v11 = vpack.c.bf16 %v2172_v61, %v2168_v30  ;;  %v6066_v30 = vld [vmem:[#allocation7 + $0xf0] ss:$20 sps:$4 sm:$0xff]   ;;  %2996 = vmatprep.subr.bf16.mxu1 %v6068_v29  ;;  %v6069_v31 = vld [vmem:[#allocation7 + $0x100] ss:$20 sps:$4 sm:$0xff]   ;;  %v6070_v61 = vld [vmem:[#allocation7 + $0x118] ss:$20 sps:$4 sm:$0xff]  }
 0x479   : > { %2997 = vmatpush1.bf16.msra.mxu1 %v6066_v30 }
 0x47a   : > { %5527 = vmatprep.subr.bf16.mxu0 %v2334_v11 }
 0x47b   : > { %5528 = vmatpush3.bf16.msra.mxu0 %v2334_v11  ;;  %v6073_v11 = vld [vmem:[#allocation7 + $0x128] ss:$20 sps:$4 sm:$0xff]  }
 0x47c   : > { %v2176_v34 = vpop.f32.mrb[60].mxu0 }
 0x47d   : > { %v2178_v21 = vpop.f32.mrb[61].mxu0 }
 0x47e   : > { %v2180_v33 = vpop.f32.mrb[62].mxu0 }
 0x47f   : > { %v2338_v45 = vpack.c.bf16 %v2180_v33, %v2176_v34  ;;  %v2182_v57 = vpop.f32.mrb[63].mxu0  ;;  %v6076_v34 = vld [vmem:[#allocation7 + $0xc] ss:$20 sps:$4 sm:$0xff]  }
 0x480   : > { %v2339_v24 = vpack.c.bf16 %v2182_v57, %v2178_v21  ;;  %v5006_v21 = vld [vmem:[#allocation16 + $0x1] ss:$0 sm:$0xff] }
 0x482   : > { %5529 = vmatprep.subr.bf16.mxu0 %v2339_v24 }
 0x483   : > { %5530 = vmatpush3.bf16.msra.mxu0 %v2339_v24 }
 0x484   : > { %v2219_v60 = vpop.f32.mrb[64].mxu0  ;;  %5535 = vmatprep.subr.bf16.mxu0 %v2323_v16 }
 0x485   : > { %v2221_v6 = vpop.f32.mrb[65].mxu0 }
 0x486   : > { %v2223_v10 = vpop.f32.mrb[66].mxu0  ;;  %5532 = vmatmul.mubr.msk.bf16.vlgmr.msra.gmra.mrb[88].mxu0 %vm2362_vm8, %v6033_v36 }
 0x487   : > { %v2325_v20 = vpack.c.bf16 %v2223_v10, %v2219_v60  ;;  %v2225_v26 = vpop.f32.mrb[67].mxu0  ;;  %5536 = vmatpush3.bf16.msra.mxu0 %v2323_v16  ;;  %5543 = vmatprep.mubr.msk.bf16.mxu0 %vm2362_vm8, %v6034_v48  ;;  %v6039_v16 = vld [vmem:[#allocation13 + $0x38] sm:$0xff]  }
 0x488   : > { %v2326_v27 = vpack.c.bf16 %v2225_v26, %v2221_v6  ;;  %5537 = vmatprep.subr.bf16.mxu0 %v2328_v23 }
 0x48b   : > { %5538 = vmatpush3.bf16.msra.mxu0 %v2328_v23  ;;  %v6057_v23 = vld [vmem:[#allocation7 + $0x88] ss:$20 sps:$4 sm:$0xff]  }
 0x48c   : > { %v2229_v35 = vpop.f32.mrb[68].mxu0  ;;  %5539 = vmatprep.subr.bf16.mxu0 %v2333_v32 }
 0x48d   : > { %v2231_v38 = vpop.f32.mrb[69].mxu0 }
 0x48e   : > { %v2233_v39 = vpop.f32.mrb[70].mxu0 }
 0x48f   : > { %v2330_v40 = vpack.c.bf16 %v2233_v39, %v2229_v35  ;;  %v2235_v41 = vpop.f32.mrb[71].mxu0  ;;  %5540 = vmatpush3.bf16.msra.mxu0 %v2333_v32  ;;  %v6072_v32 = vld [vmem:[#allocation7 + $0x11c] ss:$20 sps:$4 sm:$0xff]  }
 0x490   : > { %v2331_v42 = vpack.c.bf16 %v2235_v41, %v2231_v38  ;;  %5541 = vmatprep.subr.bf16.mxu0 %v2338_v45  ;;  %2998 = vmatprep.subr.bf16.mxu1 %v6072_v32 }
 0x491   : > { %2999 = vmatpush1.bf16.msra.mxu1 %v6070_v61 }
 0x492   : > { %3037 = vmatprep.subr.bf16.mxu1 %v6076_v34 }
 0x493   : > { %5542 = vmatpush3.bf16.msra.mxu0 %v2338_v45 }
 0x494   : > { %v2239_v46 = vpop.f32.mrb[72].mxu0  ;;  %5547 = vmatprep.subr.bf16.mxu0 %v2325_v20 }
 0x495   : > { %v2241_v47 = vpop.f32.mrb[73].mxu0 }
 0x496   : > { %v2243_v50 = vpop.f32.mrb[74].mxu0  ;;  %5544 = vmatmul.mubr.msk.bf16.vlgmr.msra.gmra.mrb[88].mxu0 %vm2362_vm8, %v6035_v43 }
 0x497   : > { %v2335_v51 = vpack.c.bf16 %v2243_v50, %v2239_v46  ;;  %v2245_v52 = vpop.f32.mrb[75].mxu0  ;;  %5548 = vmatpush3.bf16.msra.mxu0 %v2325_v20  ;;  %5555 = vmatprep.mubr.msk.bf16.mxu0 %vm2362_vm8, %v6036_v44  ;;  %v6079_v44 = vld [vmem:[#allocation7 + $0x34] ss:$20 sps:$4 sm:$0xff]   ;;  %v6077_v46 = vld [vmem:[#allocation7 + $0x30] ss:$20 sps:$4 sm:$0xff]  }
 0x498   : > { %v2336_v53 = vpack.c.bf16 %v2245_v52, %v2241_v47  ;;  %5549 = vmatprep.subr.bf16.mxu0 %v2330_v40  ;;  %v6082_v47 = vld [vmem:[#allocation7 + $0x5c] ss:$20 sps:$4 sm:$0xff]   ;;  %v6080_v50 = vld [vmem:[#allocation7 + $0x58] ss:$20 sps:$4 sm:$0xff]   ;;  %v6083_v52 = vld [vmem:[#allocation7 + $0x80] ss:$20 sps:$4 sm:$0xff]  }
 0x49b   : > { %5550 = vmatpush3.bf16.msra.mxu0 %v2330_v40 }
 0x49c   : > { %v2249_v54 = vpop.f32.mrb[76].mxu0  ;;  %5551 = vmatprep.subr.bf16.mxu0 %v2335_v51 }
 0x49d   : > { %v2251_v55 = vpop.f32.mrb[77].mxu0 }
 0x49e   : > { %v2253_v56 = vpop.f32.mrb[78].mxu0 }
 0x49f   : > { %v2340_v7 = vpack.c.bf16 %v2253_v56, %v2249_v54  ;;  %v2255_v58 = vpop.f32.mrb[79].mxu0  ;;  %5552 = vmatpush3.bf16.msra.mxu0 %v2335_v51  ;;  %v6085_v51 = vld [vmem:[#allocation7 + $0x84] ss:$20 sps:$4 sm:$0xff]   ;;  %v6086_v54 = vld [vmem:[#allocation7 + $0xa8] ss:$20 sps:$4 sm:$0xff]  }
 0x4a0   : > { %v2341_v59 = vpack.c.bf16 %v2255_v58, %v2251_v55  ;;  %v6091_v55 = vld [vmem:[#allocation7 + $0xd4] ss:$20 sps:$4 sm:$0xff]   ;;  %v6089_v56 = vld [vmem:[#allocation7 + $0xd0] ss:$20 sps:$4 sm:$0xff]   ;;  %v6092_v58 = vld [vmem:[#allocation7 + $0xf8] ss:$20 sps:$4 sm:$0xff]  }
 0x4a1   : > { %5553 = vmatprep.subr.bf16.mxu0 %v2340_v7 }
 0x4a3   : > { %5554 = vmatpush3.bf16.msra.mxu0 %v2340_v7  ;;  %v6094_v7 = vld [vmem:[#allocation7 + $0xfc] ss:$20 sps:$4 sm:$0xff]  }
 0x4a4   : > { %v5517_v0 = vpop.f32.mrb[80].mxu0  ;;  %5559 = vmatprep.subr.bf16.mxu0 %v2326_v27 }
 0x4a5   : > { %v2292_v13 = vpop.f32.mrb[81].mxu0 }
 0x4a6   : > { %v5518_v2 = vpop.f32.mrb[82].mxu0  ;;  %5556 = vmatmul.mubr.msk.bf16.vlgmr.msra.gmra.mrb[88].mxu0 %vm2362_vm8, %v6037_v62  ;;  %v6095_v62 = vld [vmem:[#allocation7 + $0x120] ss:$20 sps:$4 sm:$0xff]  }
 0x4a7   : > { %v2332_v3 = vpack.c.bf16 %v5518_v2, %v5517_v0  ;;  %v2295_v4 = vpop.f32.mrb[83].mxu0  ;;  %5560 = vmatpush3.bf16.msra.mxu0 %v2326_v27  ;;  %5567 = vmatprep.mubr.msk.bf16.mxu0 %vm2362_vm8, %v6038_v63  ;;  %v6511_v63 = vmov 0.0  }
 0x4a8   : > { %v2327_v5 = vpack.c.bf16 %v2295_v4, %v2292_v13  ;;  %5561 = vmatprep.subr.bf16.mxu0 %v2331_v42 }
 0x4ab   : > { %5562 = vmatpush3.bf16.msra.mxu0 %v2331_v42  ;;  %v6074_v42 = vld [vmem:[#allocation7 + $0x8] ss:$20 sps:$4 sm:$0xff]  }
 0x4ac   : > { %v5521_v8 = vpop.f32.mrb[84].mxu0  ;;  %5563 = vmatprep.subr.bf16.mxu0 %v2336_v53 }
 0x4ad   : > { %v2308_v9 = vpop.f32.mrb[85].mxu0 }
 0x4ae   : > { %v5522_v25 = vpop.f32.mrb[86].mxu0 }
 0x4af   : > { %v2342_v12 = vpack.c.bf16 %v5522_v25, %v5521_v8  ;;  %v2311_v14 = vpop.f32.mrb[87].mxu0  ;;  %5564 = vmatpush3.bf16.msra.mxu0 %v2336_v53  ;;  %v6088_v53 = vld [vmem:[#allocation7 + $0xac] ss:$20 sps:$4 sm:$0xff]  }
 0x4b0   : > { %v2337_v15 = vpack.c.bf16 %v2311_v14, %v2308_v9  ;;  %5565 = vmatprep.subr.bf16.mxu0 %v2341_v59 }
 0x4b3   : > { %5566 = vmatpush3.bf16.msra.mxu0 %v2341_v59  ;;  %v6097_v59 = vld [vmem:[#allocation7 + $0x124] ss:$20 sps:$4 sm:$0xff]  }
 0x4b4   : > { %5571 = vmatprep.subr.bf16.mxu0 %v2327_v5 }
 0x4b6   : > { %5568 = vmatmul.mubr.msk.bf16.vlgmr.msra.gmra.mrb[88].mxu0 %vm2362_vm8, %v6039_v16 }
 0x4b7   : > { %5572 = vmatpush3.bf16.msra.mxu0 %v2327_v5  ;;  %5579 = vmatprep.mubr.msk.bf16.mxu0 %vm2362_vm8, %v6040_v17 }
 0x4b8   : > { %5573 = vmatprep.subr.bf16.mxu0 %v2332_v3 }
 0x4bb   : > { %5574 = vmatpush3.bf16.msra.mxu0 %v2332_v3 }
 0x4bc   : > { %5575 = vmatprep.subr.bf16.mxu0 %v2337_v15 }
 0x4bf   : > { %5576 = vmatpush3.bf16.msra.mxu0 %v2337_v15 }
 0x4c0   : > { %5577 = vmatprep.subr.bf16.mxu0 %v2342_v12 }
 0x4c3   : > { %5578 = vmatpush3.bf16.msra.mxu0 %v2342_v12 }
 0x4c4   : > { %5583 = vmatprep.subr.bf16.mxu0 %v6045_v18 }
 0x4c6   : > { %5580 = vmatmul.mubr.msk.bf16.vlgmr.msra.gmra.mrb[88].mxu0 %vm2362_vm8, %v6041_v37 }
 0x4c7   : > { %5584 = vmatpush3.bf16.msra.mxu0 %v6045_v18 }
 0x4c8   : > { %5585 = vmatprep.subr.bf16.mxu0 %v6049_v19 }
 0x4cb   : > { %5586 = vmatpush3.bf16.msra.mxu0 %v6049_v19 }
 0x4cc   : > { %5587 = vmatprep.subr.bf16.mxu0 %v6053_v22 }
 0x4cf   : > { %5588 = vmatpush3.bf16.msra.mxu0 %v6053_v22 }
 0x4d0   : > { %5589 = vmatprep.subr.bf16.mxu0 %v6057_v23 }
 0x4d3   : > { %5590 = vmatpush3.bf16.msra.mxu0 %v6057_v23  ;;  %v6099_v23 = vld [vmem:[%s7230_s9] sm:$0xff]  }
 0x4d4   : > { %5591 = vmatprep.subr.bf16.mxu0 %v6061_v28 }
 0x4d7   : > { %5592 = vmatpush3.bf16.msra.mxu0 %v6061_v28  ;;  %v6098_v28 = vld [vmem:[%s7230_s9 + $0x8] sm:$0xff]  }
 0x4d8   : > { %5593 = vmatprep.subr.bf16.mxu0 %v6065_v49 }
 0x4db   : > { %5594 = vmatpush3.bf16.msra.mxu0 %v6065_v49 }
 0x4dc   : > { %5595 = vmatprep.subr.bf16.mxu0 %v6069_v31 }
 0x4df   : > { %5596 = vmatpush3.bf16.msra.mxu0 %v6069_v31 }
 0x4e0   : > { %5597 = vmatprep.subr.bf16.mxu0 %v6073_v11 }
 0x4e3   : > { %5598 = vmatpush3.bf16.msra.mxu0 %v6073_v11 }
 0x4e4   : > { %5611 = vmatprep.subr.bf16.mxu0 %v6511_v63 }
 0x599   : > { %v5581_v33 = vpop.f32.mrb[88].mxu0 }
 0x59a   : > { %v2712_v45 = vadd.f32 %v5581_v33, %v5006_v21  ;;  %v2686_v57 = vpop.f32.mrb[89].mxu0 }
 0x59b   : > { %v2710_v24 = vadd.f32 %v5006_v21, %v2686_v57  ;;  %v5582_v36 = vpop.f32.mrb[90].mxu0  ;;  %v6105_v57 = vld [vmem:[#allocation8 + $0x4] ss:$20 sps:$4 sm:$0xff]  }
 0x59c   : > { %v2720_v48 = vmul.f32 0.2, %v2712_v45  ;;  %v2713_v60 = vadd.f32 %v5582_v36, %v5006_v21  ;;  %v2689_v6 = vpop.f32.mrb[91].mxu0  ;;  %vm2716_vm9 = vcmp.ge.f32.partialorder %v2712_v45, 0.0  ;;  %v6100_v36 = vld [vmem:[%s7230_s9 + $0x10] sm:$0xff]  }
 0x59d   : > { %v2718_v10 = vmul.f32 0.2, %v2710_v24  ;;  %v2711_v20 = vadd.f32 %v5006_v21, %v2689_v6  ;;  %vm2714_vm10 = vcmp.ge.f32.partialorder %v2710_v24, 0.0  ;;  %v6108_v6 = vld [vmem:[#allocation8 + $0xc] ss:$20 sps:$4 sm:$0xff]  }
 0x59e   : > { %vm2717_vm11 = vcmp.ge.f32.partialorder %v2713_v60, 0.0  ;;  %v2721_v26 = vmul.f32 0.2, %v2713_v60  ;;  %v2724_v35 = vsel %vm2716_vm9, %v2712_v45, %v2720_v48  ;;  %v6101_v48 = vld [vmem:[%s7230_s9 + $0x18] sm:$0xff]  }
 0x59f   : > { %vm2715_vm12 = vcmp.ge.f32.partialorder %v2711_v20, 0.0  ;;  %v2719_v27 = vmul.f32 0.2, %v2711_v20  ;;  %v2722_v39 = vsel %vm2714_vm10, %v2710_v24, %v2718_v10  ;;  %v6102_v10 = vld [vmem:[%s7230_s9 + $0x20] sm:$0xff]  }
 0x5a0   : > { %v2725_v38 = vsel %vm2717_vm11, %v2713_v60, %v2721_v26  ;;  %v6103_v60 = vld [vmem:[#allocation8] ss:$20 sps:$4 sm:$0xff]   ;;  %v6109_v26 = vld [vmem:[#allocation8 + $0x28] ss:$20 sps:$4 sm:$0xff]  }
 0x5a1   : > { %v2727_v40 = vpack.c.bf16 %v2725_v38, %v2724_v35  ;;  %v2723_v41 = vsel %vm2715_vm12, %v2711_v20, %v2719_v27  ;;  %v6106_v20 = vld [vmem:[#allocation8 + $0x8] ss:$20 sps:$4 sm:$0xff]   ;;  %v6111_v27 = vld [vmem:[#allocation8 + $0x2c] ss:$20 sps:$4 sm:$0xff]   ;;  %v6112_v35 = vld [vmem:[#allocation8 + $0x30] ss:$20 sps:$4 sm:$0xff]  }
 0x5a2   : > { %v2726_v43 = vpack.c.bf16 %v2723_v41, %v2722_v39  ;;  %v6114_v38 = vld [vmem:[#allocation8 + $0x34] ss:$20 sps:$4 sm:$0xff]   ;;  %v6115_v41 = vld [vmem:[#allocation8 + $0x50] ss:$20 sps:$4 sm:$0xff]  }
 0x5a3   : > { %v6117_v39 = vld [vmem:[#allocation8 + $0x54] ss:$20 sps:$4 sm:$0xff]  }
 0x5a4   : > { %3017 = vmatmul.mubr.bf16.vlgmr.msra.gmra.mrb[40].mxu1 %v2726_v43  ;;  %5599 = vmatprep.mubr.bf16.mxu0 %v2726_v43 }
 0x5a5   : > { %3038 = vmatpush1.bf16.msra.mxu1 %v6074_v42  ;;  %5600 = vmatmul.mubr.bf16.vlgmr.msra.gmra.mrb[92].mxu0 %v2727_v40  ;;  %v6118_v42 = vld [vmem:[#allocation8 + $0x58] ss:$20 sps:$4 sm:$0xff]  }
 0x5a6   : > { %3039 = vmatprep.subr.bf16.mxu1 %v6079_v44  ;;  %3026 = vmatprep.mubr.bf16.mxu1 %v6510_v1  ;;  %v6121_v44 = vld [vmem:[#allocation8 + $0x78] ss:$20 sps:$4 sm:$0xff]  }
 0x5a7   : > { %5615 = vmatprep.mubr.msk.bf16.mxu0 %vm6512_vm13, %v6511_v63 }
 0x5a9   : > { %3040 = vmatpush1.bf16.msra.mxu1 %v6077_v46  ;;  %v6126_v46 = vld [vmem:[#allocation8 + $0x84] ss:$20 sps:$4 sm:$0xff]  }
 0x5aa   : > { %3041 = vmatprep.subr.bf16.mxu1 %v6082_v47  ;;  %v6124_v47 = vld [vmem:[#allocation8 + $0x80] ss:$20 sps:$4 sm:$0xff]  }
 0x5ac   : > { %3027 = vmatmul.mubr.bf16.gmra.mrb[44].mxu1 %v2727_v40 }
 0x5ad   : > { %3042 = vmatpush1.bf16.msra.mxu1 %v6080_v50  ;;  %3069 = vmatprep.mubr.bf16.mxu1 %v6510_v1  ;;  %v6129_v50 = vld [vmem:[#allocation8 + $0xa4] ss:$20 sps:$4 sm:$0xff]  }
 0x5ae   : > { %3043 = vmatprep.subr.bf16.mxu1 %v6085_v51  ;;  %v6127_v51 = vld [vmem:[#allocation8 + $0xa0] ss:$20 sps:$4 sm:$0xff]  }
 0x5b1   : > { %3044 = vmatpush1.bf16.msra.mxu1 %v6083_v52  ;;  %v6132_v52 = vld [vmem:[#allocation8 + $0xac] ss:$20 sps:$4 sm:$0xff]  }
 0x5b2   : > { %3045 = vmatprep.subr.bf16.mxu1 %v6088_v53  ;;  %v6130_v53 = vld [vmem:[#allocation8 + $0xa8] ss:$20 sps:$4 sm:$0xff]  }
 0x5b5   : > { %3046 = vmatpush1.bf16.msra.mxu1 %v6086_v54  ;;  %v6133_v54 = vld [vmem:[#allocation8 + $0xc8] ss:$20 sps:$4 sm:$0xff]  }
 0x5b6   : > { %3047 = vmatprep.subr.bf16.mxu1 %v6091_v55  ;;  %v6135_v55 = vld [vmem:[#allocation8 + $0xcc] ss:$20 sps:$4 sm:$0xff]  }
 0x5b9   : > { %3048 = vmatpush1.bf16.msra.mxu1 %v6089_v56  ;;  %v6138_v56 = vld [vmem:[#allocation8 + $0xd4] ss:$20 sps:$4 sm:$0xff]  }
 0x5ba   : > { %3049 = vmatprep.subr.bf16.mxu1 %v6094_v7  ;;  %v6136_v7 = vld [vmem:[#allocation8 + $0xd0] ss:$20 sps:$4 sm:$0xff]  }
 0x5bd   : > { %3050 = vmatpush1.bf16.msra.mxu1 %v6092_v58  ;;  %v6141_v58 = vld [vmem:[#allocation8 + $0xf4] ss:$20 sps:$4 sm:$0xff]  }
 0x5be   : > { %3051 = vmatprep.subr.bf16.mxu1 %v6097_v59  ;;  %v6139_v59 = vld [vmem:[#allocation8 + $0xf0] ss:$20 sps:$4 sm:$0xff]  }
 0x5c1   : > { %3052 = vmatpush1.bf16.msra.mxu1 %v6095_v62  ;;  %v6144_v62 = vld [vmem:[#allocation8 + $0xfc] ss:$20 sps:$4 sm:$0xff]  }
 0x5c2   : > { %5603 = vmatprep.subr.bf16.mxu1 %v6511_v63 }
 0x5c4   : > { %3070 = vmatmul.mubr.bf16.vlgmr.msra.gmra.mrb[48].mxu1 %v2726_v43  ;;  %v6123_v43 = vld [vmem:[#allocation8 + $0x7c] ss:$20 sps:$4 sm:$0xff]  }
 0x5c5   : > { %3079 = vmatprep.mubr.bf16.mxu1 %v6510_v1 }
 0x5cc   : > { %3080 = vmatmul.mubr.bf16.gmra.mrb[52].mxu1 %v2727_v40  ;;  %v6120_v40 = vld [vmem:[#allocation8 + $0x5c] ss:$20 sps:$4 sm:$0xff]  }
 0x5cd   : > { %5607 = vmatprep.mubr.msk.bf16.mxu1 %vm6512_vm13, %v6511_v63 }
 0x677   : > { %v3018_v0 = vpop.f32.mrb[40].mxu1 }
 0x678   : > { %v3020_v13 = vpop.f32.mrb[41].mxu1  ;;  %v7089_v2 = vpop.f32.mrb[92].mxu0 }
 0x679   : > { %v3022_v3 = vpop.f32.mrb[42].mxu1  ;;  %v3124_v4 = vpop.f32.mrb[93].mxu0 }
 0x67a   : > { %v3139_v5 = vpack.c.bf16 %v3022_v3, %v3018_v0  ;;  %v3024_v8 = vpop.f32.mrb[43].mxu1  ;;  %v5602_v9 = vpop.f32.mrb[94].mxu0  ;;  %v6142_v0 = vld [vmem:[#allocation8 + $0xf8] ss:$20 sps:$4 sm:$0xff]  }
 0x67b   : > { %v3140_v25 = vpack.c.bf16 %v3024_v8, %v3020_v13  ;;  %v3148_v12 = vpack.c.bf16 %v5602_v9, %v7089_v2  ;;  %v3127_v14 = vpop.f32.mrb[95].mxu0  ;;  %v6147_v13 = vld [vmem:[#allocation8 + $0x11c] ss:$20 sps:$4 sm:$0xff]   ;;  %v6145_v2 = vld [vmem:[#allocation8 + $0x118] ss:$20 sps:$4 sm:$0xff]  }
 0x67c   : > { %v3143_v15 = vpack.c.bf16 %v3127_v14, %v3124_v4  ;;  %5612 = vmatpush3.bf16.msra.mxu0 %v3139_v5  ;;  %v6150_v3 = vld [vmem:[#allocation8 + $0x124] ss:$20 sps:$4 sm:$0xff]   ;;  %v6148_v4 = vld [vmem:[#allocation8 + $0x120] ss:$20 sps:$4 sm:$0xff]  }
 0x67d   : > { %5604 = vmatpush3.bf16.msra.mxu1 %v3140_v25  ;;  %5613 = vmatprep.subr.bf16.mxu0 %v6511_v63 }
 0x67e   : > { %5605 = vmatprep.subr.bf16.mxu1 %v6511_v63 }
 0x67f   : > { %v3028_v16 = vpop.f32.mrb[44].mxu1 }
 0x680   : > { %v3030_v17 = vpop.f32.mrb[45].mxu1 }
 0x681   : > { %v3032_v18 = vpop.f32.mrb[46].mxu1 }
 0x682   : > { %v3144_v37 = vpack.c.bf16 %v3032_v18, %v3028_v16  ;;  %v3034_v19 = vpop.f32.mrb[47].mxu1 }
 0x683   : > { %v3145_v22 = vpack.c.bf16 %v3034_v19, %v3030_v17 }
 0x684   : > { %5614 = vmatpush3.bf16.msra.mxu0 %v3144_v37 }
 0x685   : > { %5606 = vmatpush3.bf16.msra.mxu1 %v3145_v22  ;;  %5627 = vmatprep.subr.bf16.mxu0 %v6511_v63 }
 0x686   : > { %5619 = vmatprep.subr.bf16.mxu1 %v6511_v63 }
 0x687   : > { %5616 = vmatmul.mubr.msk.bf16.vlgmr.msra.gmra.mrb[96].mxu0 %vm3159_vm14, %v6099_v23 }
 0x688   : > { %5608 = vmatmul.mubr.msk.bf16.vlgmr.msra.gmra.mrb[56].mxu1 %vm3159_vm14, %v6098_v28  ;;  %5631 = vmatprep.mubr.msk.bf16.mxu0 %vm6512_vm13, %v6511_v63 }
 0x689   : > { %5623 = vmatprep.mubr.msk.bf16.mxu1 %vm6512_vm13, %v6511_v63 }
 0x697   : > { %v3071_v49 = vpop.f32.mrb[48].mxu1 }
 0x698   : > { %v3073_v29 = vpop.f32.mrb[49].mxu1 }
 0x699   : > { %v3075_v30 = vpop.f32.mrb[50].mxu1 }
 0x69a   : > { %v3141_v31 = vpack.c.bf16 %v3075_v30, %v3071_v49  ;;  %v3077_v32 = vpop.f32.mrb[51].mxu1 }
 0x69b   : > { %v3142_v61 = vpack.c.bf16 %v3077_v32, %v3073_v29 }
 0x69c   : > { %5620 = vmatpush3.bf16.msra.mxu1 %v3141_v31 }
 0x69d   : > { %5628 = vmatpush3.bf16.msra.mxu0 %v3142_v61  ;;  %5621 = vmatprep.subr.bf16.mxu1 %v6511_v63 }
 0x69e   : > { %5629 = vmatprep.subr.bf16.mxu0 %v6511_v63 }
 0x69f   : > { %v3081_v11 = vpop.f32.mrb[52].mxu1 }
 0x6a0   : > { %v3083_v34 = vpop.f32.mrb[53].mxu1 }
 0x6a1   : > { %v3085_v21 = vpop.f32.mrb[54].mxu1 }
 0x6a2   : > { %v3146_v33 = vpack.c.bf16 %v3085_v21, %v3081_v11  ;;  %v3087_v45 = vpop.f32.mrb[55].mxu1  ;;  %v5065_v21 = vld [vmem:[#allocation16 + $0x2] ss:$0 sm:$0xff] }
 0x6a3   : > { %v3147_v24 = vpack.c.bf16 %v3087_v45, %v3083_v34 }
 0x6a4   : > { %5622 = vmatpush3.bf16.msra.mxu1 %v3146_v33 }
 0x6a5   : > { %5630 = vmatpush3.bf16.msra.mxu0 %v3147_v24  ;;  %5635 = vmatprep.subr.bf16.mxu1 %v6511_v63 }
 0x6a6   : > { %3685 = vmatprep.subr.bf16.mxu0 %v6105_v57 }
 0x6a7   : > { %5624 = vmatmul.mubr.msk.bf16.vlgmr.msra.gmra.mrb[60].mxu1 %vm3159_vm14, %v6100_v36 }
 0x6a8   : > { %5636 = vmatpush3.bf16.msra.mxu1 %v3143_v15  ;;  %5632 = vmatmul.mubr.msk.bf16.vlgmr.msra.gmra.mrb[100].mxu0 %vm3159_vm14, %v6101_v48 }
 0x6a9   : > { %5637 = vmatprep.subr.bf16.mxu1 %v6511_v63  ;;  %5639 = vmatprep.mubr.msk.bf16.mxu1 %vm6512_vm13, %v6511_v63 }
 0x6aa   : > { %3686 = vmatpush1.bf16.msra.mxu0 %v6103_v60  ;;  %3717 = vmatprep.mubr.bf16.mxu0 %v6510_v1 }
 0x6ab   : > { %3687 = vmatprep.subr.bf16.mxu0 %v6111_v27  ;;  %v6151_v27 = vld [vmem:[#allocation8 + $0x10] ss:$20 sps:$4 sm:$0xff]  }
 0x6ac   : > { %5638 = vmatpush3.bf16.msra.mxu1 %v3148_v12 }
 0x6ad   : > { %3728 = vmatprep.subr.bf16.mxu1 %v6108_v6 }
 0x6ae   : > { %3688 = vmatpush1.bf16.msra.mxu0 %v6109_v26 }
 0x6af   : > { %5640 = vmatmul.mubr.msk.bf16.vlgmr.msra.gmra.mrb[64].mxu1 %vm3159_vm14, %v6102_v10  ;;  %3689 = vmatprep.subr.bf16.mxu0 %v6117_v39  ;;  %v6153_v39 = vld [vmem:[#allocation8 + $0x60] ss:$20 sps:$4 sm:$0xff]  }
 0x6b0   : > { %3729 = vmatpush1.bf16.msra.mxu1 %v6106_v20  ;;  %3760 = vmatprep.mubr.bf16.mxu1 %v6510_v1 }
 0x6b1   : > { %3730 = vmatprep.subr.bf16.mxu1 %v6114_v38  ;;  %v6152_v38 = vld [vmem:[#allocation8 + $0x38] ss:$20 sps:$4 sm:$0xff]  }
 0x6b2   : > { %3690 = vmatpush1.bf16.msra.mxu0 %v6115_v41  ;;  %v6155_v41 = vld [vmem:[#allocation8 + $0xb0] ss:$20 sps:$4 sm:$0xff]  }
 0x6b3   : > { %3691 = vmatprep.subr.bf16.mxu0 %v6123_v43  ;;  %v6157_v43 = vld [vmem:[#allocation8 + $0x100] ss:$20 sps:$4 sm:$0xff]  }
 0x6b4   : > { %3731 = vmatpush1.bf16.msra.mxu1 %v6112_v35 }
 0x6b5   : > { %3732 = vmatprep.subr.bf16.mxu1 %v6120_v40  ;;  %v6154_v40 = vld [vmem:[#allocation8 + $0x88] ss:$20 sps:$4 sm:$0xff]  }
 0x6b6   : > { %3692 = vmatpush1.bf16.msra.mxu0 %v6121_v44  ;;  %v6158_v44 = vld [vmem:[#allocation8 + $0x128] ss:$20 sps:$4 sm:$0xff]  }
 0x6b7   : > { %3693 = vmatprep.subr.bf16.mxu0 %v6129_v50 }
 0x6b8   : > { %3733 = vmatpush1.bf16.msra.mxu1 %v6118_v42  ;;  %v6156_v42 = vld [vmem:[#allocation8 + $0xd8] ss:$20 sps:$4 sm:$0xff]  }
 0x6b9   : > { %3734 = vmatprep.subr.bf16.mxu1 %v6126_v46 }
 0x6ba   : > { %3694 = vmatpush1.bf16.msra.mxu0 %v6127_v51 }
 0x6bb   : > { %3695 = vmatprep.subr.bf16.mxu0 %v6135_v55 }
 0x6bc   : > { %3735 = vmatpush1.bf16.msra.mxu1 %v6124_v47 }
 0x6bd   : > { %3736 = vmatprep.subr.bf16.mxu1 %v6132_v52 }
 0x6be   : > { %3696 = vmatpush1.bf16.msra.mxu0 %v6133_v54 }
 0x6bf   : > { %3697 = vmatprep.subr.bf16.mxu0 %v6141_v58 }
 0x6c0   : > { %3737 = vmatpush1.bf16.msra.mxu1 %v6130_v53 }
 0x6c1   : > { %3738 = vmatprep.subr.bf16.mxu1 %v6138_v56 }
 0x6c2   : > { %3698 = vmatpush1.bf16.msra.mxu0 %v6139_v59 }
 0x6c3   : > { %3699 = vmatprep.subr.bf16.mxu0 %v6147_v13  ;;  %v5109_v13 = vld [vmem:[%s7231_s10 + $0x8] sm:$0xf] }
 0x6c4   : > { %3739 = vmatpush1.bf16.msra.mxu1 %v6136_v7 }
 0x6c5   : > { %3740 = vmatprep.subr.bf16.mxu1 %v6144_v62  ;;  %v5106_v62 = vld [vmem:[%s7231_s10 + $0x4] sm:$0xf] }
 0x6c6   : > { %3700 = vmatpush1.bf16.msra.mxu0 %v6145_v2  ;;  %v5111_v2 = vld [vmem:[%s7231_s10 + $0xc] sm:$0xf] }
 0x6c7   : > { %5643 = vmatprep.subr.bf16.mxu0 %v6511_v63 }
 0x6c8   : > { %3741 = vmatpush1.bf16.msra.mxu1 %v6142_v0  ;;  %v3817_v0 = vld [vmem:[%s7231_s10] sm:$0xf] }
 0x6c9   : > { %3742 = vmatprep.subr.bf16.mxu1 %v6150_v3 }
 0x6cc   : > { %3743 = vmatpush1.bf16.msra.mxu1 %v6148_v4 }
 0x6cd   : > { %5663 = vmatprep.subr.bf16.mxu1 %v6511_v63 }
 0x75a   : > { %v3246_v5 = vpop.f32.mrb[96].mxu0 }
 0x75b   : > { %v3197_v8 = vpop.f32.mrb[56].mxu1  ;;  %v5617_v9 = vpop.f32.mrb[97].mxu0 }
 0x75c   : > { %v5609_v25 = vpop.f32.mrb[57].mxu1  ;;  %v3247_v12 = vadd.f32 %v3246_v5, %v3197_v8  ;;  %v3249_v14 = vpop.f32.mrb[98].mxu0 }
 0x75d   : > { %v3200_v15 = vpop.f32.mrb[58].mxu1  ;;  %v5618_v16 = vpop.f32.mrb[99].mxu0  ;;  %v5113_v25 = vld [vmem:[%s7231_s10 + $0x10] sm:$0xf] }
 0x75e   : > { %v5610_v17 = vpop.f32.mrb[59].mxu1  ;;  %v3250_v18 = vadd.f32 %v3249_v14, %v3200_v15  ;;  %v6161_v14 = vld [vmem:[#allocation10 + $0x4] ss:$20 sps:$4 sm:$0xff]   ;;  %v6164_v15 = vld [vmem:[#allocation10 + $0xc] ss:$20 sps:$4 sm:$0xff]  }
 0x75f   : > { %v6162_v16 = vld [vmem:[#allocation10 + $0x8] ss:$20 sps:$4 sm:$0xff]  }
 0x760   : > { %v6165_v17 = vld [vmem:[#allocation10 + $0x28] ss:$20 sps:$4 sm:$0xff]  }
 0x77a   : > { %v3298_v37 = vpop.f32.mrb[60].mxu1 }
 0x77b   : > { %v3305_v19 = vadd.f32 %v3298_v37, %v3247_v12  ;;  %v5625_v22 = vpop.f32.mrb[61].mxu1  ;;  %v3352_v23 = vpop.f32.mrb[100].mxu0  ;;  %v6159_v12 = vld [vmem:[#allocation10] ss:$20 sps:$4 sm:$0xff]   ;;  %v6168_v37 = vld [vmem:[#allocation10 + $0x30] ss:$20 sps:$4 sm:$0xff]  }
 0x77c   : > { %v3301_v28 = vpop.f32.mrb[62].mxu1  ;;  %v5633_v49 = vpop.f32.mrb[101].mxu0  ;;  %v6173_v22 = vld [vmem:[#allocation10 + $0x54] ss:$20 sps:$4 sm:$0xff]  }
 0x77d   : > { %v3306_v29 = vadd.f32 %v3301_v28, %v3250_v18  ;;  %v3359_v30 = vadd.f32 %v3352_v23, %v3305_v19  ;;  %v5626_v31 = vpop.f32.mrb[63].mxu1  ;;  %v3355_v32 = vpop.f32.mrb[102].mxu0  ;;  %v6167_v18 = vld [vmem:[#allocation10 + $0x2c] ss:$20 sps:$4 sm:$0xff]   ;;  %v6170_v19 = vld [vmem:[#allocation10 + $0x34] ss:$20 sps:$4 sm:$0xff]  }
 0x77e   : > { %v5634_v61 = vpop.f32.mrb[103].mxu0  ;;  %v6171_v23 = vld [vmem:[#allocation10 + $0x50] ss:$20 sps:$4 sm:$0xff]   ;;  %v6174_v28 = vld [vmem:[#allocation10 + $0x58] ss:$20 sps:$4 sm:$0xff]  }
 0x77f   : > { %v3360_v11 = vadd.f32 %v3355_v32, %v3306_v29  ;;  %v6177_v49 = vld [vmem:[#allocation10 + $0x78] ss:$20 sps:$4 sm:$0xff]   ;;  %v6179_v29 = vld [vmem:[#allocation10 + $0x7c] ss:$20 sps:$4 sm:$0xff]   ;;  %v6183_v61 = vld [vmem:[#allocation10 + $0xa0] ss:$20 sps:$4 sm:$0xff]  }
 0x780   : > { %v6182_v31 = vld [vmem:[#allocation10 + $0x84] ss:$20 sps:$4 sm:$0xff]  }
 0x781   : > { %v6185_v32 = vld [vmem:[#allocation10 + $0xa4] ss:$20 sps:$4 sm:$0xff]  }
 0x782   : > { %v3406_v34 = vpop.f32.mrb[64].mxu1 }
 0x783   : > { %v3413_v33 = vadd.f32 %v3406_v34, %v3359_v30  ;;  %v5641_v45 = vpop.f32.mrb[65].mxu1  ;;  %v6180_v30 = vld [vmem:[#allocation10 + $0x80] ss:$20 sps:$4 sm:$0xff]   ;;  %v6186_v34 = vld [vmem:[#allocation10 + $0xa8] ss:$20 sps:$4 sm:$0xff]  }
 0x784   : > { %v3409_v57 = vpop.f32.mrb[66].mxu1  ;;  %v6192_v45 = vld [vmem:[#allocation10 + $0xd0] ss:$20 sps:$4 sm:$0xff]  }
 0x785   : > { %v3420_v24 = vadd.f32 %v5065_v21, %v3413_v33  ;;  %v3414_v36 = vadd.f32 %v3409_v57, %v3360_v11  ;;  %v5642_v48 = vpop.f32.mrb[67].mxu1  ;;  %v6188_v11 = vld [vmem:[#allocation10 + $0xac] ss:$20 sps:$4 sm:$0xff]   ;;  %v6194_v57 = vld [vmem:[#allocation10 + $0xd4] ss:$20 sps:$4 sm:$0xff]  }
 0x786   : > { %v6191_v33 = vld [vmem:[#allocation10 + $0xcc] ss:$20 sps:$4 sm:$0xff]   ;;  %v6200_v48 = vld [vmem:[#allocation10 + $0xfc] ss:$20 sps:$4 sm:$0xff]  }
 0x787   : > { %v3424_v60 = vmul.f32 0.2, %v3420_v24  ;;  %v3421_v6 = vadd.f32 %v5065_v21, %v3414_v36  ;;  %vm3422_vm15 = vcmp.ge.f32.partialorder %v3420_v24, 0.0  ;;  %v6189_v21 = vld [vmem:[#allocation10 + $0xc8] ss:$20 sps:$4 sm:$0xff]  }
 0x788   : > { %v6195_v36 = vld [vmem:[#allocation10 + $0xf0] ss:$20 sps:$4 sm:$0xff]  }
 0x789   : > { %vm3423_vm0 = vcmp.ge.f32.partialorder %v3421_v6, 0.0  ;;  %v3425_v10 = vmul.f32 0.2, %v3421_v6  ;;  %v3426_v20 = vsel %vm3422_vm15, %v3420_v24, %v3424_v60  ;;  %v6197_v24 = vld [vmem:[#allocation10 + $0xf4] ss:$20 sps:$4 sm:$0xff]  }
 0x78a   : > { %v6198_v60 = vld [vmem:[#allocation10 + $0xf8] ss:$20 sps:$4 sm:$0xff]  }
 0x78b   : > { %v3427_v26 = vsel %vm3423_vm0, %v3421_v6, %v3425_v10  ;;  %v6203_v6 = vld [vmem:[#allocation10 + $0x11c] ss:$20 sps:$4 sm:$0xff]   ;;  %v6201_v10 = vld [vmem:[#allocation10 + $0x118] ss:$20 sps:$4 sm:$0xff]  }
 0x78c   : > { %v3428_v35 = vpack.c.bf16 %v3427_v26, %v3426_v20  ;;  %v6206_v20 = vld [vmem:[#allocation10 + $0x124] ss:$20 sps:$4 sm:$0xff]   ;;  %v6204_v26 = vld [vmem:[#allocation10 + $0x120] ss:$20 sps:$4 sm:$0xff]  }
 0x78e   : > { %3718 = vmatmul.mubr.bf16.vlgmr.msra.gmra.mrb[104].mxu0 %v3428_v35  ;;  %3761 = vmatmul.mubr.bf16.vlgmr.msra.gmra.mrb[68].mxu1 %v3428_v35 }
 0x78f   : > { %5644 = vmatpush3.bf16.msra.mxu0 %v6151_v27  ;;  %5659 = vmatprep.mubr.msk.bf16.mxu0 %vm6512_vm13, %v6511_v63 }
 0x790   : > { %5645 = vmatprep.subr.bf16.mxu0 %v6511_v63  ;;  %5665 = vmatprep.mubr.msk.bf16.mxu1 %vm6512_vm13, %v6511_v63 }
 0x793   : > { %5646 = vmatpush3.bf16.msra.mxu0 %v6152_v38 }
 0x794   : > { %5647 = vmatprep.subr.bf16.mxu0 %v6511_v63 }
 0x797   : > { %5648 = vmatpush3.bf16.msra.mxu0 %v6153_v39 }
 0x798   : > { %5649 = vmatprep.subr.bf16.mxu0 %v6511_v63 }
 0x79b   : > { %5650 = vmatpush3.bf16.msra.mxu0 %v6154_v40 }
 0x79c   : > { %5651 = vmatprep.subr.bf16.mxu0 %v6511_v63 }
 0x79f   : > { %5652 = vmatpush3.bf16.msra.mxu0 %v6155_v41 }
 0x7a0   : > { %5653 = vmatprep.subr.bf16.mxu0 %v6511_v63 }
 0x7a3   : > { %5654 = vmatpush3.bf16.msra.mxu0 %v6156_v42 }
 0x7a4   : > { %5655 = vmatprep.subr.bf16.mxu0 %v6511_v63 }
 0x7a7   : > { %5656 = vmatpush3.bf16.msra.mxu0 %v6157_v43 }
 0x7a8   : > { %5657 = vmatprep.subr.bf16.mxu0 %v6511_v63 }
 0x7ab   : > { %5658 = vmatpush3.bf16.msra.mxu0 %v6158_v44 }
 0x7ac   : > { %5687 = vmatprep.subr.bf16.mxu0 %v6511_v63 }
 0x7ae   : > { %5660 = vmatmul.mubr.bf16.vlgmr.msra.gmra.mrb[108].mxu0 %v3428_v35 }
 0x7af   : > { %5689 = vmatprep.mubr.msk.bf16.mxu0 %vm6512_vm13, %v6511_v63 }
 0x861   : > { %v3719_v46 = vpop.f32.mrb[104].mxu0  ;;  %v3762_v47 = vpop.f32.mrb[68].mxu1 }
 0x862   : > { %v3721_v50 = vpop.f32.mrb[105].mxu0  ;;  %v3764_v51 = vpop.f32.mrb[69].mxu1 }
 0x863   : > { %v3723_v52 = vpop.f32.mrb[106].mxu0  ;;  %v3766_v53 = vpop.f32.mrb[70].mxu1 }
 0x864   : > { %v3812_v54 = vpack.c.bf16 %v3723_v52, %v3719_v46  ;;  %v3814_v55 = vpack.c.bf16 %v3766_v53, %v3762_v47  ;;  %v3725_v56 = vpop.f32.mrb[107].mxu0  ;;  %v3768_v7 = vpop.f32.mrb[71].mxu1 }
 0x865   : > { %v3813_v58 = vpack.c.bf16 %v3725_v56, %v3721_v50  ;;  %v3815_v59 = vpack.c.bf16 %v3768_v7, %v3764_v51 }
 0x867   : > { %5664 = vmatpush3.bf16.msra.mxu1 %v3813_v58 }
 0x868   : > { %5669 = vmatprep.subr.bf16.mxu1 %v6511_v63 }
 0x86a   : > { %5666 = vmatmul.mubr.msk.bf16.vlgmr.msra.gmra.mrb[72].mxu1 %vm3820_vm1, %v5106_v62 }
 0x86b   : > { %5670 = vmatpush3.bf16.msra.mxu1 %v3812_v54  ;;  %5671 = vmatprep.mubr.msk.bf16.mxu1 %vm6512_vm13, %v6511_v63 }
 0x86c   : > { %5675 = vmatprep.subr.bf16.mxu1 %v6511_v63 }
 0x872   : > { %5672 = vmatmul.mubr.msk.bf16.vlgmr.msra.gmra.mrb[76].mxu1 %vm3820_vm1, %v3817_v0 }
 0x873   : > { %5676 = vmatpush3.bf16.msra.mxu1 %v3814_v55  ;;  %5677 = vmatprep.mubr.msk.bf16.mxu1 %vm6512_vm13, %v6511_v63 }
 0x874   : > { %5681 = vmatprep.subr.bf16.mxu1 %v6511_v63 }
 0x87a   : > { %5678 = vmatmul.mubr.msk.bf16.vlgmr.msra.gmra.mrb[80].mxu1 %vm3820_vm1, %v5109_v13 }
 0x87b   : > { %5682 = vmatpush3.bf16.msra.mxu1 %v3815_v59  ;;  %5683 = vmatprep.mubr.msk.bf16.mxu1 %vm6512_vm13, %v6511_v63  ;;  %v5115_v59 = vld [vmem:[#allocation16 + $0x3] ss:$0 sm:$0xff] }
 0x87c   : > { %4311 = vmatprep.subr.bf16.mxu1 %v6161_v14  ;;  %v6210_v14 = vld [vmem:[#allocation10 + $0x88] ss:$20 sps:$4 sm:$0xff]  }
 0x881   : > { %v3805_v3 = vpop.f32.mrb[108].mxu0 }
 0x882   : > { %v5661_v4 = vpop.f32.mrb[109].mxu0  ;;  %5684 = vmatmul.mubr.msk.bf16.vlgmr.msra.gmra.mrb[84].mxu1 %vm3820_vm1, %v5111_v2 }
 0x883   : > { %v3808_v5 = vpop.f32.mrb[110].mxu0  ;;  %4343 = vmatprep.mubr.bf16.mxu1 %v6510_v1  ;;  %4312 = vmatpush1.bf16.msra.mxu1 %v6159_v12  ;;  %v6209_v12 = vld [vmem:[#allocation10 + $0x60] ss:$20 sps:$4 sm:$0xff]  }
 0x884   : > { %v3816_v8 = vpack.c.bf16 %v3808_v5, %v3805_v3  ;;  %v5662_v9 = vpop.f32.mrb[111].mxu0  ;;  %4313 = vmatprep.subr.bf16.mxu1 %v6167_v18  ;;  %v6214_v18 = vld [vmem:[#allocation10 + $0x128] ss:$20 sps:$4 sm:$0xff]  }
 0x886   : > { %5688 = vmatpush3.bf16.msra.mxu0 %v3816_v8  ;;  %v6207_v8 = vld [vmem:[#allocation10 + $0x10] ss:$20 sps:$4 sm:$0xff]  }
 0x887   : > { %4352 = vmatprep.subr.bf16.mxu0 %v6164_v15  ;;  %4314 = vmatpush1.bf16.msra.mxu1 %v6165_v17  ;;  %v6211_v15 = vld [vmem:[#allocation10 + $0xb0] ss:$20 sps:$4 sm:$0xff]   ;;  %v6213_v17 = vld [vmem:[#allocation10 + $0x100] ss:$20 sps:$4 sm:$0xff]  }
 0x888   : > { %4315 = vmatprep.subr.bf16.mxu1 %v6173_v22 }
 0x889   : > { %5690 = vmatmul.mubr.msk.bf16.vlgmr.msra.gmra.mrb[112].mxu0 %vm3820_vm1, %v5113_v25  ;;  %v6208_v25 = vld [vmem:[#allocation10 + $0x38] ss:$20 sps:$4 sm:$0xff]  }
 0x88a   : > { %4384 = vmatprep.mubr.bf16.mxu0 %v6510_v1  ;;  %4353 = vmatpush1.bf16.msra.mxu0 %v6162_v16  ;;  %v6176_v1 = vld [vmem:[#allocation10 + $0x5c] ss:$20 sps:$4 sm:$0xff]   ;;  %v6212_v16 = vld [vmem:[#allocation10 + $0xd8] ss:$20 sps:$4 sm:$0xff]  }
 0x88b   : > { %4354 = vmatprep.subr.bf16.mxu0 %v6170_v19  ;;  %4316 = vmatpush1.bf16.msra.mxu1 %v6171_v23 }
 0x88c   : > { %4317 = vmatprep.subr.bf16.mxu1 %v6179_v29 }
 0x88e   : > { %4355 = vmatpush1.bf16.msra.mxu0 %v6168_v37 }
 0x88f   : > { %4356 = vmatprep.subr.bf16.mxu0 %v6176_v1  ;;  %4318 = vmatpush1.bf16.msra.mxu1 %v6177_v49 }
 0x890   : > { %4319 = vmatprep.subr.bf16.mxu1 %v6185_v32 }
 0x892   : > { %4357 = vmatpush1.bf16.msra.mxu0 %v6174_v28 }
 0x893   : > { %4358 = vmatprep.subr.bf16.mxu0 %v6182_v31  ;;  %4320 = vmatpush1.bf16.msra.mxu1 %v6183_v61  ;;  %v4440_v61 = vld [vmem:[#allocation14 + $0x2] sm:$0x3] }
 0x894   : > { %4321 = vmatprep.subr.bf16.mxu1 %v6191_v33 }
 0x896   : > { %4359 = vmatpush1.bf16.msra.mxu0 %v6180_v30 }
 0x897   : > { %4360 = vmatprep.subr.bf16.mxu0 %v6188_v11  ;;  %4322 = vmatpush1.bf16.msra.mxu1 %v6189_v21  ;;  %v4438_v21 = vld [vmem:[#allocation14] sm:$0x3] }
 0x898   : > { %4323 = vmatprep.subr.bf16.mxu1 %v6197_v24 }
 0x89a   : > { %4361 = vmatpush1.bf16.msra.mxu0 %v6186_v34 }
 0x89b   : > { %4362 = vmatprep.subr.bf16.mxu0 %v6194_v57  ;;  %4324 = vmatpush1.bf16.msra.mxu1 %v6195_v36  ;;  %v4536_v57 = vld [vmem:[#allocation14 + $0x4] sm:$0x3]  ;;  %v4585_v36 = vld [vmem:[#allocation14 + $0x6] sm:$0x3] }
 0x89c   : > { %4325 = vmatprep.subr.bf16.mxu1 %v6203_v6 }
 0x89e   : > { %4363 = vmatpush1.bf16.msra.mxu0 %v6192_v45 }
 0x89f   : > { %4364 = vmatprep.subr.bf16.mxu0 %v6200_v48  ;;  %4326 = vmatpush1.bf16.msra.mxu1 %v6201_v10 }
 0x8a0   : > { %5693 = vmatprep.subr.bf16.mxu1 %v6511_v63 }
 0x8a2   : > { %4365 = vmatpush1.bf16.msra.mxu0 %v6198_v60 }
 0x8a3   : > { %4366 = vmatprep.subr.bf16.mxu0 %v6206_v20 }
 0x8a6   : > { %4367 = vmatpush1.bf16.msra.mxu0 %v6204_v26 }
 0x8a7   : > { %5713 = vmatprep.subr.bf16.mxu0 %v6511_v63 }
 0x93d   : > { %v3858_v27 = vpop.f32.mrb[72].mxu1 }
 0x93e   : > { %v5667_v35 = vpop.f32.mrb[73].mxu1 }
 0x93f   : > { %v3861_v38 = vpop.f32.mrb[74].mxu1 }
 0x940   : > { %v5668_v39 = vpop.f32.mrb[75].mxu1 }
 0x945   : > { %v3901_v40 = vpop.f32.mrb[76].mxu1 }
 0x946   : > { %v3902_v41 = vadd.f32 %v3901_v40, %v3858_v27  ;;  %v5673_v42 = vpop.f32.mrb[77].mxu1  ;;  %v4634_v27 = vld [vmem:[#allocation14 + $0x8] sm:$0x3] }
 0x947   : > { %v3904_v43 = vpop.f32.mrb[78].mxu1 }
 0x948   : > { %v5674_v44 = vpop.f32.mrb[79].mxu1 }
 0x94d   : > { %v3946_v46 = vpop.f32.mrb[80].mxu1 }
 0x94e   : > { %v3952_v47 = vadd.f32 %v3946_v46, %v3902_v41  ;;  %v5679_v50 = vpop.f32.mrb[81].mxu1 }
 0x94f   : > { %v3949_v51 = vpop.f32.mrb[82].mxu1 }
 0x950   : > { %v5680_v52 = vpop.f32.mrb[83].mxu1 }
 0x955   : > { %v3992_v53 = vpop.f32.mrb[84].mxu1 }
 0x956   : > { %v3998_v54 = vadd.f32 %v3992_v53, %v3952_v47  ;;  %v5685_v55 = vpop.f32.mrb[85].mxu1 }
 0x957   : > { %v3995_v56 = vpop.f32.mrb[86].mxu1 }
 0x958   : > { %v5686_v7 = vpop.f32.mrb[87].mxu1 }
 0x95c   : > { %v4038_v58 = vpop.f32.mrb[112].mxu0 }
 0x95d   : > { %v4044_v62 = vadd.f32 %v4038_v58, %v3998_v54  ;;  %v5691_v0 = vpop.f32.mrb[113].mxu0 }
 0x95e   : > { %v4041_v13 = vpop.f32.mrb[114].mxu0 }
 0x95f   : > { %v4050_v2 = vadd.f32 %v5115_v59, %v4044_v62  ;;  %v5692_v3 = vpop.f32.mrb[115].mxu0  ;;  %v5161_v59 = vld [vmem:[#allocation16 + $0x4] ss:$0 sm:$0xff]  ;;  %v4688_v13 = vld [vmem:[%s7271_s5] sm:$0xf] }
 0x961   : > { %vm4051_vm2 = vcmp.ge.f32.partialorder %v4050_v2, 0.0  ;;  %v4052_v4 = vmul.f32 0.2, %v4050_v2 }
 0x963   : > { %v4053_v5 = vsel %vm4051_vm2, %v4050_v2, %v4052_v4 }
 0x964   : > { %v4054_v9 = vpack.c.bf16 %v4053_v5, %v4053_v5 }
 0x966   : > { %4344 = vmatmul.mubr.bf16.vlgmr.msra.gmra.mrb[88].mxu1 %v4054_v9  ;;  %4385 = vmatmul.mubr.bf16.vlgmr.msra.gmra.mrb[116].mxu0 %v4054_v9 }
 0x967   : > { %5694 = vmatpush3.bf16.msra.mxu1 %v6207_v8  ;;  %5709 = vmatprep.mubr.msk.bf16.mxu1 %vm6512_vm13, %v6511_v63 }
 0x968   : > { %5695 = vmatprep.subr.bf16.mxu1 %v6511_v63  ;;  %5715 = vmatprep.mubr.msk.bf16.mxu0 %vm6512_vm13, %v6511_v63 }
 0x96b   : > { %5696 = vmatpush3.bf16.msra.mxu1 %v6208_v25 }
 0x96c   : > { %5697 = vmatprep.subr.bf16.mxu1 %v6511_v63 }
 0x96f   : > { %5698 = vmatpush3.bf16.msra.mxu1 %v6209_v12 }
 0x970   : > { %5699 = vmatprep.subr.bf16.mxu1 %v6511_v63 }
 0x973   : > { %5700 = vmatpush3.bf16.msra.mxu1 %v6210_v14 }
 0x974   : > { %5701 = vmatprep.subr.bf16.mxu1 %v6511_v63 }
 0x977   : > { %5702 = vmatpush3.bf16.msra.mxu1 %v6211_v15 }
 0x978   : > { %5703 = vmatprep.subr.bf16.mxu1 %v6511_v63 }
 0x97b   : > { %5704 = vmatpush3.bf16.msra.mxu1 %v6212_v16 }
 0x97c   : > { %5705 = vmatprep.subr.bf16.mxu1 %v6511_v63 }
 0x97f   : > { %5706 = vmatpush3.bf16.msra.mxu1 %v6213_v17  ;;  %v4699_v17 = vld [vmem:[#allocation2] sm:$0x1] }
 0x980   : > { %5707 = vmatprep.subr.bf16.mxu1 %v6511_v63 }
 0x983   : > { %5708 = vmatpush3.bf16.msra.mxu1 %v6214_v18 }
 0x984   : > { %5737 = vmatprep.subr.bf16.mxu1 %v6511_v63 }
 0x986   : > { %5710 = vmatmul.mubr.bf16.vlgmr.msra.gmra.mrb[92].mxu1 %v4054_v9 }
 0x987   : > { %5739 = vmatprep.mubr.msk.bf16.mxu1 %vm6512_vm13, %v6511_v63 }
 0xa39   : > { %v4345_v37 = vpop.f32.mrb[88].mxu1  ;;  %v4386_v19 = vpop.f32.mrb[116].mxu0 }
 0xa3a   : > { %v4347_v22 = vpop.f32.mrb[89].mxu1  ;;  %v4388_v23 = vpop.f32.mrb[117].mxu0  ;;  %v4433_v31 = vpack.c.bf16 %v4345_v37, %v4345_v37  ;;  %v4435_v34 = vpack.c.bf16 %v4386_v19, %v4386_v19  ;;  %v4706_v19 = vlaneseq }
 0xa3b   : > { %v4434_v1 = vpack.c.bf16 %v4347_v22, %v4347_v22  ;;  %v4349_v28 = vpop.f32.mrb[90].mxu1  ;;  %v4390_v49 = vpop.f32.mrb[118].mxu0  ;;  %v4436_v45 = vpack.c.bf16 %v4388_v23, %v4388_v23 }
 0xa3c   : > { %v4350_v29 = vpop.f32.mrb[91].mxu1  ;;  %v4391_v30 = vpop.f32.mrb[119].mxu0  ;;  %v4493_v11 = vsel %vm4445_vm3, %v4433_v31, 0  ;;  %v4541_v33 = vsel %vm4445_vm3, %v4435_v34, 0  ;;  %v4707_v22 = vshrl.u32 %v4706_v19, 7 }
 0xa3d   : > { %v4447_v32 = vsel %vm4445_vm3, %v4434_v1, 0  ;;  %v4590_v24 = vsel %vm4445_vm3, %v4436_v45, 0 }
 0xa3e   : > { %5714 = vmatpush3.bf16.msra.mxu0 %v4447_v32  ;;  %v4708_v23 = vsub.s32 0, %v4707_v22 }
 0xa3f   : > { %5719 = vmatprep.subr.bf16.mxu0 %v6511_v63 }
 0xa41   : > { %5716 = vmatmul.mubr.msk.bf16.vlgmr.msra.gmra.mrb[120].mxu0 %vm4441_vm4, %v4440_v61 }
 0xa42   : > { %5720 = vmatpush3.bf16.msra.mxu0 %v4493_v11  ;;  %5721 = vmatprep.mubr.msk.bf16.mxu0 %vm6512_vm13, %v6511_v63 }
 0xa43   : > { %5725 = vmatprep.subr.bf16.mxu0 %v6511_v63 }
 0xa49   : > { %5722 = vmatmul.mubr.msk.bf16.vlgmr.msra.gmra.mrb[124].mxu0 %vm4441_vm4, %v4438_v21 }
 0xa4a   : > { %5726 = vmatpush3.bf16.msra.mxu0 %v4541_v33  ;;  %5727 = vmatprep.mubr.msk.bf16.mxu0 %vm6512_vm13, %v6511_v63 }
 0xa4b   : > { %5731 = vmatprep.subr.bf16.mxu0 %v6511_v63 }
 0xa51   : > { %5728 = vmatmul.mubr.msk.bf16.vlgmr.msra.gmra.mrb[128].mxu0 %vm4441_vm4, %v4536_v57 }
 0xa52   : > { %5732 = vmatpush3.bf16.msra.mxu0 %v4590_v24  ;;  %5733 = vmatprep.mubr.msk.bf16.mxu0 %vm6512_vm13, %v6511_v63 }
 0xa59   : > { %v4427_v48 = vpop.f32.mrb[92].mxu1  ;;  %5734 = vmatmul.mubr.msk.bf16.vlgmr.msra.gmra.mrb[132].mxu0 %vm4441_vm4, %v4585_v36 }
 0xa5a   : > { %v4437_v60 = vpack.c.bf16 %v4427_v48, %v4427_v48  ;;  %v5711_v6 = vpop.f32.mrb[93].mxu1 }
 0xa5b   : > { %v4430_v10 = vpop.f32.mrb[94].mxu1 }
 0xa5c   : > { %v4639_v20 = vsel %vm4445_vm3, %v4437_v60, 0  ;;  %v5712_v26 = vpop.f32.mrb[95].mxu1 }
 0xa5d   : > { %5738 = vmatpush3.bf16.msra.mxu1 %v4639_v20 }
 0xa60   : > { %5740 = vmatmul.mubr.msk.bf16.vlgmr.msra.gmra.mrb[96].mxu1 %vm4441_vm4, %v4634_v27 }
 0xb14   : > { %v4483_v35 = vpop.f32.mrb[120].mxu0 }
 0xb15   : > { %v5717_v38 = vpop.f32.mrb[121].mxu0 }
 0xb16   : > { %v4486_v39 = vpop.f32.mrb[122].mxu0 }
 0xb17   : > { %v5718_v40 = vpop.f32.mrb[123].mxu0 }
 0xb1c   : > { %v4529_v41 = vpop.f32.mrb[124].mxu0 }
 0xb1d   : > { %v4530_v63 = vadd.f32 %v4529_v41, %v4483_v35  ;;  %v5723_v42 = vpop.f32.mrb[125].mxu0 }
 0xb1e   : > { %v4532_v43 = vpop.f32.mrb[126].mxu0 }
 0xb1f   : > { %v5724_v44 = vpop.f32.mrb[127].mxu0 }
 0xb24   : > { %v4577_v46 = vpop.f32.mrb[128].mxu0 }
 0xb25   : > { %v4583_v47 = vadd.f32 %v4577_v46, %v4530_v63  ;;  %v5729_v50 = vpop.f32.mrb[129].mxu0 }
 0xb26   : > { %v4580_v51 = vpop.f32.mrb[130].mxu0 }
 0xb27   : > { %v5730_v52 = vpop.f32.mrb[131].mxu0 }
 0xb2c   : > { %v4626_v53 = vpop.f32.mrb[132].mxu0 }
 0xb2d   : > { %v4632_v54 = vadd.f32 %v4626_v53, %v4583_v47  ;;  %v5735_v55 = vpop.f32.mrb[133].mxu0 }
 0xb2e   : > { %v4629_v56 = vpop.f32.mrb[134].mxu0 }
 0xb2f   : > { %v5736_v7 = vpop.f32.mrb[135].mxu0 }
 0xb33   : > { %v4675_v58 = vpop.f32.mrb[96].mxu1 }
 0xb34   : > { %v4681_v62 = vadd.f32 %v4675_v58, %v4632_v54  ;;  %v5741_v0 = vpop.f32.mrb[97].mxu1 }
 0xb35   : > { %v4678_v2 = vpop.f32.mrb[98].mxu1 }
 0xb36   : > { %v4687_v3 = vadd.f32 %v5161_v59, %v4681_v62  ;;  %v5742_v4 = vpop.f32.mrb[99].mxu1 }
 0xb38   : > { %v4689_v5 = vmul.f32 %v4688_v13, %v4687_v3 }
 0xb3a   : > { %v4690_v8 = vsel %vm4445_vm3, %v4689_v5, 0.0 }
 0xb3b   : > { %v4691_v9 = vrot.slane %v4690_v8, 4 }
 0xb3d   : > { %v4692_v25 = vadd.f32 %v4691_v9, %v4690_v8 }
 0xb3f   : > { %v4693_v12 = vrot.slane %v4692_v25, 2 }
 0xb41   : > { %v4694_v14 = vadd.f32 %v4693_v12, %v4692_v25 }
 0xb43   : > { %v4695_v15 = vrot.slane %v4694_v14, 1 }
 0xb45   : > { %v4696_v16 = vadd.f32 %v4695_v15, %v4694_v14 }
 0xb47   : > { %4697 = vadd.xlane.f32.xlu0 %v4696_v16 }
 0xbd4   : > { %v4698_v18 = vpop.xlane.xlu0 %4697 }
 0xbd5   : > { %v4700_v37 = vadd.f32 %v4699_v17, %v4698_v18 }
 0xbd7   : > { %4703 = vperm.xlu0 %5899, %v4700_v37  }
 0xc56   : > { %v4704_v1 = vpop.permute.xlu0 %4703 }
 0xc57   : > { %v4709_v28 = vrot.slane %v4704_v1, %v4708_v23 }
 0xc59   : > { %4710 = vst [vmem:[%s641_s16] sm:$0x1] %v4709_v28 }
 0xc5a PF: > { %s7273_s15 = sld [smem:[#allocation22_spill]] }
 0xc60   : > { %s32_s20 = sadd.s32 1, %s7273_s15  }
 0xc61   : > { %p29_p11 = scmp.ge.s32.totalorder %s32_s20, 4  }
 0xc63   :  { %31 = sbr.rel (!%p29_p11) target bundleno = 10 (0xa), region = 170 }
 0xc6a   :  { %4728 = vsyncpa [#allocation4], 1 }
 0xc6b   :  { %4730 = vsyncpa [#allocation4 + $0x1], 1 }
 0xc6c   :  { %4731 = vsyncpa [#allocation6], 1 }
 0xc6d   :  { %4732 = vsyncpa [#allocation9], 1 }
 0xc6e   :  { %4733 = vsyncpa [#allocation12], 1 }
 0xc6f   :  { %4734 = vsyncpa [#allocation15], 1 }

</bundles_post_ra>
